<compile_context>
chip_gen: v7x
topology: tpu7x:2x2x1
jax: 0.10.0
libtpu: 0.0.40
codegen_flags: <defaults>
</compile_context>

<pallas_src>
import functools
import math

import jax
import jax.numpy as jnp
from jax import lax
from jax.experimental import pallas as pl
from jax.experimental.pallas import tpu as pltpu

F32 = jnp.float32
BF16 = jnp.bfloat16
NEG_INF = -1e9


# ----------------------------------------------------------------------------
# In-kernel helpers (operate on VMEM-resident jnp values)
# ----------------------------------------------------------------------------
def _layernorm(x, g, b, eps=1e-5):
    mu = jnp.mean(x, axis=-1, keepdims=True)
    xc = x - mu
    var = jnp.mean(xc * xc, axis=-1, keepdims=True)
    return xc * lax.rsqrt(var + eps) * g + b


def _linear(x, w, b):
    # w may be bf16 (big matrices) or f32 (tiny projections); accumulate f32.
    return jnp.dot(x.astype(w.dtype), w, preferred_element_type=F32) + b


def _gelu(y):
    # exact (erf-based) GELU, matching torch.nn.functional.gelu default
    return 0.5 * y * (1.0 + lax.erf(y * 0.7071067811865475))


def _block_mask(n_blocks, rows_per_block, cols_per_block):
    """0/1 block-diagonal mask of shape (n*rows, n*cols), built from iota +
    compares only (no integer division / exotic reshapes)."""
    r_tot = n_blocks * rows_per_block
    c_tot = n_blocks * cols_per_block
    row = lax.broadcasted_iota(jnp.int32, (r_tot, c_tot), 0)
    col = lax.broadcasted_iota(jnp.int32, (r_tot, c_tot), 1)
    m = jnp.zeros((r_tot, c_tot), F32)
    for h in range(n_blocks):
        in_blk = ((row >= h * rows_per_block) & (row < (h + 1) * rows_per_block)
                  & (col >= h * cols_per_block) & (col < (h + 1) * cols_per_block))
        m = jnp.where(in_blk, 1.0, m)
    return m


def _mha_bd(q, k, v, attn_mask_tiled, bd_mask, block_ones, nhead):
    """Multi-head attention for ALL heads with 3 lane-dense 2D MXU matmuls.

    Block-diagonal trick: K and V are replicated along sublanes (H copies) and
    masked block-diagonally, so one (Tq,D)@(D->H*Tkv) style matmul produces
    every head's scores, one (p @ block_ones) matmul produces per-head softmax
    denominators, and one (p @ V_bd) matmul produces the head-merged output
    directly at the right lane offsets (no per-head loop, no concat, no
    per-head K transpose).

    q: (Tq, D); k, v: (Tkv, D); attn_mask_tiled: additive, broadcastable to
    (Tq, H*Tkv); bd_mask: (H*Tkv, D); block_ones: (H*Tkv, H*Tkv).
    """
    del nhead  # head count is baked into bd_mask / block_ones / tiled mask
    hd = q.shape[-1] // (bd_mask.shape[0] // k.shape[0])
    scale = 1.0 / math.sqrt(hd)
    n_rep = bd_mask.shape[0] // k.shape[0]
    k_bd = jnp.concatenate([k] * n_rep, axis=0) * bd_mask     # (H*Tkv, D)
    v_bd = jnp.concatenate([v] * n_rep, axis=0) * bd_mask     # (H*Tkv, D)
    s = lax.dot_general(q, k_bd, (((1,), (1,)), ((), ())),
                        preferred_element_type=F32) * scale   # (Tq, H*Tkv)
    s = s + attn_mask_tiled
    # Subtracting the per-row global max is softmax-invariant per block.
    s = s - jnp.max(s, axis=-1, keepdims=True)
    p = jnp.exp(s)
    denom = jnp.dot(p, block_ones, preferred_element_type=F32)
    p = p * pl.reciprocal(denom, approx=True)
    return jnp.dot(p, v_bd, preferred_element_type=F32)       # (Tq, D)


# ----------------------------------------------------------------------------
# Fused kernel: feature assembly -> encoder stack -> decoder stack -> head
# ----------------------------------------------------------------------------
W_NAMES = (
    "enc_in_w", "enc_in_b",
    "enc_ln1_g", "enc_ln1_b", "enc_wqkv", "enc_bqkv", "enc_wo", "enc_bo",
    "enc_ln2_g", "enc_ln2_b", "enc_w1", "enc_b1", "enc_w2", "enc_b2",
    "enc_norm_g", "enc_norm_b",
    "dec_in_w", "dec_in_b",
    "dec_ln1_g", "dec_ln1_b", "dec_sa_wqkv", "dec_sa_bqkv", "dec_sa_wo", "dec_sa_bo",
    "dec_ln2_g", "dec_ln2_b", "dec_ca_wq", "dec_ca_bq",
    "dec_ca_wkv_all", "dec_ca_bkv_all", "dec_ca_wo", "dec_ca_bo",
    "dec_ln3_g", "dec_ln3_b", "dec_w1", "dec_b1", "dec_w2", "dec_b2",
    "dec_norm_g", "dec_norm_b", "out_w", "out_b",
)


def _fused_kernel(pt_obs_ref, ptf_ref, ftf_ref, *rest, cfg):
    out_ref = rest[-1]
    w = dict(zip(W_NAMES, rest[:-1]))

    D = cfg["d_model"]
    H = cfg["nhead"]
    hd = D // H
    C = cfg["context_length"]
    P = cfg["prediction_length"]
    Le = cfg["num_encoder_layers"]
    Ld = cfg["num_decoder_layers"]
    past_len = cfg["past_length"]
    lags = [0] + list(cfg["lags_seq"])

    pt_obs = pt_obs_ref[0]                     # (past_len, 2): [target, observed]
    past = pt_obs[:, 0:1]                      # (past_len, 1)
    obs = pt_obs[:, 1:2]                       # (past_len, 1)
    time_feat = ptf_ref[0]                     # (past_len, time_dim)

    # ---- StdScaler over the context window (all VMEM, no XLA glue) ----
    ctx = past[past_len - C:, :]
    obs_ctx = obs[past_len - C:, :]
    denom = jnp.maximum(jnp.sum(obs_ctx, axis=0, keepdims=True), 1.0)
    loc = jnp.sum(ctx * obs_ctx, axis=0, keepdims=True) / denom
    var = jnp.sum(((ctx - loc) * obs_ctx) ** 2, axis=0, keepdims=True) / denom
    scale = jnp.sqrt(var + 1e-5)                               # (1, 1)
    scaled = (past - loc) / scale                              # (past_len, 1)

    # ---- lagged targets + static(log-scale) + dynamic(time) features ----
    lag_cols = [scaled[past_len - lag - C: past_len - lag, :] for lag in lags]
    log_scale = jnp.log(scale)
    enc_in = jnp.concatenate(
        lag_cols
        + [jnp.broadcast_to(log_scale, (C, 1)), time_feat[past_len - C:, :]],
        axis=-1)                                               # (C, enc_dim)

    # key-padding additive mask over encoder keys, tiled per head block
    key_mask = jnp.where(jnp.transpose(obs_ctx) > 0.0, 0.0, NEG_INF)   # (1, C)
    key_mask_t = jnp.concatenate([key_mask] * H, axis=1)               # (1, H*C)

    # causal mask for decoder self-attention, tiled per head block
    r_i = lax.broadcasted_iota(jnp.int32, (P, P), 0)
    c_i = lax.broadcasted_iota(jnp.int32, (P, P), 1)
    causal = jnp.where(c_i <= r_i, 0.0, NEG_INF).astype(F32)
    causal_t = jnp.concatenate([causal] * H, axis=1)                   # (P, H*P)

    # block-diagonal attention constants (hoisted out of the layer loops)
    bd_c = _block_mask(H, C, hd)       # encoder self / decoder cross (Tkv = C)
    ones_c = _block_mask(H, C, C)
    bd_p = _block_mask(H, P, hd)       # decoder self (Tkv = P)
    ones_p = _block_mask(H, P, P)

    # ================= encoder stack (pre-LN, norm_first=True) =================
    x = _linear(enc_in, w["enc_in_w"][...], w["enc_in_b"][...])        # (C, D)
    for l in range(Le):                                                # static unroll
        h_ = _layernorm(x, w["enc_ln1_g"][l], w["enc_ln1_b"][l])
        qkv = _linear(h_, w["enc_wqkv"][l], w["enc_bqkv"][l])          # (C, 3D)
        a = _mha_bd(qkv[:, :D], qkv[:, D:2 * D], qkv[:, 2 * D:],
                    key_mask_t, bd_c, ones_c, H)
        x = x + _linear(a, w["enc_wo"][l], w["enc_bo"][l])
        h_ = _layernorm(x, w["enc_ln2_g"][l], w["enc_ln2_b"][l])
        f = _gelu(_linear(h_, w["enc_w1"][l], w["enc_b1"][l]))
        x = x + _linear(f, w["enc_w2"][l], w["enc_b2"][l])
    memory = _layernorm(x, w["enc_norm_g"][...], w["enc_norm_b"][...])  # (C, D)

    # Cross-attention K/V for ALL decoder layers in one lane-dense matmul
    # (memory is layer-invariant): (C, D) @ (D, Ld*2D=128) -> (C, 128).
    kv_all = _linear(memory, w["dec_ca_wkv_all"][...], w["dec_ca_bkv_all"][...])

    # ================= decoder stack (pre-LN, tgt causal) =================
    y = _linear(ftf_ref[0], w["dec_in_w"][...], w["dec_in_b"][...])     # (P, D)
    for l in range(Ld):                                                 # static unroll
        h_ = _layernorm(y, w["dec_ln1_g"][l], w["dec_ln1_b"][l])
        qkv = _linear(h_, w["dec_sa_wqkv"][l], w["dec_sa_bqkv"][l])
        a = _mha_bd(qkv[:, :D], qkv[:, D:2 * D], qkv[:, 2 * D:],
                    causal_t, bd_p, ones_p, H)
        y = y + _linear(a, w["dec_sa_wo"][l], w["dec_sa_bo"][l])

        h_ = _layernorm(y, w["dec_ln2_g"][l], w["dec_ln2_b"][l])
        q = _linear(h_, w["dec_ca_wq"][l], w["dec_ca_bq"][l])
        k = kv_all[:, 2 * D * l: 2 * D * l + D]
        v = kv_all[:, 2 * D * l + D: 2 * D * (l + 1)]
        a = _mha_bd(q, k, v, key_mask_t, bd_c, ones_c, H)
        y = y + _linear(a, w["dec_ca_wo"][l], w["dec_ca_bo"][l])

        h_ = _layernorm(y, w["dec_ln3_g"][l], w["dec_ln3_b"][l])
        f = _gelu(_linear(h_, w["dec_w1"][l], w["dec_b1"][l]))
        y = y + _linear(f, w["dec_w2"][l], w["dec_b2"][l])

    rep = _layernorm(y, w["dec_norm_g"][...], w["dec_norm_b"][...])      # (P, D)

    # ---- StudentT arg head, lane-dense 128-wide slab ----
    # columns: 0 = df = 2 + softplus, 1 = loc, 2 = scale = softplus;
    # the scaler's AffineTransformed(loc, scale) is folded into cols 1 and 2.
    z = _linear(rep, w["out_w"][...], w["out_b"][...])                   # (P, 128)
    colid = lax.broadcasted_iota(jnp.int32, z.shape, 1)
    sp = jax.nn.softplus(z)
    df = 2.0 + sp
    loc_p = z * scale + loc
    scale_p = sp * scale
    out_ref[0] = jnp.where(colid == 0, df,
                           jnp.where(colid == 1, loc_p,
                                     jnp.where(colid == 2, scale_p, 0.0)))


# ----------------------------------------------------------------------------
# pallas_call wrapper
# ----------------------------------------------------------------------------
def _const_spec(shape):
    # whole array resident; same block every grid step (no re-DMA between steps)
    zeros = (0,) * len(shape)
    return pl.BlockSpec(shape, lambda b, _z=zeros: _z)


def fused_forward_args(pt_obs, past_time_feat, future_time_feat, params, cfg):
    B, past_len, _ = pt_obs.shape
    P = cfg["prediction_length"]
    tdim = cfg["time_dim"]
    weights = [params[n] for n in W_NAMES]
    kern = functools.partial(_fused_kernel, cfg=cfg)
    in_specs = [
        pl.BlockSpec((1, past_len, 2), lambda b: (b, 0, 0)),
        pl.BlockSpec((1, past_len, tdim), lambda b: (b, 0, 0)),
        pl.BlockSpec((1, P, tdim), lambda b: (b, 0, 0)),
    ] + [_const_spec(w.shape) for w in weights]
    # grid=(B,) "parallel": both v7x TensorCores get one batch element each;
    # on single-TC v5e/v6e this is just B tiny grid steps (weights are not
    # re-fetched because their index maps are constant).
    return pl.pallas_call(
        kern,
        out_shape=jax.ShapeDtypeStruct((B, P, 128), F32),
        grid=(B,),
        in_specs=in_specs,
        out_specs=pl.BlockSpec((1, P, 128), lambda b: (b, 0, 0)),
        compiler_params=pltpu.CompilerParams(
            dimension_semantics=("parallel",)),
    )(pt_obs, past_time_feat, future_time_feat, *weights)


# ----------------------------------------------------------------------------
# Model config / params
# ----------------------------------------------------------------------------
CFG = dict(
    context_length=16,
    prediction_length=8,
    time_dim=2,
    lags_seq=[1, 2, 4],
    d_model=32,
    nhead=4,
    num_encoder_layers=2,
    num_decoder_layers=2,
    dim_feedforward=64,
    num_parallel_samples=7,
)
CFG["past_length"] = CFG["context_length"] + max(CFG["lags_seq"])
# target_dim = 1 (StudentTOutput, univariate)
CFG["encoder_dim"] = 1 * (len(CFG["lags_seq"]) + 1) + CFG["time_dim"] + 1  # = 7
CFG["decoder_dim"] = CFG["time_dim"]                                        # = 2


def init_params(key, cfg):
    D, F = cfg["d_model"], cfg["dim_feedforward"]
    Le, Ld = cfg["num_encoder_layers"], cfg["num_decoder_layers"]
    keys = iter(jax.random.split(key, 512))

    def lin(din, dout, dtype=F32):
        bound = 1.0 / math.sqrt(din)
        wt = jax.random.uniform(next(keys), (din, dout), F32, -bound, bound)
        bs = jax.random.uniform(next(keys), (1, dout), F32, -bound, bound)
        return wt.astype(dtype), bs

    def stacked_lin(n, din, dout, dtype=BF16):
        ws, bs = zip(*[lin(din, dout, dtype) for _ in range(n)])
        return jnp.stack(ws), jnp.stack(bs)

    def stacked_ln(n):
        return jnp.ones((n, 1, D), F32), jnp.zeros((n, 1, D), F32)

    p = {}
    # encoder (tiny input projection f32; big matrices bf16)
    p["enc_in_w"], p["enc_in_b"] = lin(cfg["encoder_dim"], D, F32)
    p["enc_ln1_g"], p["enc_ln1_b"] = stacked_ln(Le)
    p["enc_wqkv"], p["enc_bqkv"] = stacked_lin(Le, D, 3 * D)
    p["enc_wo"], p["enc_bo"] = stacked_lin(Le, D, D)
    p["enc_ln2_g"], p["enc_ln2_b"] = stacked_ln(Le)
    p["enc_w1"], p["enc_b1"] = stacked_lin(Le, D, F)
    p["enc_w2"], p["enc_b2"] = stacked_lin(Le, F, D)
    p["enc_norm_g"] = jnp.ones((1, D), F32)
    p["enc_norm_b"] = jnp.zeros((1, D), F32)
    # decoder
    p["dec_in_w"], p["dec_in_b"] = lin(cfg["decoder_dim"], D, F32)
    p["dec_ln1_g"], p["dec_ln1_b"] = stacked_ln(Ld)
    p["dec_sa_wqkv"], p["dec_sa_bqkv"] = stacked_lin(Ld, D, 3 * D)
    p["dec_sa_wo"], p["dec_sa_bo"] = stacked_lin(Ld, D, D)
    p["dec_ln2_g"], p["dec_ln2_b"] = stacked_ln(Ld)
    p["dec_ca_wq"], p["dec_ca_bq"] = stacked_lin(Ld, D, D)
    # cross-attn K/V for ALL layers packed into one lane-dense (D, Ld*2D) matrix
    ca_wkv, ca_bkv = stacked_lin(Ld, D, 2 * D)            # (Ld, D, 2D), (Ld, 1, 2D)
    p["dec_ca_wkv_all"] = jnp.transpose(ca_wkv, (1, 0, 2)).reshape(D, Ld * 2 * D)
    p["dec_ca_bkv_all"] = ca_bkv.reshape(1, Ld * 2 * D).astype(F32)
    p["dec_ca_wo"], p["dec_ca_bo"] = stacked_lin(Ld, D, D)
    p["dec_ln3_g"], p["dec_ln3_b"] = stacked_ln(Ld)
    p["dec_w1"], p["dec_b1"] = stacked_lin(Ld, D, F)
    p["dec_w2"], p["dec_b2"] = stacked_lin(Ld, F, D)
    p["dec_norm_g"] = jnp.ones((1, D), F32)
    p["dec_norm_b"] = jnp.zeros((1, D), F32)
    # StudentT arg head (df, loc, scale) zero-padded to a lane-dense 128 slab
    out_w, out_b = lin(D, 3, F32)
    p["out_w"] = jnp.zeros((D, 128), F32).at[:, :3].set(out_w)
    p["out_b"] = jnp.zeros((1, 128), F32).at[:, :3].set(out_b)
    return p


# ----------------------------------------------------------------------------
# Forward (kernel + minimal JAX glue for sampling)
# ----------------------------------------------------------------------------
def forward(params, cfg, past_target, past_observed_values, past_time_feat,
            future_time_feat, sample_key, num_parallel_samples=None):
    num_parallel_samples = num_parallel_samples or cfg["num_parallel_samples"]
    # The only wrapper-side data prep: stack target & observed on the last axis.
    pt_obs = jnp.stack([past_target, past_observed_values], axis=-1).astype(F32)

    args = fused_forward_args(pt_obs, past_time_feat.astype(F32),
                              future_time_feat.astype(F32), params, cfg)
    df, loc_p, scale_p = args[..., 0], args[..., 1], args[..., 2]   # (B, P) each

    # TODO(synk): torch.distributions StudentT RNG has no Pallas equivalent;
    # sampling uses jax.random.t (affine transform already folded in-kernel).
    t = jax.random.t(sample_key, df, shape=(num_parallel_samples,) + df.shape)
    samples = t * scale_p[None] + loc_p[None]
    return jnp.transpose(samples, (1, 0, 2))        # (B, num_parallel_samples, P)


# ----------------------------------------------------------------------------
if __name__ == "__main__":
    key = jax.random.PRNGKey(0)
    kp, kd, ks = jax.random.split(key, 3)
    params = init_params(kp, CFG)

    B = 2
    k1, k2, k3 = jax.random.split(kd, 3)
    past_target = jax.random.normal(k1, (B, CFG["past_length"]), F32)
    past_observed_values = jnp.ones((B, CFG["past_length"]), F32)
    past_time_feat = jax.random.normal(k2, (B, CFG["past_length"], CFG["time_dim"]), F32)
    future_time_feat = jax.random.normal(
        k3, (B, CFG["prediction_length"], CFG["time_dim"]), F32
    )

    out = forward(
        params, CFG, past_target, past_observed_values, past_time_feat,
        future_time_feat, ks, num_parallel_samples=CFG["num_parallel_samples"],
    )
    out = jax.block_until_ready(out)
    assert out.shape == (B, CFG["num_parallel_samples"], CFG["prediction_length"]), out.shape
    assert bool(jnp.all(jnp.isfinite(out)))
    print("KERNEL_OK")
</pallas_src>

<mosaic_0001>
module attributes {stable_mosaic.version = 11 : i64} {
  func.func @_fused_kernel(%arg0: i32, %arg1: memref<1x20x2xf32, #tpu.memory_space<vmem>>, %arg2: memref<1x20x2xf32, #tpu.memory_space<vmem>>, %arg3: memref<1x8x2xf32, #tpu.memory_space<vmem>>, %arg4: memref<7x32xf32, #tpu.memory_space<vmem>>, %arg5: memref<1x32xf32, #tpu.memory_space<vmem>>, %arg6: memref<2x1x32xf32, #tpu.memory_space<vmem>>, %arg7: memref<2x1x32xf32, #tpu.memory_space<vmem>>, %arg8: memref<2x32x96xbf16, #tpu.memory_space<vmem>>, %arg9: memref<2x1x96xf32, #tpu.memory_space<vmem>>, %arg10: memref<2x32x32xbf16, #tpu.memory_space<vmem>>, %arg11: memref<2x1x32xf32, #tpu.memory_space<vmem>>, %arg12: memref<2x1x32xf32, #tpu.memory_space<vmem>>, %arg13: memref<2x1x32xf32, #tpu.memory_space<vmem>>, %arg14: memref<2x32x64xbf16, #tpu.memory_space<vmem>>, %arg15: memref<2x1x64xf32, #tpu.memory_space<vmem>>, %arg16: memref<2x64x32xbf16, #tpu.memory_space<vmem>>, %arg17: memref<2x1x32xf32, #tpu.memory_space<vmem>>, %arg18: memref<1x32xf32, #tpu.memory_space<vmem>>, %arg19: memref<1x32xf32, #tpu.memory_space<vmem>>, %arg20: memref<2x32xf32, #tpu.memory_space<vmem>>, %arg21: memref<1x32xf32, #tpu.memory_space<vmem>>, %arg22: memref<2x1x32xf32, #tpu.memory_space<vmem>>, %arg23: memref<2x1x32xf32, #tpu.memory_space<vmem>>, %arg24: memref<2x32x96xbf16, #tpu.memory_space<vmem>>, %arg25: memref<2x1x96xf32, #tpu.memory_space<vmem>>, %arg26: memref<2x32x32xbf16, #tpu.memory_space<vmem>>, %arg27: memref<2x1x32xf32, #tpu.memory_space<vmem>>, %arg28: memref<2x1x32xf32, #tpu.memory_space<vmem>>, %arg29: memref<2x1x32xf32, #tpu.memory_space<vmem>>, %arg30: memref<2x32x32xbf16, #tpu.memory_space<vmem>>, %arg31: memref<2x1x32xf32, #tpu.memory_space<vmem>>, %arg32: memref<32x128xbf16, #tpu.memory_space<vmem>>, %arg33: memref<1x128xf32, #tpu.memory_space<vmem>>, %arg34: memref<2x32x32xbf16, #tpu.memory_space<vmem>>, %arg35: memref<2x1x32xf32, #tpu.memory_space<vmem>>, %arg36: memref<2x1x32xf32, #tpu.memory_space<vmem>>, %arg37: memref<2x1x32xf32, #tpu.memory_space<vmem>>, %arg38: memref<2x32x64xbf16, #tpu.memory_space<vmem>>, %arg39: memref<2x1x64xf32, #tpu.memory_space<vmem>>, %arg40: memref<2x64x32xbf16, #tpu.memory_space<vmem>>, %arg41: memref<2x1x32xf32, #tpu.memory_space<vmem>>, %arg42: memref<1x32xf32, #tpu.memory_space<vmem>>, %arg43: memref<1x32xf32, #tpu.memory_space<vmem>>, %arg44: memref<32x128xf32, #tpu.memory_space<vmem>>, %arg45: memref<1x128xf32, #tpu.memory_space<vmem>>, %arg46: memref<1x8x128xf32, #tpu.memory_space<vmem>>) attributes {dimension_semantics = [#tpu.dimension_semantics<parallel>], iteration_bounds = array<i64: 2>, scalar_prefetch = 0 : i64, scratch_operands = 0 : i64, tpu.core_type = #tpu.core_type<tc>, window_params = [{transform_indices = @transform_0, window_bounds = array<i64: 1, 20, 2>}, {transform_indices = @transform_1, window_bounds = array<i64: 1, 20, 2>}, {transform_indices = @transform_2, window_bounds = array<i64: 1, 8, 2>}, {pipeline_mode = #tpu.pipeline_mode<synchronous>, transform_indices = @transform_3, window_bounds = array<i64: 7, 32>}, {pipeline_mode = #tpu.pipeline_mode<synchronous>, transform_indices = @transform_4, window_bounds = array<i64: 1, 32>}, {pipeline_mode = #tpu.pipeline_mode<synchronous>, transform_indices = @transform_5, window_bounds = array<i64: 2, 1, 32>}, {pipeline_mode = #tpu.pipeline_mode<synchronous>, transform_indices = @transform_6, window_bounds = array<i64: 2, 1, 32>}, {pipeline_mode = #tpu.pipeline_mode<synchronous>, transform_indices = @transform_7, window_bounds = array<i64: 2, 32, 96>}, {pipeline_mode = #tpu.pipeline_mode<synchronous>, transform_indices = @transform_8, window_bounds = array<i64: 2, 1, 96>}, {pipeline_mode = #tpu.pipeline_mode<synchronous>, transform_indices = @transform_9, window_bounds = array<i64: 2, 32, 32>}, {pipeline_mode = #tpu.pipeline_mode<synchronous>, transform_indices = @transform_10, window_bounds = array<i64: 2, 1, 32>}, {pipeline_mode = #tpu.pipeline_mode<synchronous>, transform_indices = @transform_11, window_bounds = array<i64: 2, 1, 32>}, {pipeline_mode = #tpu.pipeline_mode<synchronous>, transform_indices = @transform_12, window_bounds = array<i64: 2, 1, 32>}, {pipeline_mode = #tpu.pipeline_mode<synchronous>, transform_indices = @transform_13, window_bounds = array<i64: 2, 32, 64>}, {pipeline_mode = #tpu.pipeline_mode<synchronous>, transform_indices = @transform_14, window_bounds = array<i64: 2, 1, 64>}, {pipeline_mode = #tpu.pipeline_mode<synchronous>, transform_indices = @transform_15, window_bounds = array<i64: 2, 64, 32>}, {pipeline_mode = #tpu.pipeline_mode<synchronous>, transform_indices = @transform_16, window_bounds = array<i64: 2, 1, 32>}, {pipeline_mode = #tpu.pipeline_mode<synchronous>, transform_indices = @transform_17, window_bounds = array<i64: 1, 32>}, {pipeline_mode = #tpu.pipeline_mode<synchronous>, transform_indices = @transform_18, window_bounds = array<i64: 1, 32>}, {pipeline_mode = #tpu.pipeline_mode<synchronous>, transform_indices = @transform_19, window_bounds = array<i64: 2, 32>}, {pipeline_mode = #tpu.pipeline_mode<synchronous>, transform_indices = @transform_20, window_bounds = array<i64: 1, 32>}, {pipeline_mode = #tpu.pipeline_mode<synchronous>, transform_indices = @transform_21, window_bounds = array<i64: 2, 1, 32>}, {pipeline_mode = #tpu.pipeline_mode<synchronous>, transform_indices = @transform_22, window_bounds = array<i64: 2, 1, 32>}, {pipeline_mode = #tpu.pipeline_mode<synchronous>, transform_indices = @transform_23, window_bounds = array<i64: 2, 32, 96>}, {pipeline_mode = #tpu.pipeline_mode<synchronous>, transform_indices = @transform_24, window_bounds = array<i64: 2, 1, 96>}, {pipeline_mode = #tpu.pipeline_mode<synchronous>, transform_indices = @transform_25, window_bounds = array<i64: 2, 32, 32>}, {pipeline_mode = #tpu.pipeline_mode<synchronous>, transform_indices = @transform_26, window_bounds = array<i64: 2, 1, 32>}, {pipeline_mode = #tpu.pipeline_mode<synchronous>, transform_indices = @transform_27, window_bounds = array<i64: 2, 1, 32>}, {pipeline_mode = #tpu.pipeline_mode<synchronous>, transform_indices = @transform_28, window_bounds = array<i64: 2, 1, 32>}, {pipeline_mode = #tpu.pipeline_mode<synchronous>, transform_indices = @transform_29, window_bounds = array<i64: 2, 32, 32>}, {pipeline_mode = #tpu.pipeline_mode<synchronous>, transform_indices = @transform_30, window_bounds = array<i64: 2, 1, 32>}, {pipeline_mode = #tpu.pipeline_mode<synchronous>, transform_indices = @transform_31, window_bounds = array<i64: 32, 128>}, {pipeline_mode = #tpu.pipeline_mode<synchronous>, transform_indices = @transform_32, window_bounds = array<i64: 1, 128>}, {pipeline_mode = #tpu.pipeline_mode<synchronous>, transform_indices = @transform_33, window_bounds = array<i64: 2, 32, 32>}, {pipeline_mode = #tpu.pipeline_mode<synchronous>, transform_indices = @transform_34, window_bounds = array<i64: 2, 1, 32>}, {pipeline_mode = #tpu.pipeline_mode<synchronous>, transform_indices = @transform_35, window_bounds = array<i64: 2, 1, 32>}, {pipeline_mode = #tpu.pipeline_mode<synchronous>, transform_indices = @transform_36, window_bounds = array<i64: 2, 1, 32>}, {pipeline_mode = #tpu.pipeline_mode<synchronous>, transform_indices = @transform_37, window_bounds = array<i64: 2, 32, 64>}, {pipeline_mode = #tpu.pipeline_mode<synchronous>, transform_indices = @transform_38, window_bounds = array<i64: 2, 1, 64>}, {pipeline_mode = #tpu.pipeline_mode<synchronous>, transform_indices = @transform_39, window_bounds = array<i64: 2, 64, 32>}, {pipeline_mode = #tpu.pipeline_mode<synchronous>, transform_indices = @transform_40, window_bounds = array<i64: 2, 1, 32>}, {pipeline_mode = #tpu.pipeline_mode<synchronous>, transform_indices = @transform_41, window_bounds = array<i64: 1, 32>}, {pipeline_mode = #tpu.pipeline_mode<synchronous>, transform_indices = @transform_42, window_bounds = array<i64: 1, 32>}, {pipeline_mode = #tpu.pipeline_mode<synchronous>, transform_indices = @transform_43, window_bounds = array<i64: 32, 128>}, {pipeline_mode = #tpu.pipeline_mode<synchronous>, transform_indices = @transform_44, window_bounds = array<i64: 1, 128>}, {transform_indices = @transform_45, window_bounds = array<i64: 1, 8, 128>}]} {
    %c0 = arith.constant 0 : index
    %c0_0 = arith.constant 0 : index
    %c0_1 = arith.constant 0 : index
    %0 = vector.load %arg1[%c0, %c0_0, %c0_1] : memref<1x20x2xf32, #tpu.memory_space<vmem>>, vector<1x20x2xf32>
    %1 = vector.shape_cast %0 : vector<1x20x2xf32> to vector<20x2xf32>
    %2 = vector.extract_strided_slice %1 {offsets = [0, 0], sizes = [20, 1], strides = [1, 1]} : vector<20x2xf32> to vector<20x1xf32>
    %3 = vector.extract_strided_slice %1 {offsets = [0, 1], sizes = [20, 1], strides = [1, 1]} : vector<20x2xf32> to vector<20x1xf32>
    %c0_2 = arith.constant 0 : index
    %c0_3 = arith.constant 0 : index
    %c0_4 = arith.constant 0 : index
    %4 = vector.load %arg2[%c0_2, %c0_3, %c0_4] : memref<1x20x2xf32, #tpu.memory_space<vmem>>, vector<1x20x2xf32>
    %5 = vector.shape_cast %4 : vector<1x20x2xf32> to vector<20x2xf32>
    %6 = vector.extract_strided_slice %2 {offsets = [4, 0], sizes = [16, 1], strides = [1, 1]} : vector<20x1xf32> to vector<16x1xf32>
    %7 = vector.extract_strided_slice %3 {offsets = [4, 0], sizes = [16, 1], strides = [1, 1]} : vector<20x1xf32> to vector<16x1xf32>
    %cst = arith.constant dense<0.000000e+00> : vector<1xf32>
    %8 = vector.multi_reduction <add>, %7, %cst [0] : vector<16x1xf32> to vector<1xf32>
    %9 = vector.shape_cast %8 : vector<1xf32> to vector<1x1xf32>
    %cst_5 = arith.constant 1.000000e+00 : f32
    %10 = vector.broadcast %cst_5 : f32 to vector<1x1xf32>
    %11 = arith.maximumf %9, %10 : vector<1x1xf32>
    %12 = arith.mulf %6, %7 : vector<16x1xf32>
    %cst_6 = arith.constant dense<0.000000e+00> : vector<1xf32>
    %13 = vector.multi_reduction <add>, %12, %cst_6 [0] : vector<16x1xf32> to vector<1xf32>
    %14 = vector.shape_cast %13 : vector<1xf32> to vector<1x1xf32>
    %15 = arith.divf %14, %11 : vector<1x1xf32>
    %16 = vector.broadcast %15 : vector<1x1xf32> to vector<16x1xf32>
    %17 = arith.subf %6, %16 : vector<16x1xf32>
    %18 = arith.mulf %17, %7 : vector<16x1xf32>
    %19 = arith.mulf %18, %18 : vector<16x1xf32>
    %cst_7 = arith.constant dense<0.000000e+00> : vector<1xf32>
    %20 = vector.multi_reduction <add>, %19, %cst_7 [0] : vector<16x1xf32> to vector<1xf32>
    %21 = vector.shape_cast %20 : vector<1xf32> to vector<1x1xf32>
    %22 = arith.divf %21, %11 : vector<1x1xf32>
    %cst_8 = arith.constant 9.99999974E-6 : f32
    %23 = vector.broadcast %cst_8 : f32 to vector<1x1xf32>
    %24 = arith.addf %22, %23 : vector<1x1xf32>
    %25 = math.sqrt %24 : vector<1x1xf32>
    %26 = vector.broadcast %15 : vector<1x1xf32> to vector<20x1xf32>
    %27 = arith.subf %2, %26 : vector<20x1xf32>
    %28 = vector.broadcast %25 : vector<1x1xf32> to vector<20x1xf32>
    %29 = arith.divf %27, %28 : vector<20x1xf32>
    %30 = vector.extract_strided_slice %29 {offsets = [4, 0], sizes = [16, 1], strides = [1, 1]} : vector<20x1xf32> to vector<16x1xf32>
    %31 = vector.extract_strided_slice %29 {offsets = [3, 0], sizes = [16, 1], strides = [1, 1]} : vector<20x1xf32> to vector<16x1xf32>
    %32 = vector.extract_strided_slice %29 {offsets = [2, 0], sizes = [16, 1], strides = [1, 1]} : vector<20x1xf32> to vector<16x1xf32>
    %33 = vector.extract_strided_slice %29 {offsets = [0, 0], sizes = [16, 1], strides = [1, 1]} : vector<20x1xf32> to vector<16x1xf32>
    %34 = math.log %25 : vector<1x1xf32>
    %35 = vector.shape_cast %34 : vector<1x1xf32> to vector<1x1xf32>
    %36 = vector.broadcast %35 : vector<1x1xf32> to vector<16x1xf32>
    %37 = vector.extract_strided_slice %5 {offsets = [4, 0], sizes = [16, 2], strides = [1, 1]} : vector<20x2xf32> to vector<16x2xf32>
    %38 = tpu.concatenate %30, %31, %32, %33, %36, %37 in 1 : vector<16x1xf32>, vector<16x1xf32>, vector<16x1xf32>, vector<16x1xf32>, vector<16x1xf32>, vector<16x2xf32> -> vector<16x7xf32>
    %39 = tpu.transpose %7, [1, 0] : vector<16x1xf32> -> vector<1x16xf32>
    %cst_9 = arith.constant 0.000000e+00 : f32
    %40 = vector.broadcast %cst_9 : f32 to vector<1x16xf32>
    %41 = arith.cmpf ogt, %39, %40 : vector<1x16xf32>
    %cst_10 = arith.constant 0.000000e+00 : f32
    %cst_11 = arith.constant -1.000000e+09 : f32
    %42 = vector.broadcast %cst_10 : f32 to vector<1x16xf32>
    %43 = vector.broadcast %cst_11 : f32 to vector<1x16xf32>
    %44 = arith.select %41, %42, %43 : vector<1x16xi1>, vector<1x16xf32>
    %45 = tpu.concatenate %44, %44, %44, %44 in 1 : vector<1x16xf32>, vector<1x16xf32>, vector<1x16xf32>, vector<1x16xf32> -> vector<1x64xf32>
    %46 = tpu.iota {dimensions = array<i32: 0>} : vector<8x8xi32>
    %47 = tpu.iota {dimensions = array<i32: 1>} : vector<8x8xi32>
    %48 = arith.cmpi sle, %47, %46 : vector<8x8xi32>
    %cst_12 = arith.constant 0.000000e+00 : f32
    %cst_13 = arith.constant -1.000000e+09 : f32
    %49 = vector.broadcast %cst_12 : f32 to vector<8x8xf32>
    %50 = vector.broadcast %cst_13 : f32 to vector<8x8xf32>
    %51 = arith.select %48, %49, %50 : vector<8x8xi1>, vector<8x8xf32>
    %52 = tpu.concatenate %51, %51, %51, %51 in 1 : vector<8x8xf32>, vector<8x8xf32>, vector<8x8xf32>, vector<8x8xf32> -> vector<8x32xf32>
    %53 = tpu.iota {dimensions = array<i32: 0>} : vector<64x32xi32>
    %54 = tpu.iota {dimensions = array<i32: 1>} : vector<64x32xi32>
    %cst_14 = arith.constant 0.000000e+00 : f32
    %55 = vector.broadcast %cst_14 : f32 to vector<64x32xf32>
    %c0_i32 = arith.constant 0 : i32
    %56 = vector.broadcast %c0_i32 : i32 to vector<64x32xi32>
    %57 = arith.cmpi sge, %53, %56 : vector<64x32xi32>
    %c16_i32 = arith.constant 16 : i32
    %58 = vector.broadcast %c16_i32 : i32 to vector<64x32xi32>
    %59 = arith.cmpi slt, %53, %58 : vector<64x32xi32>
    %60 = arith.andi %57, %59 : vector<64x32xi1>
    %c0_i32_15 = arith.constant 0 : i32
    %61 = vector.broadcast %c0_i32_15 : i32 to vector<64x32xi32>
    %62 = arith.cmpi sge, %54, %61 : vector<64x32xi32>
    %63 = arith.andi %60, %62 : vector<64x32xi1>
    %c8_i32 = arith.constant 8 : i32
    %64 = vector.broadcast %c8_i32 : i32 to vector<64x32xi32>
    %65 = arith.cmpi slt, %54, %64 : vector<64x32xi32>
    %66 = arith.andi %63, %65 : vector<64x32xi1>
    %cst_16 = arith.constant 1.000000e+00 : f32
    %67 = vector.broadcast %cst_16 : f32 to vector<64x32xf32>
    %68 = arith.select %66, %67, %55 : vector<64x32xi1>, vector<64x32xf32>
    %c16_i32_17 = arith.constant 16 : i32
    %69 = vector.broadcast %c16_i32_17 : i32 to vector<64x32xi32>
    %70 = arith.cmpi sge, %53, %69 : vector<64x32xi32>
    %c32_i32 = arith.constant 32 : i32
    %71 = vector.broadcast %c32_i32 : i32 to vector<64x32xi32>
    %72 = arith.cmpi slt, %53, %71 : vector<64x32xi32>
    %73 = arith.andi %70, %72 : vector<64x32xi1>
    %c8_i32_18 = arith.constant 8 : i32
    %74 = vector.broadcast %c8_i32_18 : i32 to vector<64x32xi32>
    %75 = arith.cmpi sge, %54, %74 : vector<64x32xi32>
    %76 = arith.andi %73, %75 : vector<64x32xi1>
    %c16_i32_19 = arith.constant 16 : i32
    %77 = vector.broadcast %c16_i32_19 : i32 to vector<64x32xi32>
    %78 = arith.cmpi slt, %54, %77 : vector<64x32xi32>
    %79 = arith.andi %76, %78 : vector<64x32xi1>
    %cst_20 = arith.constant 1.000000e+00 : f32
    %80 = vector.broadcast %cst_20 : f32 to vector<64x32xf32>
    %81 = arith.select %79, %80, %68 : vector<64x32xi1>, vector<64x32xf32>
    %c32_i32_21 = arith.constant 32 : i32
    %82 = vector.broadcast %c32_i32_21 : i32 to vector<64x32xi32>
    %83 = arith.cmpi sge, %53, %82 : vector<64x32xi32>
    %c48_i32 = arith.constant 48 : i32
    %84 = vector.broadcast %c48_i32 : i32 to vector<64x32xi32>
    %85 = arith.cmpi slt, %53, %84 : vector<64x32xi32>
    %86 = arith.andi %83, %85 : vector<64x32xi1>
    %c16_i32_22 = arith.constant 16 : i32
    %87 = vector.broadcast %c16_i32_22 : i32 to vector<64x32xi32>
    %88 = arith.cmpi sge, %54, %87 : vector<64x32xi32>
    %89 = arith.andi %86, %88 : vector<64x32xi1>
    %c24_i32 = arith.constant 24 : i32
    %90 = vector.broadcast %c24_i32 : i32 to vector<64x32xi32>
    %91 = arith.cmpi slt, %54, %90 : vector<64x32xi32>
    %92 = arith.andi %89, %91 : vector<64x32xi1>
    %cst_23 = arith.constant 1.000000e+00 : f32
    %93 = vector.broadcast %cst_23 : f32 to vector<64x32xf32>
    %94 = arith.select %92, %93, %81 : vector<64x32xi1>, vector<64x32xf32>
    %c48_i32_24 = arith.constant 48 : i32
    %95 = vector.broadcast %c48_i32_24 : i32 to vector<64x32xi32>
    %96 = arith.cmpi sge, %53, %95 : vector<64x32xi32>
    %c64_i32 = arith.constant 64 : i32
    %97 = vector.broadcast %c64_i32 : i32 to vector<64x32xi32>
    %98 = arith.cmpi slt, %53, %97 : vector<64x32xi32>
    %99 = arith.andi %96, %98 : vector<64x32xi1>
    %c24_i32_25 = arith.constant 24 : i32
    %100 = vector.broadcast %c24_i32_25 : i32 to vector<64x32xi32>
    %101 = arith.cmpi sge, %54, %100 : vector<64x32xi32>
    %102 = arith.andi %99, %101 : vector<64x32xi1>
    %c32_i32_26 = arith.constant 32 : i32
    %103 = vector.broadcast %c32_i32_26 : i32 to vector<64x32xi32>
    %104 = arith.cmpi slt, %54, %103 : vector<64x32xi32>
    %105 = arith.andi %102, %104 : vector<64x32xi1>
    %cst_27 = arith.constant 1.000000e+00 : f32
    %106 = vector.broadcast %cst_27 : f32 to vector<64x32xf32>
    %107 = arith.select %105, %106, %94 : vector<64x32xi1>, vector<64x32xf32>
    %108 = tpu.iota {dimensions = array<i32: 0>} : vector<64x64xi32>
    %109 = tpu.iota {dimensions = array<i32: 1>} : vector<64x64xi32>
    %cst_28 = arith.constant 0.000000e+00 : f32
    %110 = vector.broadcast %cst_28 : f32 to vector<64x64xf32>
    %c0_i32_29 = arith.constant 0 : i32
    %111 = vector.broadcast %c0_i32_29 : i32 to vector<64x64xi32>
    %112 = arith.cmpi sge, %108, %111 : vector<64x64xi32>
    %c16_i32_30 = arith.constant 16 : i32
    %113 = vector.broadcast %c16_i32_30 : i32 to vector<64x64xi32>
    %114 = arith.cmpi slt, %108, %113 : vector<64x64xi32>
    %115 = arith.andi %112, %114 : vector<64x64xi1>
    %c0_i32_31 = arith.constant 0 : i32
    %116 = vector.broadcast %c0_i32_31 : i32 to vector<64x64xi32>
    %117 = arith.cmpi sge, %109, %116 : vector<64x64xi32>
    %118 = arith.andi %115, %117 : vector<64x64xi1>
    %c16_i32_32 = arith.constant 16 : i32
    %119 = vector.broadcast %c16_i32_32 : i32 to vector<64x64xi32>
    %120 = arith.cmpi slt, %109, %119 : vector<64x64xi32>
    %121 = arith.andi %118, %120 : vector<64x64xi1>
    %cst_33 = arith.constant 1.000000e+00 : f32
    %122 = vector.broadcast %cst_33 : f32 to vector<64x64xf32>
    %123 = arith.select %121, %122, %110 : vector<64x64xi1>, vector<64x64xf32>
    %c16_i32_34 = arith.constant 16 : i32
    %124 = vector.broadcast %c16_i32_34 : i32 to vector<64x64xi32>
    %125 = arith.cmpi sge, %108, %124 : vector<64x64xi32>
    %c32_i32_35 = arith.constant 32 : i32
    %126 = vector.broadcast %c32_i32_35 : i32 to vector<64x64xi32>
    %127 = arith.cmpi slt, %108, %126 : vector<64x64xi32>
    %128 = arith.andi %125, %127 : vector<64x64xi1>
    %c16_i32_36 = arith.constant 16 : i32
    %129 = vector.broadcast %c16_i32_36 : i32 to vector<64x64xi32>
    %130 = arith.cmpi sge, %109, %129 : vector<64x64xi32>
    %131 = arith.andi %128, %130 : vector<64x64xi1>
    %c32_i32_37 = arith.constant 32 : i32
    %132 = vector.broadcast %c32_i32_37 : i32 to vector<64x64xi32>
    %133 = arith.cmpi slt, %109, %132 : vector<64x64xi32>
    %134 = arith.andi %131, %133 : vector<64x64xi1>
    %cst_38 = arith.constant 1.000000e+00 : f32
    %135 = vector.broadcast %cst_38 : f32 to vector<64x64xf32>
    %136 = arith.select %134, %135, %123 : vector<64x64xi1>, vector<64x64xf32>
    %c32_i32_39 = arith.constant 32 : i32
    %137 = vector.broadcast %c32_i32_39 : i32 to vector<64x64xi32>
    %138 = arith.cmpi sge, %108, %137 : vector<64x64xi32>
    %c48_i32_40 = arith.constant 48 : i32
    %139 = vector.broadcast %c48_i32_40 : i32 to vector<64x64xi32>
    %140 = arith.cmpi slt, %108, %139 : vector<64x64xi32>
    %141 = arith.andi %138, %140 : vector<64x64xi1>
    %c32_i32_41 = arith.constant 32 : i32
    %142 = vector.broadcast %c32_i32_41 : i32 to vector<64x64xi32>
    %143 = arith.cmpi sge, %109, %142 : vector<64x64xi32>
    %144 = arith.andi %141, %143 : vector<64x64xi1>
    %c48_i32_42 = arith.constant 48 : i32
    %145 = vector.broadcast %c48_i32_42 : i32 to vector<64x64xi32>
    %146 = arith.cmpi slt, %109, %145 : vector<64x64xi32>
    %147 = arith.andi %144, %146 : vector<64x64xi1>
    %cst_43 = arith.constant 1.000000e+00 : f32
    %148 = vector.broadcast %cst_43 : f32 to vector<64x64xf32>
    %149 = arith.select %147, %148, %136 : vector<64x64xi1>, vector<64x64xf32>
    %c48_i32_44 = arith.constant 48 : i32
    %150 = vector.broadcast %c48_i32_44 : i32 to vector<64x64xi32>
    %151 = arith.cmpi sge, %108, %150 : vector<64x64xi32>
    %c64_i32_45 = arith.constant 64 : i32
    %152 = vector.broadcast %c64_i32_45 : i32 to vector<64x64xi32>
    %153 = arith.cmpi slt, %108, %152 : vector<64x64xi32>
    %154 = arith.andi %151, %153 : vector<64x64xi1>
    %c48_i32_46 = arith.constant 48 : i32
    %155 = vector.broadcast %c48_i32_46 : i32 to vector<64x64xi32>
    %156 = arith.cmpi sge, %109, %155 : vector<64x64xi32>
    %157 = arith.andi %154, %156 : vector<64x64xi1>
    %c64_i32_47 = arith.constant 64 : i32
    %158 = vector.broadcast %c64_i32_47 : i32 to vector<64x64xi32>
    %159 = arith.cmpi slt, %109, %158 : vector<64x64xi32>
    %160 = arith.andi %157, %159 : vector<64x64xi1>
    %cst_48 = arith.constant 1.000000e+00 : f32
    %161 = vector.broadcast %cst_48 : f32 to vector<64x64xf32>
    %162 = arith.select %160, %161, %149 : vector<64x64xi1>, vector<64x64xf32>
    %163 = tpu.iota {dimensions = array<i32: 0>} : vector<32x32xi32>
    %164 = tpu.iota {dimensions = array<i32: 1>} : vector<32x32xi32>
    %cst_49 = arith.constant 0.000000e+00 : f32
    %165 = vector.broadcast %cst_49 : f32 to vector<32x32xf32>
    %c0_i32_50 = arith.constant 0 : i32
    %166 = vector.broadcast %c0_i32_50 : i32 to vector<32x32xi32>
    %167 = arith.cmpi sge, %163, %166 : vector<32x32xi32>
    %c8_i32_51 = arith.constant 8 : i32
    %168 = vector.broadcast %c8_i32_51 : i32 to vector<32x32xi32>
    %169 = arith.cmpi slt, %163, %168 : vector<32x32xi32>
    %170 = arith.andi %167, %169 : vector<32x32xi1>
    %c0_i32_52 = arith.constant 0 : i32
    %171 = vector.broadcast %c0_i32_52 : i32 to vector<32x32xi32>
    %172 = arith.cmpi sge, %164, %171 : vector<32x32xi32>
    %173 = arith.andi %170, %172 : vector<32x32xi1>
    %c8_i32_53 = arith.constant 8 : i32
    %174 = vector.broadcast %c8_i32_53 : i32 to vector<32x32xi32>
    %175 = arith.cmpi slt, %164, %174 : vector<32x32xi32>
    %176 = arith.andi %173, %175 : vector<32x32xi1>
    %cst_54 = arith.constant 1.000000e+00 : f32
    %177 = vector.broadcast %cst_54 : f32 to vector<32x32xf32>
    %178 = arith.select %176, %177, %165 : vector<32x32xi1>, vector<32x32xf32>
    %c8_i32_55 = arith.constant 8 : i32
    %179 = vector.broadcast %c8_i32_55 : i32 to vector<32x32xi32>
    %180 = arith.cmpi sge, %163, %179 : vector<32x32xi32>
    %c16_i32_56 = arith.constant 16 : i32
    %181 = vector.broadcast %c16_i32_56 : i32 to vector<32x32xi32>
    %182 = arith.cmpi slt, %163, %181 : vector<32x32xi32>
    %183 = arith.andi %180, %182 : vector<32x32xi1>
    %c8_i32_57 = arith.constant 8 : i32
    %184 = vector.broadcast %c8_i32_57 : i32 to vector<32x32xi32>
    %185 = arith.cmpi sge, %164, %184 : vector<32x32xi32>
    %186 = arith.andi %183, %185 : vector<32x32xi1>
    %c16_i32_58 = arith.constant 16 : i32
    %187 = vector.broadcast %c16_i32_58 : i32 to vector<32x32xi32>
    %188 = arith.cmpi slt, %164, %187 : vector<32x32xi32>
    %189 = arith.andi %186, %188 : vector<32x32xi1>
    %cst_59 = arith.constant 1.000000e+00 : f32
    %190 = vector.broadcast %cst_59 : f32 to vector<32x32xf32>
    %191 = arith.select %189, %190, %178 : vector<32x32xi1>, vector<32x32xf32>
    %c16_i32_60 = arith.constant 16 : i32
    %192 = vector.broadcast %c16_i32_60 : i32 to vector<32x32xi32>
    %193 = arith.cmpi sge, %163, %192 : vector<32x32xi32>
    %c24_i32_61 = arith.constant 24 : i32
    %194 = vector.broadcast %c24_i32_61 : i32 to vector<32x32xi32>
    %195 = arith.cmpi slt, %163, %194 : vector<32x32xi32>
    %196 = arith.andi %193, %195 : vector<32x32xi1>
    %c16_i32_62 = arith.constant 16 : i32
    %197 = vector.broadcast %c16_i32_62 : i32 to vector<32x32xi32>
    %198 = arith.cmpi sge, %164, %197 : vector<32x32xi32>
    %199 = arith.andi %196, %198 : vector<32x32xi1>
    %c24_i32_63 = arith.constant 24 : i32
    %200 = vector.broadcast %c24_i32_63 : i32 to vector<32x32xi32>
    %201 = arith.cmpi slt, %164, %200 : vector<32x32xi32>
    %202 = arith.andi %199, %201 : vector<32x32xi1>
    %cst_64 = arith.constant 1.000000e+00 : f32
    %203 = vector.broadcast %cst_64 : f32 to vector<32x32xf32>
    %204 = arith.select %202, %203, %191 : vector<32x32xi1>, vector<32x32xf32>
    %c24_i32_65 = arith.constant 24 : i32
    %205 = vector.broadcast %c24_i32_65 : i32 to vector<32x32xi32>
    %206 = arith.cmpi sge, %163, %205 : vector<32x32xi32>
    %c32_i32_66 = arith.constant 32 : i32
    %207 = vector.broadcast %c32_i32_66 : i32 to vector<32x32xi32>
    %208 = arith.cmpi slt, %163, %207 : vector<32x32xi32>
    %209 = arith.andi %206, %208 : vector<32x32xi1>
    %c24_i32_67 = arith.constant 24 : i32
    %210 = vector.broadcast %c24_i32_67 : i32 to vector<32x32xi32>
    %211 = arith.cmpi sge, %164, %210 : vector<32x32xi32>
    %212 = arith.andi %209, %211 : vector<32x32xi1>
    %c32_i32_68 = arith.constant 32 : i32
    %213 = vector.broadcast %c32_i32_68 : i32 to vector<32x32xi32>
    %214 = arith.cmpi slt, %164, %213 : vector<32x32xi32>
    %215 = arith.andi %212, %214 : vector<32x32xi1>
    %cst_69 = arith.constant 1.000000e+00 : f32
    %216 = vector.broadcast %cst_69 : f32 to vector<32x32xf32>
    %217 = arith.select %215, %216, %204 : vector<32x32xi1>, vector<32x32xf32>
    %218 = tpu.iota {dimensions = array<i32: 0>} : vector<32x32xi32>
    %219 = tpu.iota {dimensions = array<i32: 1>} : vector<32x32xi32>
    %cst_70 = arith.constant 0.000000e+00 : f32
    %220 = vector.broadcast %cst_70 : f32 to vector<32x32xf32>
    %c0_i32_71 = arith.constant 0 : i32
    %221 = vector.broadcast %c0_i32_71 : i32 to vector<32x32xi32>
    %222 = arith.cmpi sge, %218, %221 : vector<32x32xi32>
    %c8_i32_72 = arith.constant 8 : i32
    %223 = vector.broadcast %c8_i32_72 : i32 to vector<32x32xi32>
    %224 = arith.cmpi slt, %218, %223 : vector<32x32xi32>
    %225 = arith.andi %222, %224 : vector<32x32xi1>
    %c0_i32_73 = arith.constant 0 : i32
    %226 = vector.broadcast %c0_i32_73 : i32 to vector<32x32xi32>
    %227 = arith.cmpi sge, %219, %226 : vector<32x32xi32>
    %228 = arith.andi %225, %227 : vector<32x32xi1>
    %c8_i32_74 = arith.constant 8 : i32
    %229 = vector.broadcast %c8_i32_74 : i32 to vector<32x32xi32>
    %230 = arith.cmpi slt, %219, %229 : vector<32x32xi32>
    %231 = arith.andi %228, %230 : vector<32x32xi1>
    %cst_75 = arith.constant 1.000000e+00 : f32
    %232 = vector.broadcast %cst_75 : f32 to vector<32x32xf32>
    %233 = arith.select %231, %232, %220 : vector<32x32xi1>, vector<32x32xf32>
    %c8_i32_76 = arith.constant 8 : i32
    %234 = vector.broadcast %c8_i32_76 : i32 to vector<32x32xi32>
    %235 = arith.cmpi sge, %218, %234 : vector<32x32xi32>
    %c16_i32_77 = arith.constant 16 : i32
    %236 = vector.broadcast %c16_i32_77 : i32 to vector<32x32xi32>
    %237 = arith.cmpi slt, %218, %236 : vector<32x32xi32>
    %238 = arith.andi %235, %237 : vector<32x32xi1>
    %c8_i32_78 = arith.constant 8 : i32
    %239 = vector.broadcast %c8_i32_78 : i32 to vector<32x32xi32>
    %240 = arith.cmpi sge, %219, %239 : vector<32x32xi32>
    %241 = arith.andi %238, %240 : vector<32x32xi1>
    %c16_i32_79 = arith.constant 16 : i32
    %242 = vector.broadcast %c16_i32_79 : i32 to vector<32x32xi32>
    %243 = arith.cmpi slt, %219, %242 : vector<32x32xi32>
    %244 = arith.andi %241, %243 : vector<32x32xi1>
    %cst_80 = arith.constant 1.000000e+00 : f32
    %245 = vector.broadcast %cst_80 : f32 to vector<32x32xf32>
    %246 = arith.select %244, %245, %233 : vector<32x32xi1>, vector<32x32xf32>
    %c16_i32_81 = arith.constant 16 : i32
    %247 = vector.broadcast %c16_i32_81 : i32 to vector<32x32xi32>
    %248 = arith.cmpi sge, %218, %247 : vector<32x32xi32>
    %c24_i32_82 = arith.constant 24 : i32
    %249 = vector.broadcast %c24_i32_82 : i32 to vector<32x32xi32>
    %250 = arith.cmpi slt, %218, %249 : vector<32x32xi32>
    %251 = arith.andi %248, %250 : vector<32x32xi1>
    %c16_i32_83 = arith.constant 16 : i32
    %252 = vector.broadcast %c16_i32_83 : i32 to vector<32x32xi32>
    %253 = arith.cmpi sge, %219, %252 : vector<32x32xi32>
    %254 = arith.andi %251, %253 : vector<32x32xi1>
    %c24_i32_84 = arith.constant 24 : i32
    %255 = vector.broadcast %c24_i32_84 : i32 to vector<32x32xi32>
    %256 = arith.cmpi slt, %219, %255 : vector<32x32xi32>
    %257 = arith.andi %254, %256 : vector<32x32xi1>
    %cst_85 = arith.constant 1.000000e+00 : f32
    %258 = vector.broadcast %cst_85 : f32 to vector<32x32xf32>
    %259 = arith.select %257, %258, %246 : vector<32x32xi1>, vector<32x32xf32>
    %c24_i32_86 = arith.constant 24 : i32
    %260 = vector.broadcast %c24_i32_86 : i32 to vector<32x32xi32>
    %261 = arith.cmpi sge, %218, %260 : vector<32x32xi32>
    %c32_i32_87 = arith.constant 32 : i32
    %262 = vector.broadcast %c32_i32_87 : i32 to vector<32x32xi32>
    %263 = arith.cmpi slt, %218, %262 : vector<32x32xi32>
    %264 = arith.andi %261, %263 : vector<32x32xi1>
    %c24_i32_88 = arith.constant 24 : i32
    %265 = vector.broadcast %c24_i32_88 : i32 to vector<32x32xi32>
    %266 = arith.cmpi sge, %219, %265 : vector<32x32xi32>
    %267 = arith.andi %264, %266 : vector<32x32xi1>
    %c32_i32_89 = arith.constant 32 : i32
    %268 = vector.broadcast %c32_i32_89 : i32 to vector<32x32xi32>
    %269 = arith.cmpi slt, %219, %268 : vector<32x32xi32>
    %270 = arith.andi %267, %269 : vector<32x32xi1>
    %cst_90 = arith.constant 1.000000e+00 : f32
    %271 = vector.broadcast %cst_90 : f32 to vector<32x32xf32>
    %272 = arith.select %270, %271, %259 : vector<32x32xi1>, vector<32x32xf32>
    %c0_91 = arith.constant 0 : index
    %c0_92 = arith.constant 0 : index
    %273 = vector.load %arg4[%c0_91, %c0_92] : memref<7x32xf32, #tpu.memory_space<vmem>>, vector<7x32xf32>
    %c0_93 = arith.constant 0 : index
    %c0_94 = arith.constant 0 : index
    %274 = vector.load %arg5[%c0_93, %c0_94] : memref<1x32xf32, #tpu.memory_space<vmem>>, vector<1x32xf32>
    %cst_95 = arith.constant dense<0.000000e+00> : vector<16x32xf32>
    %275 = tpu.matmul %38, %273, %cst_95 {dimension_numbers = #tpu.dot_dimension_numbers<[1], [0], [0], [1], [0, 0, 1, 1], [], []>} : vector<16x7xf32>, vector<7x32xf32>, vector<16x32xf32> -> vector<16x32xf32>
    %276 = vector.broadcast %274 : vector<1x32xf32> to vector<16x32xf32>
    %277 = arith.addf %275, %276 : vector<16x32xf32>
    %c0_96 = arith.constant 0 : index
    %c0_97 = arith.constant 0 : index
    %c0_98 = arith.constant 0 : index
    %278 = vector.load %arg6[%c0_96, %c0_97, %c0_98] : memref<2x1x32xf32, #tpu.memory_space<vmem>>, vector<1x1x32xf32>
    %279 = vector.shape_cast %278 : vector<1x1x32xf32> to vector<1x32xf32>
    %c0_99 = arith.constant 0 : index
    %c0_100 = arith.constant 0 : index
    %c0_101 = arith.constant 0 : index
    %280 = vector.load %arg7[%c0_99, %c0_100, %c0_101] : memref<2x1x32xf32, #tpu.memory_space<vmem>>, vector<1x1x32xf32>
    %281 = vector.shape_cast %280 : vector<1x1x32xf32> to vector<1x32xf32>
    %cst_102 = arith.constant dense<0.000000e+00> : vector<16xf32>
    %282 = vector.multi_reduction <add>, %277, %cst_102 [1] : vector<16x32xf32> to vector<16xf32>
    %283 = vector.shape_cast %282 : vector<16xf32> to vector<16x1xf32>
    %cst_103 = arith.constant 3.200000e+01 : f32
    %284 = vector.broadcast %cst_103 : f32 to vector<16x1xf32>
    %285 = arith.divf %283, %284 : vector<16x1xf32>
    %286 = vector.broadcast %285 : vector<16x1xf32> to vector<16x32xf32>
    %287 = arith.subf %277, %286 : vector<16x32xf32>
    %288 = arith.mulf %287, %287 : vector<16x32xf32>
    %cst_104 = arith.constant dense<0.000000e+00> : vector<16xf32>
    %289 = vector.multi_reduction <add>, %288, %cst_104 [1] : vector<16x32xf32> to vector<16xf32>
    %290 = vector.shape_cast %289 : vector<16xf32> to vector<16x1xf32>
    %cst_105 = arith.constant 3.200000e+01 : f32
    %291 = vector.broadcast %cst_105 : f32 to vector<16x1xf32>
    %292 = arith.divf %290, %291 : vector<16x1xf32>
    %cst_106 = arith.constant 9.99999974E-6 : f32
    %293 = vector.broadcast %cst_106 : f32 to vector<16x1xf32>
    %294 = arith.addf %292, %293 : vector<16x1xf32>
    %295 = math.rsqrt %294 : vector<16x1xf32>
    %296 = vector.broadcast %295 : vector<16x1xf32> to vector<16x32xf32>
    %297 = arith.mulf %287, %296 : vector<16x32xf32>
    %298 = vector.broadcast %279 : vector<1x32xf32> to vector<16x32xf32>
    %299 = arith.mulf %297, %298 : vector<16x32xf32>
    %300 = vector.broadcast %281 : vector<1x32xf32> to vector<16x32xf32>
    %301 = arith.addf %299, %300 : vector<16x32xf32>
    %c0_107 = arith.constant 0 : index
    %c0_108 = arith.constant 0 : index
    %c0_109 = arith.constant 0 : index
    %302 = vector.load %arg8[%c0_107, %c0_108, %c0_109] : memref<2x32x96xbf16, #tpu.memory_space<vmem>>, vector<1x32x96xbf16>
    %303 = vector.shape_cast %302 : vector<1x32x96xbf16> to vector<32x96xbf16>
    %c0_110 = arith.constant 0 : index
    %c0_111 = arith.constant 0 : index
    %c0_112 = arith.constant 0 : index
    %304 = vector.load %arg9[%c0_110, %c0_111, %c0_112] : memref<2x1x96xf32, #tpu.memory_space<vmem>>, vector<1x1x96xf32>
    %305 = vector.shape_cast %304 : vector<1x1x96xf32> to vector<1x96xf32>
    %306 = arith.truncf %301 : vector<16x32xf32> to vector<16x32xbf16>
    %cst_113 = arith.constant dense<0.000000e+00> : vector<16x96xf32>
    %307 = tpu.matmul %306, %303, %cst_113 {dimension_numbers = #tpu.dot_dimension_numbers<[1], [0], [0], [1], [0, 0, 1, 1], [], []>} : vector<16x32xbf16>, vector<32x96xbf16>, vector<16x96xf32> -> vector<16x96xf32>
    %308 = vector.broadcast %305 : vector<1x96xf32> to vector<16x96xf32>
    %309 = arith.addf %307, %308 : vector<16x96xf32>
    %310 = vector.extract_strided_slice %309 {offsets = [0, 0], sizes = [16, 32], strides = [1, 1]} : vector<16x96xf32> to vector<16x32xf32>
    %311 = vector.extract_strided_slice %309 {offsets = [0, 32], sizes = [16, 32], strides = [1, 1]} : vector<16x96xf32> to vector<16x32xf32>
    %312 = vector.extract_strided_slice %309 {offsets = [0, 64], sizes = [16, 32], strides = [1, 1]} : vector<16x96xf32> to vector<16x32xf32>
    %313 = tpu.concatenate %311, %311, %311, %311 in 0 : vector<16x32xf32>, vector<16x32xf32>, vector<16x32xf32>, vector<16x32xf32> -> vector<64x32xf32>
    %314 = arith.mulf %313, %107 : vector<64x32xf32>
    %315 = tpu.concatenate %312, %312, %312, %312 in 0 : vector<16x32xf32>, vector<16x32xf32>, vector<16x32xf32>, vector<16x32xf32> -> vector<64x32xf32>
    %316 = arith.mulf %315, %107 : vector<64x32xf32>
    %cst_114 = arith.constant dense<0.000000e+00> : vector<16x64xf32>
    %317 = tpu.matmul %310, %314, %cst_114 {dimension_numbers = #tpu.dot_dimension_numbers<[1], [1], [0], [0], [0, 0, 1, 0], [], []>} : vector<16x32xf32>, vector<64x32xf32>, vector<16x64xf32> -> vector<16x64xf32>
    %cst_115 = arith.constant 0.353553385 : f32
    %318 = vector.broadcast %cst_115 : f32 to vector<16x64xf32>
    %319 = arith.mulf %317, %318 : vector<16x64xf32>
    %320 = vector.broadcast %45 : vector<1x64xf32> to vector<16x64xf32>
    %321 = arith.addf %319, %320 : vector<16x64xf32>
    %cst_116 = arith.constant dense<0xFF800000> : vector<16xf32>
    %322 = vector.multi_reduction <maximumf>, %321, %cst_116 [1] : vector<16x64xf32> to vector<16xf32>
    %323 = vector.shape_cast %322 : vector<16xf32> to vector<16x1xf32>
    %324 = vector.broadcast %323 : vector<16x1xf32> to vector<16x64xf32>
    %325 = arith.subf %321, %324 : vector<16x64xf32>
    %326 = math.exp %325 : vector<16x64xf32>
    %cst_117 = arith.constant dense<0.000000e+00> : vector<16x64xf32>
    %327 = tpu.matmul %326, %162, %cst_117 {dimension_numbers = #tpu.dot_dimension_numbers<[1], [0], [0], [1], [0, 0, 1, 1], [], []>} : vector<16x64xf32>, vector<64x64xf32>, vector<16x64xf32> -> vector<16x64xf32>
    %328 = tpu.reciprocal %327 {approx = true} : vector<16x64xf32> -> vector<16x64xf32>
    %329 = arith.mulf %326, %328 : vector<16x64xf32>
    %cst_118 = arith.constant dense<0.000000e+00> : vector<16x32xf32>
    %330 = tpu.matmul %329, %316, %cst_118 {dimension_numbers = #tpu.dot_dimension_numbers<[1], [0], [0], [1], [0, 0, 1, 1], [], []>} : vector<16x64xf32>, vector<64x32xf32>, vector<16x32xf32> -> vector<16x32xf32>
    %c0_119 = arith.constant 0 : index
    %c0_120 = arith.constant 0 : index
    %c0_121 = arith.constant 0 : index
    %331 = vector.load %arg10[%c0_119, %c0_120, %c0_121] : memref<2x32x32xbf16, #tpu.memory_space<vmem>>, vector<1x32x32xbf16>
    %332 = vector.shape_cast %331 : vector<1x32x32xbf16> to vector<32x32xbf16>
    %c0_122 = arith.constant 0 : index
    %c0_123 = arith.constant 0 : index
    %c0_124 = arith.constant 0 : index
    %333 = vector.load %arg11[%c0_122, %c0_123, %c0_124] : memref<2x1x32xf32, #tpu.memory_space<vmem>>, vector<1x1x32xf32>
    %334 = vector.shape_cast %333 : vector<1x1x32xf32> to vector<1x32xf32>
    %335 = arith.truncf %330 : vector<16x32xf32> to vector<16x32xbf16>
    %cst_125 = arith.constant dense<0.000000e+00> : vector<16x32xf32>
    %336 = tpu.matmul %335, %332, %cst_125 {dimension_numbers = #tpu.dot_dimension_numbers<[1], [0], [0], [1], [0, 0, 1, 1], [], []>} : vector<16x32xbf16>, vector<32x32xbf16>, vector<16x32xf32> -> vector<16x32xf32>
    %337 = vector.broadcast %334 : vector<1x32xf32> to vector<16x32xf32>
    %338 = arith.addf %336, %337 : vector<16x32xf32>
    %339 = arith.addf %277, %338 : vector<16x32xf32>
    %c0_126 = arith.constant 0 : index
    %c0_127 = arith.constant 0 : index
    %c0_128 = arith.constant 0 : index
    %340 = vector.load %arg12[%c0_126, %c0_127, %c0_128] : memref<2x1x32xf32, #tpu.memory_space<vmem>>, vector<1x1x32xf32>
    %341 = vector.shape_cast %340 : vector<1x1x32xf32> to vector<1x32xf32>
    %c0_129 = arith.constant 0 : index
    %c0_130 = arith.constant 0 : index
    %c0_131 = arith.constant 0 : index
    %342 = vector.load %arg13[%c0_129, %c0_130, %c0_131] : memref<2x1x32xf32, #tpu.memory_space<vmem>>, vector<1x1x32xf32>
    %343 = vector.shape_cast %342 : vector<1x1x32xf32> to vector<1x32xf32>
    %cst_132 = arith.constant dense<0.000000e+00> : vector<16xf32>
    %344 = vector.multi_reduction <add>, %339, %cst_132 [1] : vector<16x32xf32> to vector<16xf32>
    %345 = vector.shape_cast %344 : vector<16xf32> to vector<16x1xf32>
    %cst_133 = arith.constant 3.200000e+01 : f32
    %346 = vector.broadcast %cst_133 : f32 to vector<16x1xf32>
    %347 = arith.divf %345, %346 : vector<16x1xf32>
    %348 = vector.broadcast %347 : vector<16x1xf32> to vector<16x32xf32>
    %349 = arith.subf %339, %348 : vector<16x32xf32>
    %350 = arith.mulf %349, %349 : vector<16x32xf32>
    %cst_134 = arith.constant dense<0.000000e+00> : vector<16xf32>
    %351 = vector.multi_reduction <add>, %350, %cst_134 [1] : vector<16x32xf32> to vector<16xf32>
    %352 = vector.shape_cast %351 : vector<16xf32> to vector<16x1xf32>
    %cst_135 = arith.constant 3.200000e+01 : f32
    %353 = vector.broadcast %cst_135 : f32 to vector<16x1xf32>
    %354 = arith.divf %352, %353 : vector<16x1xf32>
    %cst_136 = arith.constant 9.99999974E-6 : f32
    %355 = vector.broadcast %cst_136 : f32 to vector<16x1xf32>
    %356 = arith.addf %354, %355 : vector<16x1xf32>
    %357 = math.rsqrt %356 : vector<16x1xf32>
    %358 = vector.broadcast %357 : vector<16x1xf32> to vector<16x32xf32>
    %359 = arith.mulf %349, %358 : vector<16x32xf32>
    %360 = vector.broadcast %341 : vector<1x32xf32> to vector<16x32xf32>
    %361 = arith.mulf %359, %360 : vector<16x32xf32>
    %362 = vector.broadcast %343 : vector<1x32xf32> to vector<16x32xf32>
    %363 = arith.addf %361, %362 : vector<16x32xf32>
    %c0_137 = arith.constant 0 : index
    %c0_138 = arith.constant 0 : index
    %c0_139 = arith.constant 0 : index
    %364 = vector.load %arg14[%c0_137, %c0_138, %c0_139] : memref<2x32x64xbf16, #tpu.memory_space<vmem>>, vector<1x32x64xbf16>
    %365 = vector.shape_cast %364 : vector<1x32x64xbf16> to vector<32x64xbf16>
    %c0_140 = arith.constant 0 : index
    %c0_141 = arith.constant 0 : index
    %c0_142 = arith.constant 0 : index
    %366 = vector.load %arg15[%c0_140, %c0_141, %c0_142] : memref<2x1x64xf32, #tpu.memory_space<vmem>>, vector<1x1x64xf32>
    %367 = vector.shape_cast %366 : vector<1x1x64xf32> to vector<1x64xf32>
    %368 = arith.truncf %363 : vector<16x32xf32> to vector<16x32xbf16>
    %cst_143 = arith.constant dense<0.000000e+00> : vector<16x64xf32>
    %369 = tpu.matmul %368, %365, %cst_143 {dimension_numbers = #tpu.dot_dimension_numbers<[1], [0], [0], [1], [0, 0, 1, 1], [], []>} : vector<16x32xbf16>, vector<32x64xbf16>, vector<16x64xf32> -> vector<16x64xf32>
    %370 = vector.broadcast %367 : vector<1x64xf32> to vector<16x64xf32>
    %371 = arith.addf %369, %370 : vector<16x64xf32>
    %cst_144 = arith.constant 5.000000e-01 : f32
    %372 = vector.broadcast %cst_144 : f32 to vector<16x64xf32>
    %373 = arith.mulf %372, %371 : vector<16x64xf32>
    %cst_145 = arith.constant 0.707106769 : f32
    %374 = vector.broadcast %cst_145 : f32 to vector<16x64xf32>
    %375 = arith.mulf %371, %374 : vector<16x64xf32>
    %376 = math.erf %375 : vector<16x64xf32>
    %cst_146 = arith.constant 1.000000e+00 : f32
    %377 = vector.broadcast %cst_146 : f32 to vector<16x64xf32>
    %378 = arith.addf %377, %376 : vector<16x64xf32>
    %379 = arith.mulf %373, %378 : vector<16x64xf32>
    %c0_147 = arith.constant 0 : index
    %c0_148 = arith.constant 0 : index
    %c0_149 = arith.constant 0 : index
    %380 = vector.load %arg16[%c0_147, %c0_148, %c0_149] : memref<2x64x32xbf16, #tpu.memory_space<vmem>>, vector<1x64x32xbf16>
    %381 = vector.shape_cast %380 : vector<1x64x32xbf16> to vector<64x32xbf16>
    %c0_150 = arith.constant 0 : index
    %c0_151 = arith.constant 0 : index
    %c0_152 = arith.constant 0 : index
    %382 = vector.load %arg17[%c0_150, %c0_151, %c0_152] : memref<2x1x32xf32, #tpu.memory_space<vmem>>, vector<1x1x32xf32>
    %383 = vector.shape_cast %382 : vector<1x1x32xf32> to vector<1x32xf32>
    %384 = arith.truncf %379 : vector<16x64xf32> to vector<16x64xbf16>
    %cst_153 = arith.constant dense<0.000000e+00> : vector<16x32xf32>
    %385 = tpu.matmul %384, %381, %cst_153 {dimension_numbers = #tpu.dot_dimension_numbers<[1], [0], [0], [1], [0, 0, 1, 1], [], []>} : vector<16x64xbf16>, vector<64x32xbf16>, vector<16x32xf32> -> vector<16x32xf32>
    %386 = vector.broadcast %383 : vector<1x32xf32> to vector<16x32xf32>
    %387 = arith.addf %385, %386 : vector<16x32xf32>
    %388 = arith.addf %339, %387 : vector<16x32xf32>
    %c1 = arith.constant 1 : index
    %c0_154 = arith.constant 0 : index
    %c0_155 = arith.constant 0 : index
    %389 = vector.load %arg6[%c1, %c0_154, %c0_155] : memref<2x1x32xf32, #tpu.memory_space<vmem>>, vector<1x1x32xf32>
    %390 = vector.shape_cast %389 : vector<1x1x32xf32> to vector<1x32xf32>
    %c1_156 = arith.constant 1 : index
    %c0_157 = arith.constant 0 : index
    %c0_158 = arith.constant 0 : index
    %391 = vector.load %arg7[%c1_156, %c0_157, %c0_158] : memref<2x1x32xf32, #tpu.memory_space<vmem>>, vector<1x1x32xf32>
    %392 = vector.shape_cast %391 : vector<1x1x32xf32> to vector<1x32xf32>
    %cst_159 = arith.constant dense<0.000000e+00> : vector<16xf32>
    %393 = vector.multi_reduction <add>, %388, %cst_159 [1] : vector<16x32xf32> to vector<16xf32>
    %394 = vector.shape_cast %393 : vector<16xf32> to vector<16x1xf32>
    %cst_160 = arith.constant 3.200000e+01 : f32
    %395 = vector.broadcast %cst_160 : f32 to vector<16x1xf32>
    %396 = arith.divf %394, %395 : vector<16x1xf32>
    %397 = vector.broadcast %396 : vector<16x1xf32> to vector<16x32xf32>
    %398 = arith.subf %388, %397 : vector<16x32xf32>
    %399 = arith.mulf %398, %398 : vector<16x32xf32>
    %cst_161 = arith.constant dense<0.000000e+00> : vector<16xf32>
    %400 = vector.multi_reduction <add>, %399, %cst_161 [1] : vector<16x32xf32> to vector<16xf32>
    %401 = vector.shape_cast %400 : vector<16xf32> to vector<16x1xf32>
    %cst_162 = arith.constant 3.200000e+01 : f32
    %402 = vector.broadcast %cst_162 : f32 to vector<16x1xf32>
    %403 = arith.divf %401, %402 : vector<16x1xf32>
    %cst_163 = arith.constant 9.99999974E-6 : f32
    %404 = vector.broadcast %cst_163 : f32 to vector<16x1xf32>
    %405 = arith.addf %403, %404 : vector<16x1xf32>
    %406 = math.rsqrt %405 : vector<16x1xf32>
    %407 = vector.broadcast %406 : vector<16x1xf32> to vector<16x32xf32>
    %408 = arith.mulf %398, %407 : vector<16x32xf32>
    %409 = vector.broadcast %390 : vector<1x32xf32> to vector<16x32xf32>
    %410 = arith.mulf %408, %409 : vector<16x32xf32>
    %411 = vector.broadcast %392 : vector<1x32xf32> to vector<16x32xf32>
    %412 = arith.addf %410, %411 : vector<16x32xf32>
    %c1_164 = arith.constant 1 : index
    %c0_165 = arith.constant 0 : index
    %c0_166 = arith.constant 0 : index
    %413 = vector.load %arg8[%c1_164, %c0_165, %c0_166] : memref<2x32x96xbf16, #tpu.memory_space<vmem>>, vector<1x32x96xbf16>
    %414 = vector.shape_cast %413 : vector<1x32x96xbf16> to vector<32x96xbf16>
    %c1_167 = arith.constant 1 : index
    %c0_168 = arith.constant 0 : index
    %c0_169 = arith.constant 0 : index
    %415 = vector.load %arg9[%c1_167, %c0_168, %c0_169] : memref<2x1x96xf32, #tpu.memory_space<vmem>>, vector<1x1x96xf32>
    %416 = vector.shape_cast %415 : vector<1x1x96xf32> to vector<1x96xf32>
    %417 = arith.truncf %412 : vector<16x32xf32> to vector<16x32xbf16>
    %cst_170 = arith.constant dense<0.000000e+00> : vector<16x96xf32>
    %418 = tpu.matmul %417, %414, %cst_170 {dimension_numbers = #tpu.dot_dimension_numbers<[1], [0], [0], [1], [0, 0, 1, 1], [], []>} : vector<16x32xbf16>, vector<32x96xbf16>, vector<16x96xf32> -> vector<16x96xf32>
    %419 = vector.broadcast %416 : vector<1x96xf32> to vector<16x96xf32>
    %420 = arith.addf %418, %419 : vector<16x96xf32>
    %421 = vector.extract_strided_slice %420 {offsets = [0, 0], sizes = [16, 32], strides = [1, 1]} : vector<16x96xf32> to vector<16x32xf32>
    %422 = vector.extract_strided_slice %420 {offsets = [0, 32], sizes = [16, 32], strides = [1, 1]} : vector<16x96xf32> to vector<16x32xf32>
    %423 = vector.extract_strided_slice %420 {offsets = [0, 64], sizes = [16, 32], strides = [1, 1]} : vector<16x96xf32> to vector<16x32xf32>
    %424 = tpu.concatenate %422, %422, %422, %422 in 0 : vector<16x32xf32>, vector<16x32xf32>, vector<16x32xf32>, vector<16x32xf32> -> vector<64x32xf32>
    %425 = arith.mulf %424, %107 : vector<64x32xf32>
    %426 = tpu.concatenate %423, %423, %423, %423 in 0 : vector<16x32xf32>, vector<16x32xf32>, vector<16x32xf32>, vector<16x32xf32> -> vector<64x32xf32>
    %427 = arith.mulf %426, %107 : vector<64x32xf32>
    %cst_171 = arith.constant dense<0.000000e+00> : vector<16x64xf32>
    %428 = tpu.matmul %421, %425, %cst_171 {dimension_numbers = #tpu.dot_dimension_numbers<[1], [1], [0], [0], [0, 0, 1, 0], [], []>} : vector<16x32xf32>, vector<64x32xf32>, vector<16x64xf32> -> vector<16x64xf32>
    %cst_172 = arith.constant 0.353553385 : f32
    %429 = vector.broadcast %cst_172 : f32 to vector<16x64xf32>
    %430 = arith.mulf %428, %429 : vector<16x64xf32>
    %431 = vector.broadcast %45 : vector<1x64xf32> to vector<16x64xf32>
    %432 = arith.addf %430, %431 : vector<16x64xf32>
    %cst_173 = arith.constant dense<0xFF800000> : vector<16xf32>
    %433 = vector.multi_reduction <maximumf>, %432, %cst_173 [1] : vector<16x64xf32> to vector<16xf32>
    %434 = vector.shape_cast %433 : vector<16xf32> to vector<16x1xf32>
    %435 = vector.broadcast %434 : vector<16x1xf32> to vector<16x64xf32>
    %436 = arith.subf %432, %435 : vector<16x64xf32>
    %437 = math.exp %436 : vector<16x64xf32>
    %cst_174 = arith.constant dense<0.000000e+00> : vector<16x64xf32>
    %438 = tpu.matmul %437, %162, %cst_174 {dimension_numbers = #tpu.dot_dimension_numbers<[1], [0], [0], [1], [0, 0, 1, 1], [], []>} : vector<16x64xf32>, vector<64x64xf32>, vector<16x64xf32> -> vector<16x64xf32>
    %439 = tpu.reciprocal %438 {approx = true} : vector<16x64xf32> -> vector<16x64xf32>
    %440 = arith.mulf %437, %439 : vector<16x64xf32>
    %cst_175 = arith.constant dense<0.000000e+00> : vector<16x32xf32>
    %441 = tpu.matmul %440, %427, %cst_175 {dimension_numbers = #tpu.dot_dimension_numbers<[1], [0], [0], [1], [0, 0, 1, 1], [], []>} : vector<16x64xf32>, vector<64x32xf32>, vector<16x32xf32> -> vector<16x32xf32>
    %c1_176 = arith.constant 1 : index
    %c0_177 = arith.constant 0 : index
    %c0_178 = arith.constant 0 : index
    %442 = vector.load %arg10[%c1_176, %c0_177, %c0_178] : memref<2x32x32xbf16, #tpu.memory_space<vmem>>, vector<1x32x32xbf16>
    %443 = vector.shape_cast %442 : vector<1x32x32xbf16> to vector<32x32xbf16>
    %c1_179 = arith.constant 1 : index
    %c0_180 = arith.constant 0 : index
    %c0_181 = arith.constant 0 : index
    %444 = vector.load %arg11[%c1_179, %c0_180, %c0_181] : memref<2x1x32xf32, #tpu.memory_space<vmem>>, vector<1x1x32xf32>
    %445 = vector.shape_cast %444 : vector<1x1x32xf32> to vector<1x32xf32>
    %446 = arith.truncf %441 : vector<16x32xf32> to vector<16x32xbf16>
    %cst_182 = arith.constant dense<0.000000e+00> : vector<16x32xf32>
    %447 = tpu.matmul %446, %443, %cst_182 {dimension_numbers = #tpu.dot_dimension_numbers<[1], [0], [0], [1], [0, 0, 1, 1], [], []>} : vector<16x32xbf16>, vector<32x32xbf16>, vector<16x32xf32> -> vector<16x32xf32>
    %448 = vector.broadcast %445 : vector<1x32xf32> to vector<16x32xf32>
    %449 = arith.addf %447, %448 : vector<16x32xf32>
    %450 = arith.addf %388, %449 : vector<16x32xf32>
    %c1_183 = arith.constant 1 : index
    %c0_184 = arith.constant 0 : index
    %c0_185 = arith.constant 0 : index
    %451 = vector.load %arg12[%c1_183, %c0_184, %c0_185] : memref<2x1x32xf32, #tpu.memory_space<vmem>>, vector<1x1x32xf32>
    %452 = vector.shape_cast %451 : vector<1x1x32xf32> to vector<1x32xf32>
    %c1_186 = arith.constant 1 : index
    %c0_187 = arith.constant 0 : index
    %c0_188 = arith.constant 0 : index
    %453 = vector.load %arg13[%c1_186, %c0_187, %c0_188] : memref<2x1x32xf32, #tpu.memory_space<vmem>>, vector<1x1x32xf32>
    %454 = vector.shape_cast %453 : vector<1x1x32xf32> to vector<1x32xf32>
    %cst_189 = arith.constant dense<0.000000e+00> : vector<16xf32>
    %455 = vector.multi_reduction <add>, %450, %cst_189 [1] : vector<16x32xf32> to vector<16xf32>
    %456 = vector.shape_cast %455 : vector<16xf32> to vector<16x1xf32>
    %cst_190 = arith.constant 3.200000e+01 : f32
    %457 = vector.broadcast %cst_190 : f32 to vector<16x1xf32>
    %458 = arith.divf %456, %457 : vector<16x1xf32>
    %459 = vector.broadcast %458 : vector<16x1xf32> to vector<16x32xf32>
    %460 = arith.subf %450, %459 : vector<16x32xf32>
    %461 = arith.mulf %460, %460 : vector<16x32xf32>
    %cst_191 = arith.constant dense<0.000000e+00> : vector<16xf32>
    %462 = vector.multi_reduction <add>, %461, %cst_191 [1] : vector<16x32xf32> to vector<16xf32>
    %463 = vector.shape_cast %462 : vector<16xf32> to vector<16x1xf32>
    %cst_192 = arith.constant 3.200000e+01 : f32
    %464 = vector.broadcast %cst_192 : f32 to vector<16x1xf32>
    %465 = arith.divf %463, %464 : vector<16x1xf32>
    %cst_193 = arith.constant 9.99999974E-6 : f32
    %466 = vector.broadcast %cst_193 : f32 to vector<16x1xf32>
    %467 = arith.addf %465, %466 : vector<16x1xf32>
    %468 = math.rsqrt %467 : vector<16x1xf32>
    %469 = vector.broadcast %468 : vector<16x1xf32> to vector<16x32xf32>
    %470 = arith.mulf %460, %469 : vector<16x32xf32>
    %471 = vector.broadcast %452 : vector<1x32xf32> to vector<16x32xf32>
    %472 = arith.mulf %470, %471 : vector<16x32xf32>
    %473 = vector.broadcast %454 : vector<1x32xf32> to vector<16x32xf32>
    %474 = arith.addf %472, %473 : vector<16x32xf32>
    %c1_194 = arith.constant 1 : index
    %c0_195 = arith.constant 0 : index
    %c0_196 = arith.constant 0 : index
    %475 = vector.load %arg14[%c1_194, %c0_195, %c0_196] : memref<2x32x64xbf16, #tpu.memory_space<vmem>>, vector<1x32x64xbf16>
    %476 = vector.shape_cast %475 : vector<1x32x64xbf16> to vector<32x64xbf16>
    %c1_197 = arith.constant 1 : index
    %c0_198 = arith.constant 0 : index
    %c0_199 = arith.constant 0 : index
    %477 = vector.load %arg15[%c1_197, %c0_198, %c0_199] : memref<2x1x64xf32, #tpu.memory_space<vmem>>, vector<1x1x64xf32>
    %478 = vector.shape_cast %477 : vector<1x1x64xf32> to vector<1x64xf32>
    %479 = arith.truncf %474 : vector<16x32xf32> to vector<16x32xbf16>
    %cst_200 = arith.constant dense<0.000000e+00> : vector<16x64xf32>
    %480 = tpu.matmul %479, %476, %cst_200 {dimension_numbers = #tpu.dot_dimension_numbers<[1], [0], [0], [1], [0, 0, 1, 1], [], []>} : vector<16x32xbf16>, vector<32x64xbf16>, vector<16x64xf32> -> vector<16x64xf32>
    %481 = vector.broadcast %478 : vector<1x64xf32> to vector<16x64xf32>
    %482 = arith.addf %480, %481 : vector<16x64xf32>
    %cst_201 = arith.constant 5.000000e-01 : f32
    %483 = vector.broadcast %cst_201 : f32 to vector<16x64xf32>
    %484 = arith.mulf %483, %482 : vector<16x64xf32>
    %cst_202 = arith.constant 0.707106769 : f32
    %485 = vector.broadcast %cst_202 : f32 to vector<16x64xf32>
    %486 = arith.mulf %482, %485 : vector<16x64xf32>
    %487 = math.erf %486 : vector<16x64xf32>
    %cst_203 = arith.constant 1.000000e+00 : f32
    %488 = vector.broadcast %cst_203 : f32 to vector<16x64xf32>
    %489 = arith.addf %488, %487 : vector<16x64xf32>
    %490 = arith.mulf %484, %489 : vector<16x64xf32>
    %c1_204 = arith.constant 1 : index
    %c0_205 = arith.constant 0 : index
    %c0_206 = arith.constant 0 : index
    %491 = vector.load %arg16[%c1_204, %c0_205, %c0_206] : memref<2x64x32xbf16, #tpu.memory_space<vmem>>, vector<1x64x32xbf16>
    %492 = vector.shape_cast %491 : vector<1x64x32xbf16> to vector<64x32xbf16>
    %c1_207 = arith.constant 1 : index
    %c0_208 = arith.constant 0 : index
    %c0_209 = arith.constant 0 : index
    %493 = vector.load %arg17[%c1_207, %c0_208, %c0_209] : memref<2x1x32xf32, #tpu.memory_space<vmem>>, vector<1x1x32xf32>
    %494 = vector.shape_cast %493 : vector<1x1x32xf32> to vector<1x32xf32>
    %495 = arith.truncf %490 : vector<16x64xf32> to vector<16x64xbf16>
    %cst_210 = arith.constant dense<0.000000e+00> : vector<16x32xf32>
    %496 = tpu.matmul %495, %492, %cst_210 {dimension_numbers = #tpu.dot_dimension_numbers<[1], [0], [0], [1], [0, 0, 1, 1], [], []>} : vector<16x64xbf16>, vector<64x32xbf16>, vector<16x32xf32> -> vector<16x32xf32>
    %497 = vector.broadcast %494 : vector<1x32xf32> to vector<16x32xf32>
    %498 = arith.addf %496, %497 : vector<16x32xf32>
    %499 = arith.addf %450, %498 : vector<16x32xf32>
    %c0_211 = arith.constant 0 : index
    %c0_212 = arith.constant 0 : index
    %500 = vector.load %arg18[%c0_211, %c0_212] : memref<1x32xf32, #tpu.memory_space<vmem>>, vector<1x32xf32>
    %c0_213 = arith.constant 0 : index
    %c0_214 = arith.constant 0 : index
    %501 = vector.load %arg19[%c0_213, %c0_214] : memref<1x32xf32, #tpu.memory_space<vmem>>, vector<1x32xf32>
    %cst_215 = arith.constant dense<0.000000e+00> : vector<16xf32>
    %502 = vector.multi_reduction <add>, %499, %cst_215 [1] : vector<16x32xf32> to vector<16xf32>
    %503 = vector.shape_cast %502 : vector<16xf32> to vector<16x1xf32>
    %cst_216 = arith.constant 3.200000e+01 : f32
    %504 = vector.broadcast %cst_216 : f32 to vector<16x1xf32>
    %505 = arith.divf %503, %504 : vector<16x1xf32>
    %506 = vector.broadcast %505 : vector<16x1xf32> to vector<16x32xf32>
    %507 = arith.subf %499, %506 : vector<16x32xf32>
    %508 = arith.mulf %507, %507 : vector<16x32xf32>
    %cst_217 = arith.constant dense<0.000000e+00> : vector<16xf32>
    %509 = vector.multi_reduction <add>, %508, %cst_217 [1] : vector<16x32xf32> to vector<16xf32>
    %510 = vector.shape_cast %509 : vector<16xf32> to vector<16x1xf32>
    %cst_218 = arith.constant 3.200000e+01 : f32
    %511 = vector.broadcast %cst_218 : f32 to vector<16x1xf32>
    %512 = arith.divf %510, %511 : vector<16x1xf32>
    %cst_219 = arith.constant 9.99999974E-6 : f32
    %513 = vector.broadcast %cst_219 : f32 to vector<16x1xf32>
    %514 = arith.addf %512, %513 : vector<16x1xf32>
    %515 = math.rsqrt %514 : vector<16x1xf32>
    %516 = vector.broadcast %515 : vector<16x1xf32> to vector<16x32xf32>
    %517 = arith.mulf %507, %516 : vector<16x32xf32>
    %518 = vector.broadcast %500 : vector<1x32xf32> to vector<16x32xf32>
    %519 = arith.mulf %517, %518 : vector<16x32xf32>
    %520 = vector.broadcast %501 : vector<1x32xf32> to vector<16x32xf32>
    %521 = arith.addf %519, %520 : vector<16x32xf32>
    %c0_220 = arith.constant 0 : index
    %c0_221 = arith.constant 0 : index
    %522 = vector.load %arg32[%c0_220, %c0_221] : memref<32x128xbf16, #tpu.memory_space<vmem>>, vector<32x128xbf16>
    %c0_222 = arith.constant 0 : index
    %c0_223 = arith.constant 0 : index
    %523 = vector.load %arg33[%c0_222, %c0_223] : memref<1x128xf32, #tpu.memory_space<vmem>>, vector<1x128xf32>
    %524 = arith.truncf %521 : vector<16x32xf32> to vector<16x32xbf16>
    %cst_224 = arith.constant dense<0.000000e+00> : vector<16x128xf32>
    %525 = tpu.matmul %524, %522, %cst_224 {dimension_numbers = #tpu.dot_dimension_numbers<[1], [0], [0], [1], [0, 0, 1, 1], [], []>} : vector<16x32xbf16>, vector<32x128xbf16>, vector<16x128xf32> -> vector<16x128xf32>
    %526 = vector.broadcast %523 : vector<1x128xf32> to vector<16x128xf32>
    %527 = arith.addf %525, %526 : vector<16x128xf32>
    %c0_225 = arith.constant 0 : index
    %c0_226 = arith.constant 0 : index
    %c0_227 = arith.constant 0 : index
    %528 = vector.load %arg3[%c0_225, %c0_226, %c0_227] : memref<1x8x2xf32, #tpu.memory_space<vmem>>, vector<1x8x2xf32>
    %529 = vector.shape_cast %528 : vector<1x8x2xf32> to vector<8x2xf32>
    %c0_228 = arith.constant 0 : index
    %c0_229 = arith.constant 0 : index
    %530 = vector.load %arg20[%c0_228, %c0_229] : memref<2x32xf32, #tpu.memory_space<vmem>>, vector<2x32xf32>
    %c0_230 = arith.constant 0 : index
    %c0_231 = arith.constant 0 : index
    %531 = vector.load %arg21[%c0_230, %c0_231] : memref<1x32xf32, #tpu.memory_space<vmem>>, vector<1x32xf32>
    %cst_232 = arith.constant dense<0.000000e+00> : vector<8x32xf32>
    %532 = tpu.matmul %529, %530, %cst_232 {dimension_numbers = #tpu.dot_dimension_numbers<[1], [0], [0], [1], [0, 0, 1, 1], [], []>} : vector<8x2xf32>, vector<2x32xf32>, vector<8x32xf32> -> vector<8x32xf32>
    %533 = vector.broadcast %531 : vector<1x32xf32> to vector<8x32xf32>
    %534 = arith.addf %532, %533 : vector<8x32xf32>
    %c0_233 = arith.constant 0 : index
    %c0_234 = arith.constant 0 : index
    %c0_235 = arith.constant 0 : index
    %535 = vector.load %arg22[%c0_233, %c0_234, %c0_235] : memref<2x1x32xf32, #tpu.memory_space<vmem>>, vector<1x1x32xf32>
    %536 = vector.shape_cast %535 : vector<1x1x32xf32> to vector<1x32xf32>
    %c0_236 = arith.constant 0 : index
    %c0_237 = arith.constant 0 : index
    %c0_238 = arith.constant 0 : index
    %537 = vector.load %arg23[%c0_236, %c0_237, %c0_238] : memref<2x1x32xf32, #tpu.memory_space<vmem>>, vector<1x1x32xf32>
    %538 = vector.shape_cast %537 : vector<1x1x32xf32> to vector<1x32xf32>
    %cst_239 = arith.constant dense<0.000000e+00> : vector<8xf32>
    %539 = vector.multi_reduction <add>, %534, %cst_239 [1] : vector<8x32xf32> to vector<8xf32>
    %540 = vector.shape_cast %539 : vector<8xf32> to vector<8x1xf32>
    %cst_240 = arith.constant 3.200000e+01 : f32
    %541 = vector.broadcast %cst_240 : f32 to vector<8x1xf32>
    %542 = arith.divf %540, %541 : vector<8x1xf32>
    %543 = vector.broadcast %542 : vector<8x1xf32> to vector<8x32xf32>
    %544 = arith.subf %534, %543 : vector<8x32xf32>
    %545 = arith.mulf %544, %544 : vector<8x32xf32>
    %cst_241 = arith.constant dense<0.000000e+00> : vector<8xf32>
    %546 = vector.multi_reduction <add>, %545, %cst_241 [1] : vector<8x32xf32> to vector<8xf32>
    %547 = vector.shape_cast %546 : vector<8xf32> to vector<8x1xf32>
    %cst_242 = arith.constant 3.200000e+01 : f32
    %548 = vector.broadcast %cst_242 : f32 to vector<8x1xf32>
    %549 = arith.divf %547, %548 : vector<8x1xf32>
    %cst_243 = arith.constant 9.99999974E-6 : f32
    %550 = vector.broadcast %cst_243 : f32 to vector<8x1xf32>
    %551 = arith.addf %549, %550 : vector<8x1xf32>
    %552 = math.rsqrt %551 : vector<8x1xf32>
    %553 = vector.broadcast %552 : vector<8x1xf32> to vector<8x32xf32>
    %554 = arith.mulf %544, %553 : vector<8x32xf32>
    %555 = vector.broadcast %536 : vector<1x32xf32> to vector<8x32xf32>
    %556 = arith.mulf %554, %555 : vector<8x32xf32>
    %557 = vector.broadcast %538 : vector<1x32xf32> to vector<8x32xf32>
    %558 = arith.addf %556, %557 : vector<8x32xf32>
    %c0_244 = arith.constant 0 : index
    %c0_245 = arith.constant 0 : index
    %c0_246 = arith.constant 0 : index
    %559 = vector.load %arg24[%c0_244, %c0_245, %c0_246] : memref<2x32x96xbf16, #tpu.memory_space<vmem>>, vector<1x32x96xbf16>
    %560 = vector.shape_cast %559 : vector<1x32x96xbf16> to vector<32x96xbf16>
    %c0_247 = arith.constant 0 : index
    %c0_248 = arith.constant 0 : index
    %c0_249 = arith.constant 0 : index
    %561 = vector.load %arg25[%c0_247, %c0_248, %c0_249] : memref<2x1x96xf32, #tpu.memory_space<vmem>>, vector<1x1x96xf32>
    %562 = vector.shape_cast %561 : vector<1x1x96xf32> to vector<1x96xf32>
    %563 = arith.truncf %558 : vector<8x32xf32> to vector<8x32xbf16>
    %cst_250 = arith.constant dense<0.000000e+00> : vector<8x96xf32>
    %564 = tpu.matmul %563, %560, %cst_250 {dimension_numbers = #tpu.dot_dimension_numbers<[1], [0], [0], [1], [0, 0, 1, 1], [], []>} : vector<8x32xbf16>, vector<32x96xbf16>, vector<8x96xf32> -> vector<8x96xf32>
    %565 = vector.broadcast %562 : vector<1x96xf32> to vector<8x96xf32>
    %566 = arith.addf %564, %565 : vector<8x96xf32>
    %567 = vector.extract_strided_slice %566 {offsets = [0, 0], sizes = [8, 32], strides = [1, 1]} : vector<8x96xf32> to vector<8x32xf32>
    %568 = vector.extract_strided_slice %566 {offsets = [0, 32], sizes = [8, 32], strides = [1, 1]} : vector<8x96xf32> to vector<8x32xf32>
    %569 = vector.extract_strided_slice %566 {offsets = [0, 64], sizes = [8, 32], strides = [1, 1]} : vector<8x96xf32> to vector<8x32xf32>
    %570 = tpu.concatenate %568, %568, %568, %568 in 0 : vector<8x32xf32>, vector<8x32xf32>, vector<8x32xf32>, vector<8x32xf32> -> vector<32x32xf32>
    %571 = arith.mulf %570, %217 : vector<32x32xf32>
    %572 = tpu.concatenate %569, %569, %569, %569 in 0 : vector<8x32xf32>, vector<8x32xf32>, vector<8x32xf32>, vector<8x32xf32> -> vector<32x32xf32>
    %573 = arith.mulf %572, %217 : vector<32x32xf32>
    %cst_251 = arith.constant dense<0.000000e+00> : vector<8x32xf32>
    %574 = tpu.matmul %567, %571, %cst_251 {dimension_numbers = #tpu.dot_dimension_numbers<[1], [1], [0], [0], [0, 0, 1, 0], [], []>} : vector<8x32xf32>, vector<32x32xf32>, vector<8x32xf32> -> vector<8x32xf32>
    %cst_252 = arith.constant 0.353553385 : f32
    %575 = vector.broadcast %cst_252 : f32 to vector<8x32xf32>
    %576 = arith.mulf %574, %575 : vector<8x32xf32>
    %577 = arith.addf %576, %52 : vector<8x32xf32>
    %cst_253 = arith.constant dense<0xFF800000> : vector<8xf32>
    %578 = vector.multi_reduction <maximumf>, %577, %cst_253 [1] : vector<8x32xf32> to vector<8xf32>
    %579 = vector.shape_cast %578 : vector<8xf32> to vector<8x1xf32>
    %580 = vector.broadcast %579 : vector<8x1xf32> to vector<8x32xf32>
    %581 = arith.subf %577, %580 : vector<8x32xf32>
    %582 = math.exp %581 : vector<8x32xf32>
    %cst_254 = arith.constant dense<0.000000e+00> : vector<8x32xf32>
    %583 = tpu.matmul %582, %272, %cst_254 {dimension_numbers = #tpu.dot_dimension_numbers<[1], [0], [0], [1], [0, 0, 1, 1], [], []>} : vector<8x32xf32>, vector<32x32xf32>, vector<8x32xf32> -> vector<8x32xf32>
    %584 = tpu.reciprocal %583 {approx = true} : vector<8x32xf32> -> vector<8x32xf32>
    %585 = arith.mulf %582, %584 : vector<8x32xf32>
    %cst_255 = arith.constant dense<0.000000e+00> : vector<8x32xf32>
    %586 = tpu.matmul %585, %573, %cst_255 {dimension_numbers = #tpu.dot_dimension_numbers<[1], [0], [0], [1], [0, 0, 1, 1], [], []>} : vector<8x32xf32>, vector<32x32xf32>, vector<8x32xf32> -> vector<8x32xf32>
    %c0_256 = arith.constant 0 : index
    %c0_257 = arith.constant 0 : index
    %c0_258 = arith.constant 0 : index
    %587 = vector.load %arg26[%c0_256, %c0_257, %c0_258] : memref<2x32x32xbf16, #tpu.memory_space<vmem>>, vector<1x32x32xbf16>
    %588 = vector.shape_cast %587 : vector<1x32x32xbf16> to vector<32x32xbf16>
    %c0_259 = arith.constant 0 : index
    %c0_260 = arith.constant 0 : index
    %c0_261 = arith.constant 0 : index
    %589 = vector.load %arg27[%c0_259, %c0_260, %c0_261] : memref<2x1x32xf32, #tpu.memory_space<vmem>>, vector<1x1x32xf32>
    %590 = vector.shape_cast %589 : vector<1x1x32xf32> to vector<1x32xf32>
    %591 = arith.truncf %586 : vector<8x32xf32> to vector<8x32xbf16>
    %cst_262 = arith.constant dense<0.000000e+00> : vector<8x32xf32>
    %592 = tpu.matmul %591, %588, %cst_262 {dimension_numbers = #tpu.dot_dimension_numbers<[1], [0], [0], [1], [0, 0, 1, 1], [], []>} : vector<8x32xbf16>, vector<32x32xbf16>, vector<8x32xf32> -> vector<8x32xf32>
    %593 = vector.broadcast %590 : vector<1x32xf32> to vector<8x32xf32>
    %594 = arith.addf %592, %593 : vector<8x32xf32>
    %595 = arith.addf %534, %594 : vector<8x32xf32>
    %c0_263 = arith.constant 0 : index
    %c0_264 = arith.constant 0 : index
    %c0_265 = arith.constant 0 : index
    %596 = vector.load %arg28[%c0_263, %c0_264, %c0_265] : memref<2x1x32xf32, #tpu.memory_space<vmem>>, vector<1x1x32xf32>
    %597 = vector.shape_cast %596 : vector<1x1x32xf32> to vector<1x32xf32>
    %c0_266 = arith.constant 0 : index
    %c0_267 = arith.constant 0 : index
    %c0_268 = arith.constant 0 : index
    %598 = vector.load %arg29[%c0_266, %c0_267, %c0_268] : memref<2x1x32xf32, #tpu.memory_space<vmem>>, vector<1x1x32xf32>
    %599 = vector.shape_cast %598 : vector<1x1x32xf32> to vector<1x32xf32>
    %cst_269 = arith.constant dense<0.000000e+00> : vector<8xf32>
    %600 = vector.multi_reduction <add>, %595, %cst_269 [1] : vector<8x32xf32> to vector<8xf32>
    %601 = vector.shape_cast %600 : vector<8xf32> to vector<8x1xf32>
    %cst_270 = arith.constant 3.200000e+01 : f32
    %602 = vector.broadcast %cst_270 : f32 to vector<8x1xf32>
    %603 = arith.divf %601, %602 : vector<8x1xf32>
    %604 = vector.broadcast %603 : vector<8x1xf32> to vector<8x32xf32>
    %605 = arith.subf %595, %604 : vector<8x32xf32>
    %606 = arith.mulf %605, %605 : vector<8x32xf32>
    %cst_271 = arith.constant dense<0.000000e+00> : vector<8xf32>
    %607 = vector.multi_reduction <add>, %606, %cst_271 [1] : vector<8x32xf32> to vector<8xf32>
    %608 = vector.shape_cast %607 : vector<8xf32> to vector<8x1xf32>
    %cst_272 = arith.constant 3.200000e+01 : f32
    %609 = vector.broadcast %cst_272 : f32 to vector<8x1xf32>
    %610 = arith.divf %608, %609 : vector<8x1xf32>
    %cst_273 = arith.constant 9.99999974E-6 : f32
    %611 = vector.broadcast %cst_273 : f32 to vector<8x1xf32>
    %612 = arith.addf %610, %611 : vector<8x1xf32>
    %613 = math.rsqrt %612 : vector<8x1xf32>
    %614 = vector.broadcast %613 : vector<8x1xf32> to vector<8x32xf32>
    %615 = arith.mulf %605, %614 : vector<8x32xf32>
    %616 = vector.broadcast %597 : vector<1x32xf32> to vector<8x32xf32>
    %617 = arith.mulf %615, %616 : vector<8x32xf32>
    %618 = vector.broadcast %599 : vector<1x32xf32> to vector<8x32xf32>
    %619 = arith.addf %617, %618 : vector<8x32xf32>
    %c0_274 = arith.constant 0 : index
    %c0_275 = arith.constant 0 : index
    %c0_276 = arith.constant 0 : index
    %620 = vector.load %arg30[%c0_274, %c0_275, %c0_276] : memref<2x32x32xbf16, #tpu.memory_space<vmem>>, vector<1x32x32xbf16>
    %621 = vector.shape_cast %620 : vector<1x32x32xbf16> to vector<32x32xbf16>
    %c0_277 = arith.constant 0 : index
    %c0_278 = arith.constant 0 : index
    %c0_279 = arith.constant 0 : index
    %622 = vector.load %arg31[%c0_277, %c0_278, %c0_279] : memref<2x1x32xf32, #tpu.memory_space<vmem>>, vector<1x1x32xf32>
    %623 = vector.shape_cast %622 : vector<1x1x32xf32> to vector<1x32xf32>
    %624 = arith.truncf %619 : vector<8x32xf32> to vector<8x32xbf16>
    %cst_280 = arith.constant dense<0.000000e+00> : vector<8x32xf32>
    %625 = tpu.matmul %624, %621, %cst_280 {dimension_numbers = #tpu.dot_dimension_numbers<[1], [0], [0], [1], [0, 0, 1, 1], [], []>} : vector<8x32xbf16>, vector<32x32xbf16>, vector<8x32xf32> -> vector<8x32xf32>
    %626 = vector.broadcast %623 : vector<1x32xf32> to vector<8x32xf32>
    %627 = arith.addf %625, %626 : vector<8x32xf32>
    %628 = vector.extract_strided_slice %527 {offsets = [0, 0], sizes = [16, 32], strides = [1, 1]} : vector<16x128xf32> to vector<16x32xf32>
    %629 = vector.extract_strided_slice %527 {offsets = [0, 32], sizes = [16, 32], strides = [1, 1]} : vector<16x128xf32> to vector<16x32xf32>
    %630 = tpu.concatenate %628, %628, %628, %628 in 0 : vector<16x32xf32>, vector<16x32xf32>, vector<16x32xf32>, vector<16x32xf32> -> vector<64x32xf32>
    %631 = arith.mulf %630, %107 : vector<64x32xf32>
    %632 = tpu.concatenate %629, %629, %629, %629 in 0 : vector<16x32xf32>, vector<16x32xf32>, vector<16x32xf32>, vector<16x32xf32> -> vector<64x32xf32>
    %633 = arith.mulf %632, %107 : vector<64x32xf32>
    %cst_281 = arith.constant dense<0.000000e+00> : vector<8x64xf32>
    %634 = tpu.matmul %627, %631, %cst_281 {dimension_numbers = #tpu.dot_dimension_numbers<[1], [1], [0], [0], [0, 0, 1, 0], [], []>} : vector<8x32xf32>, vector<64x32xf32>, vector<8x64xf32> -> vector<8x64xf32>
    %cst_282 = arith.constant 0.353553385 : f32
    %635 = vector.broadcast %cst_282 : f32 to vector<8x64xf32>
    %636 = arith.mulf %634, %635 : vector<8x64xf32>
    %637 = vector.broadcast %45 : vector<1x64xf32> to vector<8x64xf32>
    %638 = arith.addf %636, %637 : vector<8x64xf32>
    %cst_283 = arith.constant dense<0xFF800000> : vector<8xf32>
    %639 = vector.multi_reduction <maximumf>, %638, %cst_283 [1] : vector<8x64xf32> to vector<8xf32>
    %640 = vector.shape_cast %639 : vector<8xf32> to vector<8x1xf32>
    %641 = vector.broadcast %640 : vector<8x1xf32> to vector<8x64xf32>
    %642 = arith.subf %638, %641 : vector<8x64xf32>
    %643 = math.exp %642 : vector<8x64xf32>
    %cst_284 = arith.constant dense<0.000000e+00> : vector<8x64xf32>
    %644 = tpu.matmul %643, %162, %cst_284 {dimension_numbers = #tpu.dot_dimension_numbers<[1], [0], [0], [1], [0, 0, 1, 1], [], []>} : vector<8x64xf32>, vector<64x64xf32>, vector<8x64xf32> -> vector<8x64xf32>
    %645 = tpu.reciprocal %644 {approx = true} : vector<8x64xf32> -> vector<8x64xf32>
    %646 = arith.mulf %643, %645 : vector<8x64xf32>
    %cst_285 = arith.constant dense<0.000000e+00> : vector<8x32xf32>
    %647 = tpu.matmul %646, %633, %cst_285 {dimension_numbers = #tpu.dot_dimension_numbers<[1], [0], [0], [1], [0, 0, 1, 1], [], []>} : vector<8x64xf32>, vector<64x32xf32>, vector<8x32xf32> -> vector<8x32xf32>
    %c0_286 = arith.constant 0 : index
    %c0_287 = arith.constant 0 : index
    %c0_288 = arith.constant 0 : index
    %648 = vector.load %arg34[%c0_286, %c0_287, %c0_288] : memref<2x32x32xbf16, #tpu.memory_space<vmem>>, vector<1x32x32xbf16>
    %649 = vector.shape_cast %648 : vector<1x32x32xbf16> to vector<32x32xbf16>
    %c0_289 = arith.constant 0 : index
    %c0_290 = arith.constant 0 : index
    %c0_291 = arith.constant 0 : index
    %650 = vector.load %arg35[%c0_289, %c0_290, %c0_291] : memref<2x1x32xf32, #tpu.memory_space<vmem>>, vector<1x1x32xf32>
    %651 = vector.shape_cast %650 : vector<1x1x32xf32> to vector<1x32xf32>
    %652 = arith.truncf %647 : vector<8x32xf32> to vector<8x32xbf16>
    %cst_292 = arith.constant dense<0.000000e+00> : vector<8x32xf32>
    %653 = tpu.matmul %652, %649, %cst_292 {dimension_numbers = #tpu.dot_dimension_numbers<[1], [0], [0], [1], [0, 0, 1, 1], [], []>} : vector<8x32xbf16>, vector<32x32xbf16>, vector<8x32xf32> -> vector<8x32xf32>
    %654 = vector.broadcast %651 : vector<1x32xf32> to vector<8x32xf32>
    %655 = arith.addf %653, %654 : vector<8x32xf32>
    %656 = arith.addf %595, %655 : vector<8x32xf32>
    %c0_293 = arith.constant 0 : index
    %c0_294 = arith.constant 0 : index
    %c0_295 = arith.constant 0 : index
    %657 = vector.load %arg36[%c0_293, %c0_294, %c0_295] : memref<2x1x32xf32, #tpu.memory_space<vmem>>, vector<1x1x32xf32>
    %658 = vector.shape_cast %657 : vector<1x1x32xf32> to vector<1x32xf32>
    %c0_296 = arith.constant 0 : index
    %c0_297 = arith.constant 0 : index
    %c0_298 = arith.constant 0 : index
    %659 = vector.load %arg37[%c0_296, %c0_297, %c0_298] : memref<2x1x32xf32, #tpu.memory_space<vmem>>, vector<1x1x32xf32>
    %660 = vector.shape_cast %659 : vector<1x1x32xf32> to vector<1x32xf32>
    %cst_299 = arith.constant dense<0.000000e+00> : vector<8xf32>
    %661 = vector.multi_reduction <add>, %656, %cst_299 [1] : vector<8x32xf32> to vector<8xf32>
    %662 = vector.shape_cast %661 : vector<8xf32> to vector<8x1xf32>
    %cst_300 = arith.constant 3.200000e+01 : f32
    %663 = vector.broadcast %cst_300 : f32 to vector<8x1xf32>
    %664 = arith.divf %662, %663 : vector<8x1xf32>
    %665 = vector.broadcast %664 : vector<8x1xf32> to vector<8x32xf32>
    %666 = arith.subf %656, %665 : vector<8x32xf32>
    %667 = arith.mulf %666, %666 : vector<8x32xf32>
    %cst_301 = arith.constant dense<0.000000e+00> : vector<8xf32>
    %668 = vector.multi_reduction <add>, %667, %cst_301 [1] : vector<8x32xf32> to vector<8xf32>
    %669 = vector.shape_cast %668 : vector<8xf32> to vector<8x1xf32>
    %cst_302 = arith.constant 3.200000e+01 : f32
    %670 = vector.broadcast %cst_302 : f32 to vector<8x1xf32>
    %671 = arith.divf %669, %670 : vector<8x1xf32>
    %cst_303 = arith.constant 9.99999974E-6 : f32
    %672 = vector.broadcast %cst_303 : f32 to vector<8x1xf32>
    %673 = arith.addf %671, %672 : vector<8x1xf32>
    %674 = math.rsqrt %673 : vector<8x1xf32>
    %675 = vector.broadcast %674 : vector<8x1xf32> to vector<8x32xf32>
    %676 = arith.mulf %666, %675 : vector<8x32xf32>
    %677 = vector.broadcast %658 : vector<1x32xf32> to vector<8x32xf32>
    %678 = arith.mulf %676, %677 : vector<8x32xf32>
    %679 = vector.broadcast %660 : vector<1x32xf32> to vector<8x32xf32>
    %680 = arith.addf %678, %679 : vector<8x32xf32>
    %c0_304 = arith.constant 0 : index
    %c0_305 = arith.constant 0 : index
    %c0_306 = arith.constant 0 : index
    %681 = vector.load %arg38[%c0_304, %c0_305, %c0_306] : memref<2x32x64xbf16, #tpu.memory_space<vmem>>, vector<1x32x64xbf16>
    %682 = vector.shape_cast %681 : vector<1x32x64xbf16> to vector<32x64xbf16>
    %c0_307 = arith.constant 0 : index
    %c0_308 = arith.constant 0 : index
    %c0_309 = arith.constant 0 : index
    %683 = vector.load %arg39[%c0_307, %c0_308, %c0_309] : memref<2x1x64xf32, #tpu.memory_space<vmem>>, vector<1x1x64xf32>
    %684 = vector.shape_cast %683 : vector<1x1x64xf32> to vector<1x64xf32>
    %685 = arith.truncf %680 : vector<8x32xf32> to vector<8x32xbf16>
    %cst_310 = arith.constant dense<0.000000e+00> : vector<8x64xf32>
    %686 = tpu.matmul %685, %682, %cst_310 {dimension_numbers = #tpu.dot_dimension_numbers<[1], [0], [0], [1], [0, 0, 1, 1], [], []>} : vector<8x32xbf16>, vector<32x64xbf16>, vector<8x64xf32> -> vector<8x64xf32>
    %687 = vector.broadcast %684 : vector<1x64xf32> to vector<8x64xf32>
    %688 = arith.addf %686, %687 : vector<8x64xf32>
    %cst_311 = arith.constant 5.000000e-01 : f32
    %689 = vector.broadcast %cst_311 : f32 to vector<8x64xf32>
    %690 = arith.mulf %689, %688 : vector<8x64xf32>
    %cst_312 = arith.constant 0.707106769 : f32
    %691 = vector.broadcast %cst_312 : f32 to vector<8x64xf32>
    %692 = arith.mulf %688, %691 : vector<8x64xf32>
    %693 = math.erf %692 : vector<8x64xf32>
    %cst_313 = arith.constant 1.000000e+00 : f32
    %694 = vector.broadcast %cst_313 : f32 to vector<8x64xf32>
    %695 = arith.addf %694, %693 : vector<8x64xf32>
    %696 = arith.mulf %690, %695 : vector<8x64xf32>
    %c0_314 = arith.constant 0 : index
    %c0_315 = arith.constant 0 : index
    %c0_316 = arith.constant 0 : index
    %697 = vector.load %arg40[%c0_314, %c0_315, %c0_316] : memref<2x64x32xbf16, #tpu.memory_space<vmem>>, vector<1x64x32xbf16>
    %698 = vector.shape_cast %697 : vector<1x64x32xbf16> to vector<64x32xbf16>
    %c0_317 = arith.constant 0 : index
    %c0_318 = arith.constant 0 : index
    %c0_319 = arith.constant 0 : index
    %699 = vector.load %arg41[%c0_317, %c0_318, %c0_319] : memref<2x1x32xf32, #tpu.memory_space<vmem>>, vector<1x1x32xf32>
    %700 = vector.shape_cast %699 : vector<1x1x32xf32> to vector<1x32xf32>
    %701 = arith.truncf %696 : vector<8x64xf32> to vector<8x64xbf16>
    %cst_320 = arith.constant dense<0.000000e+00> : vector<8x32xf32>
    %702 = tpu.matmul %701, %698, %cst_320 {dimension_numbers = #tpu.dot_dimension_numbers<[1], [0], [0], [1], [0, 0, 1, 1], [], []>} : vector<8x64xbf16>, vector<64x32xbf16>, vector<8x32xf32> -> vector<8x32xf32>
    %703 = vector.broadcast %700 : vector<1x32xf32> to vector<8x32xf32>
    %704 = arith.addf %702, %703 : vector<8x32xf32>
    %705 = arith.addf %656, %704 : vector<8x32xf32>
    %c1_321 = arith.constant 1 : index
    %c0_322 = arith.constant 0 : index
    %c0_323 = arith.constant 0 : index
    %706 = vector.load %arg22[%c1_321, %c0_322, %c0_323] : memref<2x1x32xf32, #tpu.memory_space<vmem>>, vector<1x1x32xf32>
    %707 = vector.shape_cast %706 : vector<1x1x32xf32> to vector<1x32xf32>
    %c1_324 = arith.constant 1 : index
    %c0_325 = arith.constant 0 : index
    %c0_326 = arith.constant 0 : index
    %708 = vector.load %arg23[%c1_324, %c0_325, %c0_326] : memref<2x1x32xf32, #tpu.memory_space<vmem>>, vector<1x1x32xf32>
    %709 = vector.shape_cast %708 : vector<1x1x32xf32> to vector<1x32xf32>
    %cst_327 = arith.constant dense<0.000000e+00> : vector<8xf32>
    %710 = vector.multi_reduction <add>, %705, %cst_327 [1] : vector<8x32xf32> to vector<8xf32>
    %711 = vector.shape_cast %710 : vector<8xf32> to vector<8x1xf32>
    %cst_328 = arith.constant 3.200000e+01 : f32
    %712 = vector.broadcast %cst_328 : f32 to vector<8x1xf32>
    %713 = arith.divf %711, %712 : vector<8x1xf32>
    %714 = vector.broadcast %713 : vector<8x1xf32> to vector<8x32xf32>
    %715 = arith.subf %705, %714 : vector<8x32xf32>
    %716 = arith.mulf %715, %715 : vector<8x32xf32>
    %cst_329 = arith.constant dense<0.000000e+00> : vector<8xf32>
    %717 = vector.multi_reduction <add>, %716, %cst_329 [1] : vector<8x32xf32> to vector<8xf32>
    %718 = vector.shape_cast %717 : vector<8xf32> to vector<8x1xf32>
    %cst_330 = arith.constant 3.200000e+01 : f32
    %719 = vector.broadcast %cst_330 : f32 to vector<8x1xf32>
    %720 = arith.divf %718, %719 : vector<8x1xf32>
    %cst_331 = arith.constant 9.99999974E-6 : f32
    %721 = vector.broadcast %cst_331 : f32 to vector<8x1xf32>
    %722 = arith.addf %720, %721 : vector<8x1xf32>
    %723 = math.rsqrt %722 : vector<8x1xf32>
    %724 = vector.broadcast %723 : vector<8x1xf32> to vector<8x32xf32>
    %725 = arith.mulf %715, %724 : vector<8x32xf32>
    %726 = vector.broadcast %707 : vector<1x32xf32> to vector<8x32xf32>
    %727 = arith.mulf %725, %726 : vector<8x32xf32>
    %728 = vector.broadcast %709 : vector<1x32xf32> to vector<8x32xf32>
    %729 = arith.addf %727, %728 : vector<8x32xf32>
    %c1_332 = arith.constant 1 : index
    %c0_333 = arith.constant 0 : index
    %c0_334 = arith.constant 0 : index
    %730 = vector.load %arg24[%c1_332, %c0_333, %c0_334] : memref<2x32x96xbf16, #tpu.memory_space<vmem>>, vector<1x32x96xbf16>
    %731 = vector.shape_cast %730 : vector<1x32x96xbf16> to vector<32x96xbf16>
    %c1_335 = arith.constant 1 : index
    %c0_336 = arith.constant 0 : index
    %c0_337 = arith.constant 0 : index
    %732 = vector.load %arg25[%c1_335, %c0_336, %c0_337] : memref<2x1x96xf32, #tpu.memory_space<vmem>>, vector<1x1x96xf32>
    %733 = vector.shape_cast %732 : vector<1x1x96xf32> to vector<1x96xf32>
    %734 = arith.truncf %729 : vector<8x32xf32> to vector<8x32xbf16>
    %cst_338 = arith.constant dense<0.000000e+00> : vector<8x96xf32>
    %735 = tpu.matmul %734, %731, %cst_338 {dimension_numbers = #tpu.dot_dimension_numbers<[1], [0], [0], [1], [0, 0, 1, 1], [], []>} : vector<8x32xbf16>, vector<32x96xbf16>, vector<8x96xf32> -> vector<8x96xf32>
    %736 = vector.broadcast %733 : vector<1x96xf32> to vector<8x96xf32>
    %737 = arith.addf %735, %736 : vector<8x96xf32>
    %738 = vector.extract_strided_slice %737 {offsets = [0, 0], sizes = [8, 32], strides = [1, 1]} : vector<8x96xf32> to vector<8x32xf32>
    %739 = vector.extract_strided_slice %737 {offsets = [0, 32], sizes = [8, 32], strides = [1, 1]} : vector<8x96xf32> to vector<8x32xf32>
    %740 = vector.extract_strided_slice %737 {offsets = [0, 64], sizes = [8, 32], strides = [1, 1]} : vector<8x96xf32> to vector<8x32xf32>
    %741 = tpu.concatenate %739, %739, %739, %739 in 0 : vector<8x32xf32>, vector<8x32xf32>, vector<8x32xf32>, vector<8x32xf32> -> vector<32x32xf32>
    %742 = arith.mulf %741, %217 : vector<32x32xf32>
    %743 = tpu.concatenate %740, %740, %740, %740 in 0 : vector<8x32xf32>, vector<8x32xf32>, vector<8x32xf32>, vector<8x32xf32> -> vector<32x32xf32>
    %744 = arith.mulf %743, %217 : vector<32x32xf32>
    %cst_339 = arith.constant dense<0.000000e+00> : vector<8x32xf32>
    %745 = tpu.matmul %738, %742, %cst_339 {dimension_numbers = #tpu.dot_dimension_numbers<[1], [1], [0], [0], [0, 0, 1, 0], [], []>} : vector<8x32xf32>, vector<32x32xf32>, vector<8x32xf32> -> vector<8x32xf32>
    %cst_340 = arith.constant 0.353553385 : f32
    %746 = vector.broadcast %cst_340 : f32 to vector<8x32xf32>
    %747 = arith.mulf %745, %746 : vector<8x32xf32>
    %748 = arith.addf %747, %52 : vector<8x32xf32>
    %cst_341 = arith.constant dense<0xFF800000> : vector<8xf32>
    %749 = vector.multi_reduction <maximumf>, %748, %cst_341 [1] : vector<8x32xf32> to vector<8xf32>
    %750 = vector.shape_cast %749 : vector<8xf32> to vector<8x1xf32>
    %751 = vector.broadcast %750 : vector<8x1xf32> to vector<8x32xf32>
    %752 = arith.subf %748, %751 : vector<8x32xf32>
    %753 = math.exp %752 : vector<8x32xf32>
    %cst_342 = arith.constant dense<0.000000e+00> : vector<8x32xf32>
    %754 = tpu.matmul %753, %272, %cst_342 {dimension_numbers = #tpu.dot_dimension_numbers<[1], [0], [0], [1], [0, 0, 1, 1], [], []>} : vector<8x32xf32>, vector<32x32xf32>, vector<8x32xf32> -> vector<8x32xf32>
    %755 = tpu.reciprocal %754 {approx = true} : vector<8x32xf32> -> vector<8x32xf32>
    %756 = arith.mulf %753, %755 : vector<8x32xf32>
    %cst_343 = arith.constant dense<0.000000e+00> : vector<8x32xf32>
    %757 = tpu.matmul %756, %744, %cst_343 {dimension_numbers = #tpu.dot_dimension_numbers<[1], [0], [0], [1], [0, 0, 1, 1], [], []>} : vector<8x32xf32>, vector<32x32xf32>, vector<8x32xf32> -> vector<8x32xf32>
    %c1_344 = arith.constant 1 : index
    %c0_345 = arith.constant 0 : index
    %c0_346 = arith.constant 0 : index
    %758 = vector.load %arg26[%c1_344, %c0_345, %c0_346] : memref<2x32x32xbf16, #tpu.memory_space<vmem>>, vector<1x32x32xbf16>
    %759 = vector.shape_cast %758 : vector<1x32x32xbf16> to vector<32x32xbf16>
    %c1_347 = arith.constant 1 : index
    %c0_348 = arith.constant 0 : index
    %c0_349 = arith.constant 0 : index
    %760 = vector.load %arg27[%c1_347, %c0_348, %c0_349] : memref<2x1x32xf32, #tpu.memory_space<vmem>>, vector<1x1x32xf32>
    %761 = vector.shape_cast %760 : vector<1x1x32xf32> to vector<1x32xf32>
    %762 = arith.truncf %757 : vector<8x32xf32> to vector<8x32xbf16>
    %cst_350 = arith.constant dense<0.000000e+00> : vector<8x32xf32>
    %763 = tpu.matmul %762, %759, %cst_350 {dimension_numbers = #tpu.dot_dimension_numbers<[1], [0], [0], [1], [0, 0, 1, 1], [], []>} : vector<8x32xbf16>, vector<32x32xbf16>, vector<8x32xf32> -> vector<8x32xf32>
    %764 = vector.broadcast %761 : vector<1x32xf32> to vector<8x32xf32>
    %765 = arith.addf %763, %764 : vector<8x32xf32>
    %766 = arith.addf %705, %765 : vector<8x32xf32>
    %c1_351 = arith.constant 1 : index
    %c0_352 = arith.constant 0 : index
    %c0_353 = arith.constant 0 : index
    %767 = vector.load %arg28[%c1_351, %c0_352, %c0_353] : memref<2x1x32xf32, #tpu.memory_space<vmem>>, vector<1x1x32xf32>
    %768 = vector.shape_cast %767 : vector<1x1x32xf32> to vector<1x32xf32>
    %c1_354 = arith.constant 1 : index
    %c0_355 = arith.constant 0 : index
    %c0_356 = arith.constant 0 : index
    %769 = vector.load %arg29[%c1_354, %c0_355, %c0_356] : memref<2x1x32xf32, #tpu.memory_space<vmem>>, vector<1x1x32xf32>
    %770 = vector.shape_cast %769 : vector<1x1x32xf32> to vector<1x32xf32>
    %cst_357 = arith.constant dense<0.000000e+00> : vector<8xf32>
    %771 = vector.multi_reduction <add>, %766, %cst_357 [1] : vector<8x32xf32> to vector<8xf32>
    %772 = vector.shape_cast %771 : vector<8xf32> to vector<8x1xf32>
    %cst_358 = arith.constant 3.200000e+01 : f32
    %773 = vector.broadcast %cst_358 : f32 to vector<8x1xf32>
    %774 = arith.divf %772, %773 : vector<8x1xf32>
    %775 = vector.broadcast %774 : vector<8x1xf32> to vector<8x32xf32>
    %776 = arith.subf %766, %775 : vector<8x32xf32>
    %777 = arith.mulf %776, %776 : vector<8x32xf32>
    %cst_359 = arith.constant dense<0.000000e+00> : vector<8xf32>
    %778 = vector.multi_reduction <add>, %777, %cst_359 [1] : vector<8x32xf32> to vector<8xf32>
    %779 = vector.shape_cast %778 : vector<8xf32> to vector<8x1xf32>
    %cst_360 = arith.constant 3.200000e+01 : f32
    %780 = vector.broadcast %cst_360 : f32 to vector<8x1xf32>
    %781 = arith.divf %779, %780 : vector<8x1xf32>
    %cst_361 = arith.constant 9.99999974E-6 : f32
    %782 = vector.broadcast %cst_361 : f32 to vector<8x1xf32>
    %783 = arith.addf %781, %782 : vector<8x1xf32>
    %784 = math.rsqrt %783 : vector<8x1xf32>
    %785 = vector.broadcast %784 : vector<8x1xf32> to vector<8x32xf32>
    %786 = arith.mulf %776, %785 : vector<8x32xf32>
    %787 = vector.broadcast %768 : vector<1x32xf32> to vector<8x32xf32>
    %788 = arith.mulf %786, %787 : vector<8x32xf32>
    %789 = vector.broadcast %770 : vector<1x32xf32> to vector<8x32xf32>
    %790 = arith.addf %788, %789 : vector<8x32xf32>
    %c1_362 = arith.constant 1 : index
    %c0_363 = arith.constant 0 : index
    %c0_364 = arith.constant 0 : index
    %791 = vector.load %arg30[%c1_362, %c0_363, %c0_364] : memref<2x32x32xbf16, #tpu.memory_space<vmem>>, vector<1x32x32xbf16>
    %792 = vector.shape_cast %791 : vector<1x32x32xbf16> to vector<32x32xbf16>
    %c1_365 = arith.constant 1 : index
    %c0_366 = arith.constant 0 : index
    %c0_367 = arith.constant 0 : index
    %793 = vector.load %arg31[%c1_365, %c0_366, %c0_367] : memref<2x1x32xf32, #tpu.memory_space<vmem>>, vector<1x1x32xf32>
    %794 = vector.shape_cast %793 : vector<1x1x32xf32> to vector<1x32xf32>
    %795 = arith.truncf %790 : vector<8x32xf32> to vector<8x32xbf16>
    %cst_368 = arith.constant dense<0.000000e+00> : vector<8x32xf32>
    %796 = tpu.matmul %795, %792, %cst_368 {dimension_numbers = #tpu.dot_dimension_numbers<[1], [0], [0], [1], [0, 0, 1, 1], [], []>} : vector<8x32xbf16>, vector<32x32xbf16>, vector<8x32xf32> -> vector<8x32xf32>
    %797 = vector.broadcast %794 : vector<1x32xf32> to vector<8x32xf32>
    %798 = arith.addf %796, %797 : vector<8x32xf32>
    %799 = vector.extract_strided_slice %527 {offsets = [0, 64], sizes = [16, 32], strides = [1, 1]} : vector<16x128xf32> to vector<16x32xf32>
    %800 = vector.extract_strided_slice %527 {offsets = [0, 96], sizes = [16, 32], strides = [1, 1]} : vector<16x128xf32> to vector<16x32xf32>
    %801 = tpu.concatenate %799, %799, %799, %799 in 0 : vector<16x32xf32>, vector<16x32xf32>, vector<16x32xf32>, vector<16x32xf32> -> vector<64x32xf32>
    %802 = arith.mulf %801, %107 : vector<64x32xf32>
    %803 = tpu.concatenate %800, %800, %800, %800 in 0 : vector<16x32xf32>, vector<16x32xf32>, vector<16x32xf32>, vector<16x32xf32> -> vector<64x32xf32>
    %804 = arith.mulf %803, %107 : vector<64x32xf32>
    %cst_369 = arith.constant dense<0.000000e+00> : vector<8x64xf32>
    %805 = tpu.matmul %798, %802, %cst_369 {dimension_numbers = #tpu.dot_dimension_numbers<[1], [1], [0], [0], [0, 0, 1, 0], [], []>} : vector<8x32xf32>, vector<64x32xf32>, vector<8x64xf32> -> vector<8x64xf32>
    %cst_370 = arith.constant 0.353553385 : f32
    %806 = vector.broadcast %cst_370 : f32 to vector<8x64xf32>
    %807 = arith.mulf %805, %806 : vector<8x64xf32>
    %808 = vector.broadcast %45 : vector<1x64xf32> to vector<8x64xf32>
    %809 = arith.addf %807, %808 : vector<8x64xf32>
    %cst_371 = arith.constant dense<0xFF800000> : vector<8xf32>
    %810 = vector.multi_reduction <maximumf>, %809, %cst_371 [1] : vector<8x64xf32> to vector<8xf32>
    %811 = vector.shape_cast %810 : vector<8xf32> to vector<8x1xf32>
    %812 = vector.broadcast %811 : vector<8x1xf32> to vector<8x64xf32>
    %813 = arith.subf %809, %812 : vector<8x64xf32>
    %814 = math.exp %813 : vector<8x64xf32>
    %cst_372 = arith.constant dense<0.000000e+00> : vector<8x64xf32>
    %815 = tpu.matmul %814, %162, %cst_372 {dimension_numbers = #tpu.dot_dimension_numbers<[1], [0], [0], [1], [0, 0, 1, 1], [], []>} : vector<8x64xf32>, vector<64x64xf32>, vector<8x64xf32> -> vector<8x64xf32>
    %816 = tpu.reciprocal %815 {approx = true} : vector<8x64xf32> -> vector<8x64xf32>
    %817 = arith.mulf %814, %816 : vector<8x64xf32>
    %cst_373 = arith.constant dense<0.000000e+00> : vector<8x32xf32>
    %818 = tpu.matmul %817, %804, %cst_373 {dimension_numbers = #tpu.dot_dimension_numbers<[1], [0], [0], [1], [0, 0, 1, 1], [], []>} : vector<8x64xf32>, vector<64x32xf32>, vector<8x32xf32> -> vector<8x32xf32>
    %c1_374 = arith.constant 1 : index
    %c0_375 = arith.constant 0 : index
    %c0_376 = arith.constant 0 : index
    %819 = vector.load %arg34[%c1_374, %c0_375, %c0_376] : memref<2x32x32xbf16, #tpu.memory_space<vmem>>, vector<1x32x32xbf16>
    %820 = vector.shape_cast %819 : vector<1x32x32xbf16> to vector<32x32xbf16>
    %c1_377 = arith.constant 1 : index
    %c0_378 = arith.constant 0 : index
    %c0_379 = arith.constant 0 : index
    %821 = vector.load %arg35[%c1_377, %c0_378, %c0_379] : memref<2x1x32xf32, #tpu.memory_space<vmem>>, vector<1x1x32xf32>
    %822 = vector.shape_cast %821 : vector<1x1x32xf32> to vector<1x32xf32>
    %823 = arith.truncf %818 : vector<8x32xf32> to vector<8x32xbf16>
    %cst_380 = arith.constant dense<0.000000e+00> : vector<8x32xf32>
    %824 = tpu.matmul %823, %820, %cst_380 {dimension_numbers = #tpu.dot_dimension_numbers<[1], [0], [0], [1], [0, 0, 1, 1], [], []>} : vector<8x32xbf16>, vector<32x32xbf16>, vector<8x32xf32> -> vector<8x32xf32>
    %825 = vector.broadcast %822 : vector<1x32xf32> to vector<8x32xf32>
    %826 = arith.addf %824, %825 : vector<8x32xf32>
    %827 = arith.addf %766, %826 : vector<8x32xf32>
    %c1_381 = arith.constant 1 : index
    %c0_382 = arith.constant 0 : index
    %c0_383 = arith.constant 0 : index
    %828 = vector.load %arg36[%c1_381, %c0_382, %c0_383] : memref<2x1x32xf32, #tpu.memory_space<vmem>>, vector<1x1x32xf32>
    %829 = vector.shape_cast %828 : vector<1x1x32xf32> to vector<1x32xf32>
    %c1_384 = arith.constant 1 : index
    %c0_385 = arith.constant 0 : index
    %c0_386 = arith.constant 0 : index
    %830 = vector.load %arg37[%c1_384, %c0_385, %c0_386] : memref<2x1x32xf32, #tpu.memory_space<vmem>>, vector<1x1x32xf32>
    %831 = vector.shape_cast %830 : vector<1x1x32xf32> to vector<1x32xf32>
    %cst_387 = arith.constant dense<0.000000e+00> : vector<8xf32>
    %832 = vector.multi_reduction <add>, %827, %cst_387 [1] : vector<8x32xf32> to vector<8xf32>
    %833 = vector.shape_cast %832 : vector<8xf32> to vector<8x1xf32>
    %cst_388 = arith.constant 3.200000e+01 : f32
    %834 = vector.broadcast %cst_388 : f32 to vector<8x1xf32>
    %835 = arith.divf %833, %834 : vector<8x1xf32>
    %836 = vector.broadcast %835 : vector<8x1xf32> to vector<8x32xf32>
    %837 = arith.subf %827, %836 : vector<8x32xf32>
    %838 = arith.mulf %837, %837 : vector<8x32xf32>
    %cst_389 = arith.constant dense<0.000000e+00> : vector<8xf32>
    %839 = vector.multi_reduction <add>, %838, %cst_389 [1] : vector<8x32xf32> to vector<8xf32>
    %840 = vector.shape_cast %839 : vector<8xf32> to vector<8x1xf32>
    %cst_390 = arith.constant 3.200000e+01 : f32
    %841 = vector.broadcast %cst_390 : f32 to vector<8x1xf32>
    %842 = arith.divf %840, %841 : vector<8x1xf32>
    %cst_391 = arith.constant 9.99999974E-6 : f32
    %843 = vector.broadcast %cst_391 : f32 to vector<8x1xf32>
    %844 = arith.addf %842, %843 : vector<8x1xf32>
    %845 = math.rsqrt %844 : vector<8x1xf32>
    %846 = vector.broadcast %845 : vector<8x1xf32> to vector<8x32xf32>
    %847 = arith.mulf %837, %846 : vector<8x32xf32>
    %848 = vector.broadcast %829 : vector<1x32xf32> to vector<8x32xf32>
    %849 = arith.mulf %847, %848 : vector<8x32xf32>
    %850 = vector.broadcast %831 : vector<1x32xf32> to vector<8x32xf32>
    %851 = arith.addf %849, %850 : vector<8x32xf32>
    %c1_392 = arith.constant 1 : index
    %c0_393 = arith.constant 0 : index
    %c0_394 = arith.constant 0 : index
    %852 = vector.load %arg38[%c1_392, %c0_393, %c0_394] : memref<2x32x64xbf16, #tpu.memory_space<vmem>>, vector<1x32x64xbf16>
    %853 = vector.shape_cast %852 : vector<1x32x64xbf16> to vector<32x64xbf16>
    %c1_395 = arith.constant 1 : index
    %c0_396 = arith.constant 0 : index
    %c0_397 = arith.constant 0 : index
    %854 = vector.load %arg39[%c1_395, %c0_396, %c0_397] : memref<2x1x64xf32, #tpu.memory_space<vmem>>, vector<1x1x64xf32>
    %855 = vector.shape_cast %854 : vector<1x1x64xf32> to vector<1x64xf32>
    %856 = arith.truncf %851 : vector<8x32xf32> to vector<8x32xbf16>
    %cst_398 = arith.constant dense<0.000000e+00> : vector<8x64xf32>
    %857 = tpu.matmul %856, %853, %cst_398 {dimension_numbers = #tpu.dot_dimension_numbers<[1], [0], [0], [1], [0, 0, 1, 1], [], []>} : vector<8x32xbf16>, vector<32x64xbf16>, vector<8x64xf32> -> vector<8x64xf32>
    %858 = vector.broadcast %855 : vector<1x64xf32> to vector<8x64xf32>
    %859 = arith.addf %857, %858 : vector<8x64xf32>
    %cst_399 = arith.constant 5.000000e-01 : f32
    %860 = vector.broadcast %cst_399 : f32 to vector<8x64xf32>
    %861 = arith.mulf %860, %859 : vector<8x64xf32>
    %cst_400 = arith.constant 0.707106769 : f32
    %862 = vector.broadcast %cst_400 : f32 to vector<8x64xf32>
    %863 = arith.mulf %859, %862 : vector<8x64xf32>
    %864 = math.erf %863 : vector<8x64xf32>
    %cst_401 = arith.constant 1.000000e+00 : f32
    %865 = vector.broadcast %cst_401 : f32 to vector<8x64xf32>
    %866 = arith.addf %865, %864 : vector<8x64xf32>
    %867 = arith.mulf %861, %866 : vector<8x64xf32>
    %c1_402 = arith.constant 1 : index
    %c0_403 = arith.constant 0 : index
    %c0_404 = arith.constant 0 : index
    %868 = vector.load %arg40[%c1_402, %c0_403, %c0_404] : memref<2x64x32xbf16, #tpu.memory_space<vmem>>, vector<1x64x32xbf16>
    %869 = vector.shape_cast %868 : vector<1x64x32xbf16> to vector<64x32xbf16>
    %c1_405 = arith.constant 1 : index
    %c0_406 = arith.constant 0 : index
    %c0_407 = arith.constant 0 : index
    %870 = vector.load %arg41[%c1_405, %c0_406, %c0_407] : memref<2x1x32xf32, #tpu.memory_space<vmem>>, vector<1x1x32xf32>
    %871 = vector.shape_cast %870 : vector<1x1x32xf32> to vector<1x32xf32>
    %872 = arith.truncf %867 : vector<8x64xf32> to vector<8x64xbf16>
    %cst_408 = arith.constant dense<0.000000e+00> : vector<8x32xf32>
    %873 = tpu.matmul %872, %869, %cst_408 {dimension_numbers = #tpu.dot_dimension_numbers<[1], [0], [0], [1], [0, 0, 1, 1], [], []>} : vector<8x64xbf16>, vector<64x32xbf16>, vector<8x32xf32> -> vector<8x32xf32>
    %874 = vector.broadcast %871 : vector<1x32xf32> to vector<8x32xf32>
    %875 = arith.addf %873, %874 : vector<8x32xf32>
    %876 = arith.addf %827, %875 : vector<8x32xf32>
    %c0_409 = arith.constant 0 : index
    %c0_410 = arith.constant 0 : index
    %877 = vector.load %arg42[%c0_409, %c0_410] : memref<1x32xf32, #tpu.memory_space<vmem>>, vector<1x32xf32>
    %c0_411 = arith.constant 0 : index
    %c0_412 = arith.constant 0 : index
    %878 = vector.load %arg43[%c0_411, %c0_412] : memref<1x32xf32, #tpu.memory_space<vmem>>, vector<1x32xf32>
    %cst_413 = arith.constant dense<0.000000e+00> : vector<8xf32>
    %879 = vector.multi_reduction <add>, %876, %cst_413 [1] : vector<8x32xf32> to vector<8xf32>
    %880 = vector.shape_cast %879 : vector<8xf32> to vector<8x1xf32>
    %cst_414 = arith.constant 3.200000e+01 : f32
    %881 = vector.broadcast %cst_414 : f32 to vector<8x1xf32>
    %882 = arith.divf %880, %881 : vector<8x1xf32>
    %883 = vector.broadcast %882 : vector<8x1xf32> to vector<8x32xf32>
    %884 = arith.subf %876, %883 : vector<8x32xf32>
    %885 = arith.mulf %884, %884 : vector<8x32xf32>
    %cst_415 = arith.constant dense<0.000000e+00> : vector<8xf32>
    %886 = vector.multi_reduction <add>, %885, %cst_415 [1] : vector<8x32xf32> to vector<8xf32>
    %887 = vector.shape_cast %886 : vector<8xf32> to vector<8x1xf32>
    %cst_416 = arith.constant 3.200000e+01 : f32
    %888 = vector.broadcast %cst_416 : f32 to vector<8x1xf32>
    %889 = arith.divf %887, %888 : vector<8x1xf32>
    %cst_417 = arith.constant 9.99999974E-6 : f32
    %890 = vector.broadcast %cst_417 : f32 to vector<8x1xf32>
    %891 = arith.addf %889, %890 : vector<8x1xf32>
    %892 = math.rsqrt %891 : vector<8x1xf32>
    %893 = vector.broadcast %892 : vector<8x1xf32> to vector<8x32xf32>
    %894 = arith.mulf %884, %893 : vector<8x32xf32>
    %895 = vector.broadcast %877 : vector<1x32xf32> to vector<8x32xf32>
    %896 = arith.mulf %894, %895 : vector<8x32xf32>
    %897 = vector.broadcast %878 : vector<1x32xf32> to vector<8x32xf32>
    %898 = arith.addf %896, %897 : vector<8x32xf32>
    %c0_418 = arith.constant 0 : index
    %c0_419 = arith.constant 0 : index
    %899 = vector.load %arg44[%c0_418, %c0_419] : memref<32x128xf32, #tpu.memory_space<vmem>>, vector<32x128xf32>
    %c0_420 = arith.constant 0 : index
    %c0_421 = arith.constant 0 : index
    %900 = vector.load %arg45[%c0_420, %c0_421] : memref<1x128xf32, #tpu.memory_space<vmem>>, vector<1x128xf32>
    %cst_422 = arith.constant dense<0.000000e+00> : vector<8x128xf32>
    %901 = tpu.matmul %898, %899, %cst_422 {dimension_numbers = #tpu.dot_dimension_numbers<[1], [0], [0], [1], [0, 0, 1, 1], [], []>} : vector<8x32xf32>, vector<32x128xf32>, vector<8x128xf32> -> vector<8x128xf32>
    %902 = vector.broadcast %900 : vector<1x128xf32> to vector<8x128xf32>
    %903 = arith.addf %901, %902 : vector<8x128xf32>
    %904 = tpu.iota {dimensions = array<i32: 1>} : vector<8x128xi32>
    %cst_423 = arith.constant 0.000000e+00 : f32
    %905 = vector.broadcast %cst_423 : f32 to vector<8x128xf32>
    %906 = arith.maximumf %903, %905 : vector<8x128xf32>
    %907 = vector.broadcast %cst_423 : f32 to vector<8x128xf32>
    %908 = arith.subf %903, %907 : vector<8x128xf32>
    %909 = arith.cmpf one, %908, %908 : vector<8x128xf32>
    %910 = vector.broadcast %cst_423 : f32 to vector<8x128xf32>
    %911 = arith.addf %903, %910 : vector<8x128xf32>
    %912 = math.absf %908 : vector<8x128xf32>
    %cst_424 = arith.constant 0.000000e+00 : f32
    %913 = vector.broadcast %cst_424 : f32 to vector<8x128xf32>
    %914 = arith.subf %913, %912 : vector<8x128xf32>
    %915 = math.exp %914 : vector<8x128xf32>
    %916 = math.log1p %915 : vector<8x128xf32>
    %917 = arith.addf %906, %916 : vector<8x128xf32>
    %918 = arith.select %909, %911, %917 : vector<8x128xi1>, vector<8x128xf32>
    %cst_425 = arith.constant 2.000000e+00 : f32
    %919 = vector.broadcast %cst_425 : f32 to vector<8x128xf32>
    %920 = arith.addf %919, %918 : vector<8x128xf32>
    %921 = vector.broadcast %25 : vector<1x1xf32> to vector<8x128xf32>
    %922 = arith.mulf %903, %921 : vector<8x128xf32>
    %923 = vector.broadcast %15 : vector<1x1xf32> to vector<8x128xf32>
    %924 = arith.addf %922, %923 : vector<8x128xf32>
    %925 = vector.broadcast %25 : vector<1x1xf32> to vector<8x128xf32>
    %926 = arith.mulf %918, %925 : vector<8x128xf32>
    %c0_i32_426 = arith.constant 0 : i32
    %927 = vector.broadcast %c0_i32_426 : i32 to vector<8x128xi32>
    %928 = arith.cmpi eq, %904, %927 : vector<8x128xi32>
    %c1_i32 = arith.constant 1 : i32
    %929 = vector.broadcast %c1_i32 : i32 to vector<8x128xi32>
    %930 = arith.cmpi eq, %904, %929 : vector<8x128xi32>
    %c2_i32 = arith.constant 2 : i32
    %931 = vector.broadcast %c2_i32 : i32 to vector<8x128xi32>
    %932 = arith.cmpi eq, %904, %931 : vector<8x128xi32>
    %cst_427 = arith.constant 0.000000e+00 : f32
    %933 = vector.broadcast %cst_427 : f32 to vector<8x128xf32>
    %934 = arith.select %932, %926, %933 : vector<8x128xi1>, vector<8x128xf32>
    %935 = arith.select %930, %924, %934 : vector<8x128xi1>, vector<8x128xf32>
    %936 = arith.select %928, %920, %935 : vector<8x128xi1>, vector<8x128xf32>
    %c0_428 = arith.constant 0 : index
    %c0_429 = arith.constant 0 : index
    %c0_430 = arith.constant 0 : index
    %937 = vector.load %arg46[%c0_428, %c0_429, %c0_430] : memref<1x8x128xf32, #tpu.memory_space<vmem>>, vector<1x8x128xf32>
    %938 = vector.shape_cast %937 : vector<1x8x128xf32> to vector<8x128xf32>
    %939 = vector.shape_cast %936 : vector<8x128xf32> to vector<1x8x128xf32>
    tpu.vector_store %arg46[%c0_428, %c0_429, %c0_430], %939 {strides = array<i32>} : memref<1x8x128xf32, #tpu.memory_space<vmem>>, vector<1x8x128xf32>,
    return
  }
  func.func @transform_0(%arg0: i32) -> (i32, i32, i32) {
    %c0_i32 = arith.constant 0 : i32
    %c0_i32_0 = arith.constant 0 : i32
    %c0_i32_1 = arith.constant 0 : i32
    return %arg0, %c0_i32, %c0_i32_0 : i32, i32, i32
  }
  func.func @transform_1(%arg0: i32) -> (i32, i32, i32) {
    %c0_i32 = arith.constant 0 : i32
    %c0_i32_0 = arith.constant 0 : i32
    %c0_i32_1 = arith.constant 0 : i32
    return %arg0, %c0_i32, %c0_i32_0 : i32, i32, i32
  }
  func.func @transform_2(%arg0: i32) -> (i32, i32, i32) {
    %c0_i32 = arith.constant 0 : i32
    %c0_i32_0 = arith.constant 0 : i32
    %c0_i32_1 = arith.constant 0 : i32
    return %arg0, %c0_i32, %c0_i32_0 : i32, i32, i32
  }
  func.func @transform_3(%arg0: i32) -> (i32, i32) {
    %c0_i32 = arith.constant 0 : i32
    %c0_i32_0 = arith.constant 0 : i32
    %c0_i32_1 = arith.constant 0 : i32
    return %c0_i32, %c0_i32_0 : i32, i32
  }
  func.func @transform_4(%arg0: i32) -> (i32, i32) {
    %c0_i32 = arith.constant 0 : i32
    %c0_i32_0 = arith.constant 0 : i32
    %c0_i32_1 = arith.constant 0 : i32
    return %c0_i32, %c0_i32_0 : i32, i32
  }
  func.func @transform_5(%arg0: i32) -> (i32, i32, i32) {
    %c0_i32 = arith.constant 0 : i32
    %c0_i32_0 = arith.constant 0 : i32
    %c0_i32_1 = arith.constant 0 : i32
    %c0_i32_2 = arith.constant 0 : i32
    return %c0_i32, %c0_i32_0, %c0_i32_1 : i32, i32, i32
  }
  func.func @transform_6(%arg0: i32) -> (i32, i32, i32) {
    %c0_i32 = arith.constant 0 : i32
    %c0_i32_0 = arith.constant 0 : i32
    %c0_i32_1 = arith.constant 0 : i32
    %c0_i32_2 = arith.constant 0 : i32
    return %c0_i32, %c0_i32_0, %c0_i32_1 : i32, i32, i32
  }
  func.func @transform_7(%arg0: i32) -> (i32, i32, i32) {
    %c0_i32 = arith.constant 0 : i32
    %c0_i32_0 = arith.constant 0 : i32
    %c0_i32_1 = arith.constant 0 : i32
    %c0_i32_2 = arith.constant 0 : i32
    return %c0_i32, %c0_i32_0, %c0_i32_1 : i32, i32, i32
  }
  func.func @transform_8(%arg0: i32) -> (i32, i32, i32) {
    %c0_i32 = arith.constant 0 : i32
    %c0_i32_0 = arith.constant 0 : i32
    %c0_i32_1 = arith.constant 0 : i32
    %c0_i32_2 = arith.constant 0 : i32
    return %c0_i32, %c0_i32_0, %c0_i32_1 : i32, i32, i32
  }
  func.func @transform_9(%arg0: i32) -> (i32, i32, i32) {
    %c0_i32 = arith.constant 0 : i32
    %c0_i32_0 = arith.constant 0 : i32
    %c0_i32_1 = arith.constant 0 : i32
    %c0_i32_2 = arith.constant 0 : i32
    return %c0_i32, %c0_i32_0, %c0_i32_1 : i32, i32, i32
  }
  func.func @transform_10(%arg0: i32) -> (i32, i32, i32) {
    %c0_i32 = arith.constant 0 : i32
    %c0_i32_0 = arith.constant 0 : i32
    %c0_i32_1 = arith.constant 0 : i32
    %c0_i32_2 = arith.constant 0 : i32
    return %c0_i32, %c0_i32_0, %c0_i32_1 : i32, i32, i32
  }
  func.func @transform_11(%arg0: i32) -> (i32, i32, i32) {
    %c0_i32 = arith.constant 0 : i32
    %c0_i32_0 = arith.constant 0 : i32
    %c0_i32_1 = arith.constant 0 : i32
    %c0_i32_2 = arith.constant 0 : i32
    return %c0_i32, %c0_i32_0, %c0_i32_1 : i32, i32, i32
  }
  func.func @transform_12(%arg0: i32) -> (i32, i32, i32) {
    %c0_i32 = arith.constant 0 : i32
    %c0_i32_0 = arith.constant 0 : i32
    %c0_i32_1 = arith.constant 0 : i32
    %c0_i32_2 = arith.constant 0 : i32
    return %c0_i32, %c0_i32_0, %c0_i32_1 : i32, i32, i32
  }
  func.func @transform_13(%arg0: i32) -> (i32, i32, i32) {
    %c0_i32 = arith.constant 0 : i32
    %c0_i32_0 = arith.constant 0 : i32
    %c0_i32_1 = arith.constant 0 : i32
    %c0_i32_2 = arith.constant 0 : i32
    return %c0_i32, %c0_i32_0, %c0_i32_1 : i32, i32, i32
  }
  func.func @transform_14(%arg0: i32) -> (i32, i32, i32) {
    %c0_i32 = arith.constant 0 : i32
    %c0_i32_0 = arith.constant 0 : i32
    %c0_i32_1 = arith.constant 0 : i32
    %c0_i32_2 = arith.constant 0 : i32
    return %c0_i32, %c0_i32_0, %c0_i32_1 : i32, i32, i32
  }
  func.func @transform_15(%arg0: i32) -> (i32, i32, i32) {
    %c0_i32 = arith.constant 0 : i32
    %c0_i32_0 = arith.constant 0 : i32
    %c0_i32_1 = arith.constant 0 : i32
    %c0_i32_2 = arith.constant 0 : i32
    return %c0_i32, %c0_i32_0, %c0_i32_1 : i32, i32, i32
  }
  func.func @transform_16(%arg0: i32) -> (i32, i32, i32) {
    %c0_i32 = arith.constant 0 : i32
    %c0_i32_0 = arith.constant 0 : i32
    %c0_i32_1 = arith.constant 0 : i32
    %c0_i32_2 = arith.constant 0 : i32
    return %c0_i32, %c0_i32_0, %c0_i32_1 : i32, i32, i32
  }
  func.func @transform_17(%arg0: i32) -> (i32, i32) {
    %c0_i32 = arith.constant 0 : i32
    %c0_i32_0 = arith.constant 0 : i32
    %c0_i32_1 = arith.constant 0 : i32
    return %c0_i32, %c0_i32_0 : i32, i32
  }
  func.func @transform_18(%arg0: i32) -> (i32, i32) {
    %c0_i32 = arith.constant 0 : i32
    %c0_i32_0 = arith.constant 0 : i32
    %c0_i32_1 = arith.constant 0 : i32
    return %c0_i32, %c0_i32_0 : i32, i32
  }
  func.func @transform_19(%arg0: i32) -> (i32, i32) {
    %c0_i32 = arith.constant 0 : i32
    %c0_i32_0 = arith.constant 0 : i32
    %c0_i32_1 = arith.constant 0 : i32
    return %c0_i32, %c0_i32_0 : i32, i32
  }
  func.func @transform_20(%arg0: i32) -> (i32, i32) {
    %c0_i32 = arith.constant 0 : i32
    %c0_i32_0 = arith.constant 0 : i32
    %c0_i32_1 = arith.constant 0 : i32
    return %c0_i32, %c0_i32_0 : i32, i32
  }
  func.func @transform_21(%arg0: i32) -> (i32, i32, i32) {
    %c0_i32 = arith.constant 0 : i32
    %c0_i32_0 = arith.constant 0 : i32
    %c0_i32_1 = arith.constant 0 : i32
    %c0_i32_2 = arith.constant 0 : i32
    return %c0_i32, %c0_i32_0, %c0_i32_1 : i32, i32, i32
  }
  func.func @transform_22(%arg0: i32) -> (i32, i32, i32) {
    %c0_i32 = arith.constant 0 : i32
    %c0_i32_0 = arith.constant 0 : i32
    %c0_i32_1 = arith.constant 0 : i32
    %c0_i32_2 = arith.constant 0 : i32
    return %c0_i32, %c0_i32_0, %c0_i32_1 : i32, i32, i32
  }
  func.func @transform_23(%arg0: i32) -> (i32, i32, i32) {
    %c0_i32 = arith.constant 0 : i32
    %c0_i32_0 = arith.constant 0 : i32
    %c0_i32_1 = arith.constant 0 : i32
    %c0_i32_2 = arith.constant 0 : i32
    return %c0_i32, %c0_i32_0, %c0_i32_1 : i32, i32, i32
  }
  func.func @transform_24(%arg0: i32) -> (i32, i32, i32) {
    %c0_i32 = arith.constant 0 : i32
    %c0_i32_0 = arith.constant 0 : i32
    %c0_i32_1 = arith.constant 0 : i32
    %c0_i32_2 = arith.constant 0 : i32
    return %c0_i32, %c0_i32_0, %c0_i32_1 : i32, i32, i32
  }
  func.func @transform_25(%arg0: i32) -> (i32, i32, i32) {
    %c0_i32 = arith.constant 0 : i32
    %c0_i32_0 = arith.constant 0 : i32
    %c0_i32_1 = arith.constant 0 : i32
    %c0_i32_2 = arith.constant 0 : i32
    return %c0_i32, %c0_i32_0, %c0_i32_1 : i32, i32, i32
  }
  func.func @transform_26(%arg0: i32) -> (i32, i32, i32) {
    %c0_i32 = arith.constant 0 : i32
    %c0_i32_0 = arith.constant 0 : i32
    %c0_i32_1 = arith.constant 0 : i32
    %c0_i32_2 = arith.constant 0 : i32
    return %c0_i32, %c0_i32_0, %c0_i32_1 : i32, i32, i32
  }
  func.func @transform_27(%arg0: i32) -> (i32, i32, i32) {
    %c0_i32 = arith.constant 0 : i32
    %c0_i32_0 = arith.constant 0 : i32
    %c0_i32_1 = arith.constant 0 : i32
    %c0_i32_2 = arith.constant 0 : i32
    return %c0_i32, %c0_i32_0, %c0_i32_1 : i32, i32, i32
  }
  func.func @transform_28(%arg0: i32) -> (i32, i32, i32) {
    %c0_i32 = arith.constant 0 : i32
    %c0_i32_0 = arith.constant 0 : i32
    %c0_i32_1 = arith.constant 0 : i32
    %c0_i32_2 = arith.constant 0 : i32
    return %c0_i32, %c0_i32_0, %c0_i32_1 : i32, i32, i32
  }
  func.func @transform_29(%arg0: i32) -> (i32, i32, i32) {
    %c0_i32 = arith.constant 0 : i32
    %c0_i32_0 = arith.constant 0 : i32
    %c0_i32_1 = arith.constant 0 : i32
    %c0_i32_2 = arith.constant 0 : i32
    return %c0_i32, %c0_i32_0, %c0_i32_1 : i32, i32, i32
  }
  func.func @transform_30(%arg0: i32) -> (i32, i32, i32) {
    %c0_i32 = arith.constant 0 : i32
    %c0_i32_0 = arith.constant 0 : i32
    %c0_i32_1 = arith.constant 0 : i32
    %c0_i32_2 = arith.constant 0 : i32
    return %c0_i32, %c0_i32_0, %c0_i32_1 : i32, i32, i32
  }
  func.func @transform_31(%arg0: i32) -> (i32, i32) {
    %c0_i32 = arith.constant 0 : i32
    %c0_i32_0 = arith.constant 0 : i32
    %c0_i32_1 = arith.constant 0 : i32
    return %c0_i32, %c0_i32_0 : i32, i32
  }
  func.func @transform_32(%arg0: i32) -> (i32, i32) {
    %c0_i32 = arith.constant 0 : i32
    %c0_i32_0 = arith.constant 0 : i32
    %c0_i32_1 = arith.constant 0 : i32
    return %c0_i32, %c0_i32_0 : i32, i32
  }
  func.func @transform_33(%arg0: i32) -> (i32, i32, i32) {
    %c0_i32 = arith.constant 0 : i32
    %c0_i32_0 = arith.constant 0 : i32
    %c0_i32_1 = arith.constant 0 : i32
    %c0_i32_2 = arith.constant 0 : i32
    return %c0_i32, %c0_i32_0, %c0_i32_1 : i32, i32, i32
  }
  func.func @transform_34(%arg0: i32) -> (i32, i32, i32) {
    %c0_i32 = arith.constant 0 : i32
    %c0_i32_0 = arith.constant 0 : i32
    %c0_i32_1 = arith.constant 0 : i32
    %c0_i32_2 = arith.constant 0 : i32
    return %c0_i32, %c0_i32_0, %c0_i32_1 : i32, i32, i32
  }
  func.func @transform_35(%arg0: i32) -> (i32, i32, i32) {
    %c0_i32 = arith.constant 0 : i32
    %c0_i32_0 = arith.constant 0 : i32
    %c0_i32_1 = arith.constant 0 : i32
    %c0_i32_2 = arith.constant 0 : i32
    return %c0_i32, %c0_i32_0, %c0_i32_1 : i32, i32, i32
  }
  func.func @transform_36(%arg0: i32) -> (i32, i32, i32) {
    %c0_i32 = arith.constant 0 : i32
    %c0_i32_0 = arith.constant 0 : i32
    %c0_i32_1 = arith.constant 0 : i32
    %c0_i32_2 = arith.constant 0 : i32
    return %c0_i32, %c0_i32_0, %c0_i32_1 : i32, i32, i32
  }
  func.func @transform_37(%arg0: i32) -> (i32, i32, i32) {
    %c0_i32 = arith.constant 0 : i32
    %c0_i32_0 = arith.constant 0 : i32
    %c0_i32_1 = arith.constant 0 : i32
    %c0_i32_2 = arith.constant 0 : i32
    return %c0_i32, %c0_i32_0, %c0_i32_1 : i32, i32, i32
  }
  func.func @transform_38(%arg0: i32) -> (i32, i32, i32) {
    %c0_i32 = arith.constant 0 : i32
    %c0_i32_0 = arith.constant 0 : i32
    %c0_i32_1 = arith.constant 0 : i32
    %c0_i32_2 = arith.constant 0 : i32
    return %c0_i32, %c0_i32_0, %c0_i32_1 : i32, i32, i32
  }
  func.func @transform_39(%arg0: i32) -> (i32, i32, i32) {
    %c0_i32 = arith.constant 0 : i32
    %c0_i32_0 = arith.constant 0 : i32
    %c0_i32_1 = arith.constant 0 : i32
    %c0_i32_2 = arith.constant 0 : i32
    return %c0_i32, %c0_i32_0, %c0_i32_1 : i32, i32, i32
  }
  func.func @transform_40(%arg0: i32) -> (i32, i32, i32) {
    %c0_i32 = arith.constant 0 : i32
    %c0_i32_0 = arith.constant 0 : i32
    %c0_i32_1 = arith.constant 0 : i32
    %c0_i32_2 = arith.constant 0 : i32
    return %c0_i32, %c0_i32_0, %c0_i32_1 : i32, i32, i32
  }
  func.func @transform_41(%arg0: i32) -> (i32, i32) {
    %c0_i32 = arith.constant 0 : i32
    %c0_i32_0 = arith.constant 0 : i32
    %c0_i32_1 = arith.constant 0 : i32
    return %c0_i32, %c0_i32_0 : i32, i32
  }
  func.func @transform_42(%arg0: i32) -> (i32, i32) {
    %c0_i32 = arith.constant 0 : i32
    %c0_i32_0 = arith.constant 0 : i32
    %c0_i32_1 = arith.constant 0 : i32
    return %c0_i32, %c0_i32_0 : i32, i32
  }
  func.func @transform_43(%arg0: i32) -> (i32, i32) {
    %c0_i32 = arith.constant 0 : i32
    %c0_i32_0 = arith.constant 0 : i32
    %c0_i32_1 = arith.constant 0 : i32
    return %c0_i32, %c0_i32_0 : i32, i32
  }
  func.func @transform_44(%arg0: i32) -> (i32, i32) {
    %c0_i32 = arith.constant 0 : i32
    %c0_i32_0 = arith.constant 0 : i32
    %c0_i32_1 = arith.constant 0 : i32
    return %c0_i32, %c0_i32_0 : i32, i32
  }
  func.func @transform_45(%arg0: i32) -> (i32, i32, i32) {
    %c0_i32 = arith.constant 0 : i32
    %c0_i32_0 = arith.constant 0 : i32
    %c0_i32_1 = arith.constant 0 : i32
    return %arg0, %c0_i32, %c0_i32_0 : i32, i32, i32
  }
}

</mosaic_0001>

<bundles_post_ra>
// kernel: tpu_custom_call.1
= control target key start
LH: loop header
LB: loop body
LE: loop exit
PB: predicated region body
PF: predicated region fallthrough
CT: control target
= control target key end

     0   :  { %s9010_s6 = smov 1   ;;  %s9011_s10 = smov 2   ;;  %s10644_s0 = inlined_call_operand.smem [shape: u32[46], index: -1, kind: input, shape index: {}] }
   0x1   :  { %s9095_s5 = sld [smem:[%s10644_s0]]   ;;  %s9012_s14 = smov 3  }
   0x2   :  { %s9100_s9 = sld [smem:[%s10644_s0 + %s9010_s6]]   ;;  %s9013_s18 = smov 4  }
   0x3   :  { %s9105_s13 = sld [smem:[%s10644_s0 + %s9011_s10]]   ;;  %s9014_s22 = smov 5  }
   0x4   :  { %s9110_s17 = sld [smem:[%s10644_s0 + %s9012_s14]]   ;;  %s9015_s26 = smov 6  }
   0x5   :  { %s9115_s21 = sld [smem:[%s10644_s0 + %s9013_s18]]   ;;  %s9016_s30 = smov 7  }
   0x6   :  { %s9120_s25 = sld [smem:[%s10644_s0 + %s9014_s22]]   ;;  %s9017_s4 = smov 8  }
   0x7   :  { %10717 = sst [smem:[#allocation28_spill]] %s9095_s5  ;;  %s9018_s10 = smov 9  }
   0x8   :  { %10718 = sst [smem:[#allocation29_spill]] %s9100_s9  ;;  %s9019_s15 = smov 10  }
   0x9   :  { %10719 = sst [smem:[#allocation30_spill]] %s9105_s13  ;;  %s9020_s20 = smov 11  }
   0xa   :  { %10720 = sst [smem:[#allocation31_spill]] %s9110_s17  ;;  %s9022_s1 = smov 13  }
   0xb   :  { %10721 = sst [smem:[#allocation32_spill]] %s9115_s21  ;;  %s9023_s7 = smov 14  }
   0xc   :  { %10722 = sst [smem:[#allocation33_spill]] %s9120_s25  ;;  %s9025_s22 = smov 16  }
   0xd   :  { %s9125_s29 = sld [smem:[%s10644_s0 + %s9015_s26]]   ;;  %s9021_s26 = smov 12  }
   0xe   :  { %s9130_s3 = sld [smem:[%s10644_s0 + %s9016_s30]]   ;;  %s9026_s28 = smov 17  }
   0xf   :  { %s9135_s8 = sld [smem:[%s10644_s0 + %s9017_s4]]  }
  0x10   :  { %s9140_s14 = sld [smem:[%s10644_s0 + %s9018_s10]]  }
  0x11   :  { %s9145_s19 = sld [smem:[%s10644_s0 + %s9019_s15]]   ;;  %s9024_s15 = smov 15  }
  0x12   :  { %s9150_s24 = sld [smem:[%s10644_s0 + %s9020_s20]]  }
  0x13   :  { %10723 = sst [smem:[#allocation34_spill]] %s9125_s29 }
  0x14   :  { %10724 = sst [smem:[#allocation35_spill]] %s9130_s3 }
  0x15   :  { %10725 = sst [smem:[#allocation36_spill]] %s9135_s8 }
  0x16   :  { %10726 = sst [smem:[#allocation37_spill]] %s9140_s14 }
  0x17   :  { %10727 = sst [smem:[#allocation38_spill]] %s9145_s19 }
  0x18   :  { %10728 = sst [smem:[#allocation39_spill]] %s9150_s24 }
  0x19   :  { %s9155_s30 = sld [smem:[%s10644_s0 + %s9021_s26]]  }
  0x1a   :  { %s9160_s6 = sld [smem:[%s10644_s0 + %s9022_s1]]  }
  0x1b   :  { %s9165_s12 = sld [smem:[%s10644_s0 + %s9023_s7]]   ;;  %s9027_s7 = smov 18  }
  0x1c   :  { %s9170_s20 = sld [smem:[%s10644_s0 + %s9024_s15]]   ;;  %s9028_s15 = smov 19  }
  0x1d   :  { %s9175_s27 = sld [smem:[%s10644_s0 + %s9025_s22]]   ;;  %s9029_s22 = smov 20  }
  0x1e   :  { %s9180_s4 = sld [smem:[%s10644_s0 + %s9026_s28]]   ;;  %s9030_s28 = smov 21  }
  0x1f   :  { %s9185_s13 = sld [smem:[%s10644_s0 + %s9027_s7]]   ;;  %s9031_s7 = smov 22  }
  0x20   :  { %10729 = sst [smem:[#allocation40_spill]] %s9160_s6 }
  0x21   :  { %10730 = sst [smem:[#allocation41_spill]] %s9165_s12 }
  0x22   :  { %10731 = sst [smem:[#allocation42_spill]] %s9170_s20 }
  0x23   :  { %10732 = sst [smem:[#allocation43_spill]] %s9175_s27 }
  0x24   :  { %10733 = sst [smem:[#allocation44_spill]] %s9180_s4 }
  0x25   :  { %10734 = sst [smem:[#allocation45_spill]] %s9185_s13 }
  0x26   :  { %s9190_s20 = sld [smem:[%s10644_s0 + %s9028_s15]]   ;;  %s9032_s15 = smov 23  }
  0x27   :  { %s9195_s27 = sld [smem:[%s10644_s0 + %s9029_s22]]   ;;  %s9033_s22 = smov 24  }
  0x28   :  { %s9200_s6 = sld [smem:[%s10644_s0 + %s9030_s28]]   ;;  %s9034_s28 = smov 25  }
  0x29   :  { %s9205_s14 = sld [smem:[%s10644_s0 + %s9031_s7]]   ;;  %s9035_s7 = smov 26  }
  0x2c   :  { %10735 = sst [smem:[#allocation46_spill]] %s9190_s20 }
  0x2d   :  { %10736 = sst [smem:[#allocation47_spill]] %s9195_s27 }
  0x2e   :  { %10737 = sst [smem:[#allocation48_spill]] %s9200_s6 }
  0x2f   :  { %10738 = sst [smem:[#allocation49_spill]] %s9205_s14 }
  0x30   :  { %s9210_s20 = sld [smem:[%s10644_s0 + %s9032_s15]]   ;;  %s9036_s15 = smov 27  }
  0x31   :  { %s9215_s27 = sld [smem:[%s10644_s0 + %s9033_s22]]   ;;  %s9037_s22 = smov 28  }
  0x32   :  { %s9220_s6 = sld [smem:[%s10644_s0 + %s9034_s28]]   ;;  %s9038_s28 = smov 29  }
  0x33   :  { %s9225_s14 = sld [smem:[%s10644_s0 + %s9035_s7]]   ;;  %s9039_s7 = smov 30  }
  0x36   :  { %10739 = sst [smem:[#allocation50_spill]] %s9210_s20 }
  0x37   :  { %10740 = sst [smem:[#allocation51_spill]] %s9215_s27 }
  0x38   :  { %10741 = sst [smem:[#allocation52_spill]] %s9220_s6 }
  0x39   :  { %10742 = sst [smem:[#allocation53_spill]] %s9225_s14 }
  0x3a   :  { %s9230_s20 = sld [smem:[%s10644_s0 + %s9036_s15]]   ;;  %s9040_s15 = smov 31  }
  0x3b   :  { %s9235_s27 = sld [smem:[%s10644_s0 + %s9037_s22]]   ;;  %s9041_s22 = smov 32  }
  0x3c   :  { %s9240_s6 = sld [smem:[%s10644_s0 + %s9038_s28]]   ;;  %s9042_s28 = smov 33  }
  0x3d   :  { %s9245_s14 = sld [smem:[%s10644_s0 + %s9039_s7]]   ;;  %s9043_s7 = smov 34  }
  0x40   :  { %10743 = sst [smem:[#allocation54_spill]] %s9230_s20 }
  0x41   :  { %10744 = sst [smem:[#allocation55_spill]] %s9235_s27 }
  0x42   :  { %10745 = sst [smem:[#allocation56_spill]] %s9240_s6 }
  0x43   :  { %10746 = sst [smem:[#allocation57_spill]] %s9245_s14 }
  0x44   :  { %s9250_s20 = sld [smem:[%s10644_s0 + %s9040_s15]]   ;;  %s9044_s15 = smov 35  }
  0x45   :  { %s9255_s27 = sld [smem:[%s10644_s0 + %s9041_s22]]   ;;  %s9045_s22 = smov 36  }
  0x46   :  { %s9260_s6 = sld [smem:[%s10644_s0 + %s9042_s28]]   ;;  %s9046_s28 = smov 37  }
  0x47   :  { %s9265_s14 = sld [smem:[%s10644_s0 + %s9043_s7]]   ;;  %s9047_s7 = smov 38  }
  0x4a   :  { %10747 = sst [smem:[#allocation58_spill]] %s9250_s20 }
  0x4b   :  { %10748 = sst [smem:[#allocation59_spill]] %s9255_s27 }
  0x4c   :  { %10749 = sst [smem:[#allocation60_spill]] %s9260_s6 }
  0x4d   :  { %10750 = sst [smem:[#allocation61_spill]] %s9265_s14 }
  0x4e   :  { %s9270_s20 = sld [smem:[%s10644_s0 + %s9044_s15]]   ;;  %s9048_s15 = smov 39  }
  0x4f   :  { %s9275_s27 = sld [smem:[%s10644_s0 + %s9045_s22]]   ;;  %s9049_s22 = smov 40  }
  0x50   :  { %s9280_s6 = sld [smem:[%s10644_s0 + %s9046_s28]]   ;;  %s9050_s28 = smov 41  }
  0x51   :  { %s9285_s14 = sld [smem:[%s10644_s0 + %s9047_s7]]   ;;  %s9051_s7 = smov 42  }
  0x54   :  { %10751 = sst [smem:[#allocation62_spill]] %s9270_s20 }
  0x55   :  { %10752 = sst [smem:[#allocation63_spill]] %s9275_s27 }
  0x56   :  { %10753 = sst [smem:[#allocation64_spill]] %s9280_s6 }
  0x57   :  { %10754 = sst [smem:[#allocation65_spill]] %s9285_s14 }
  0x58   :  { %s9290_s20 = sld [smem:[%s10644_s0 + %s9048_s15]]   ;;  %s9052_s15 = smov 43  }
  0x59   :  { %s9295_s27 = sld [smem:[%s10644_s0 + %s9049_s22]]   ;;  %s9053_s22 = smov 44  }
  0x5a   :  { %s9300_s6 = sld [smem:[%s10644_s0 + %s9050_s28]]   ;;  %s9054_s28 = smov 45  }
  0x5b   :  { %s9305_s14 = sld [smem:[%s10644_s0 + %s9051_s7]]  }
  0x5e   :  { %10755 = sst [smem:[#allocation66_spill]] %s9290_s20 }
  0x5f   :  { %10756 = sst [smem:[#allocation67_spill]] %s9295_s27 }
  0x60   :  { %10757 = sst [smem:[#allocation68_spill]] %s9300_s6 }
  0x61   :  { %s9310_s20 = sld [smem:[%s10644_s0 + %s9052_s15]]  }
  0x62   :  { %s9315_s27 = sld [smem:[%s10644_s0 + %s9053_s22]]  }
  0x63   :  { %s9320_s6 = sld [smem:[%s10644_s0 + %s9054_s28]]  }
  0x64   :  { %96 = vsyncpa [#allocation3], 0 }
  0x65   :  { %97 = vsyncpa [#allocation6], 0 }
  0x66   :  { %98 = vsyncpa [#allocation9], 0 }
  0x67   :  { %99 = vsyncpa [#allocation12], 0 }
  0x68   :  { %100 = vsyncpa [#allocation15], 0 }
  0x69   :  { %101 = vsyncpa [#allocation18], 0 }
  0x6a   :  { %102 = vsyncpa [#allocation4], 0 }
  0x6b   :  { %104 = vsyncpa [#allocation4 + $0x1], 0  ;;  %s9322_s7 = smov 0   ;;  %s9324_s10 = smov 0  }
  0x6c   :  { %s9326_s11 = smov 0   ;;  %s9328_s15 = smov 0  }
  0x6d LB: > { %s10758_s25 = sld [smem:[#allocation33_spill]]  ;;  %s10759_s24 = sld [smem:[#allocation39_spill]]  ;;  %s9004_s11 = sphi %s9326_s11, %s10870_s11   ;;  %s9000_s10 = sphi %s9324_s10, %s10872_s10   ;;  %s8996_s7 = sphi %s9322_s7, %s10871_s7   ;;  %s9008_s15 = sphi %s9328_s15, %s10868_s15  }
  0x6e   : > { %s10760_s19 = sld [smem:[#allocation38_spill]]  ;;  %s10761_s17 = sld [smem:[#allocation31_spill]] }
  0x6f   : > { %s10762_s13 = sld [smem:[#allocation45_spill]]  ;;  %s10763_s12 = sld [smem:[#allocation41_spill]] }
  0x70   : > { %s10764_s8 = sld [smem:[#allocation36_spill]]  ;;  %s10766_s3 = sld [smem:[#allocation35_spill]] }
  0x71   : > { %s10765_s4 = sld [smem:[#allocation44_spill]]  ;;  %s10767_s29 = sld [smem:[#allocation34_spill]] }
  0x72   : > { %s10768_s21 = sld [smem:[#allocation32_spill]]  ;;  %10770 = sst [smem:[#allocation70_spill]] %s9004_s11 }
  0x73   : > { %10769 = sst [smem:[#allocation69_spill]] %s8996_s7  ;;  %s9343_s0 = sadd.s32 4294967295, %s9008_s15  }
  0x74   : > { %10771 = sst [smem:[#allocation71_spill]] %s9008_s15  ;;  %s6708_s16 = sadd.s32 4294967294, %s9008_s15  }
  0x75   : > { %s9347_s18 = sadd.s32 1, %s9008_s15   ;;  %s1077_s22 = sadd.s32 1, %s9004_s11 }
  0x76   : > { %10772 = sst [smem:[#allocation72_spill]] %s9347_s18  ;;  %s1074_s23 = ssub.s32 %s9008_s15, %s9347_s18 }
  0x77   : > { %p1087_p0 = scmp.ne.s32.totalorder %s9004_s11, %s9000_s10  ;;  %p1075_p1 = scmp.eq.s32.totalorder %s1074_s23, 0 }
  0x78   : > { %p1088_p2 = scmp.eq.s32.totalorder %s9343_s0, 1  ;;  %p1093_p3 = scmp.ne.s32.totalorder %s9000_s10, %s8996_s7 }
  0x79   : > { %p1094_p4 = scmp.eq.s32.totalorder %s6708_s16, 1  ;;  %p6709_p7 = scmp.ge.s32.totalorder %s9008_s15, 1 }
  0x7a   : > { %s9358_s26 = scalar_select %p1075_p1, %s9004_s11, %s1077_s22  }
  0x7b   : > { %p9360_p5 = por %p1088_p2, %p1087_p0  ;;  %p9364_p6 = por %p1094_p4, %p1093_p3 }
  0x7c   : > { %10773 = sst [smem:[#allocation73_spill]] %s9358_s26  ;;  %p1101_p8 = scmp.lt.s32.totalorder %s9008_s15, 3 }
  0x7d   : > { %s10774_s28 = scalar_select %p9360_p5, 1, 0 }
  0x7e   : > { %s10775_s1 = scalar_select %p9364_p6, 1, 0 }
  0x7f   : > { %p10673_p9 = scmp.eq.s32.totalorder %s9343_s0, 0  ;;  %p9371_p10 = pnand %p6709_p7, %p1101_p8 }
  0x80   : > { %10776 = sst [smem:[#allocation74_spill]] %s10775_s1  ;;  %s9055_s16 = smov [#allocation5]  }
  0x81   : > { %s10777_s2 = scalar_select %p9371_p10, 1, 0 }
  0x82   : > { %s1125_s22 = sshll.u32 %s9055_s16, 4  ;;  %p8045_p11 = pneg %p9371_p10  ;;  %s1126_s22 = int_to_ptr.vmem [resolvable:$true] %s1125_s22 }
  0x83   : > { %s9056_s26 = smov [#allocation8]   ;;  %s9057_s18 = smov [#allocation11]  }
  0x84   : > { %p9379_p12 = pnand %p10673_p9, %p8045_p11  ;;  %s1148_s11 = sshll.u32 %s9056_s26, 4  ;;  %s9383_s11 = int_to_ptr.vmem [resolvable:$true] %s1148_s11 }
  0x85   : > { %s9385_s1 = sshll.u32 %s9057_s18, 4  ;;  %s8614_s7 = scalar_lea.hbm %s10768_s21, 16  ;;  %s1181_s1 = int_to_ptr.vmem [resolvable:$true] %s9385_s1 }
  0x86   : > { %p8615_p13 = scmp.ne.s32.totalorder %s10768_s21, %s8614_s7  ;;  %p9391_p0 = pneg %p9379_p12 }
  0x87   : > { %p8621_p3 = scmp.lt.u32.totalorder %s8614_s7, %s10768_s21 }
  0x88   : > { %p8617_p1 = pnand %p9391_p0, %p8615_p13 }
  0x8a   : > { %p8618_p2 = pneg %p8617_p1 }
  0x8c   : > { %p8623_p4 = pnand %p8621_p3, %p8618_p2 }
  0x8e   : > { %8626 = shalt.err (!%p8623_p4)
}
  0x8f   : > { %s8627_s26 = scalar_lea.vmem %s1126_s22, 16  ;;  %s8634_s18 = scalar_lea.vmem %s1126_s22, 32 }
  0x90   : > { %p8628_p7 = scmp.ne.s32.totalorder %s1126_s22, %s8627_s26  ;;  %p8635_p9 = scmp.lt.s32.totalorder %s1126_s22, %s1126_s22 }
  0x91   : > { %p8636_p6 = scmp.lt.s32.totalorder %s8634_s18, %s8627_s26 }
  0x92   : > { %p8630_p8 = pnand %p8628_p7, %p9391_p0 }
  0x93   : > { %p8637_p5 = por %p8636_p6, %p8635_p9 }
  0x94   : > { %p8631_p11 = pneg %p8630_p8 }
  0x96   : > { %p8638_p10 = pnand %p8637_p5, %p8631_p11 }
  0x98   : > { %8641 = shalt.err (!%p8638_p10)
}
  0x99   : > { %8051 = dma.hbm_to_vmem [thread:$0]  (!%p9379_p12), %s10768_s21, 16, %s1126_s22, [#allocation6]  }
  0x9a   : > { %s8642_s7 = scalar_lea.hbm %s10767_s29, 32 }
  0x9b   : > { %p8643_p13 = scmp.ne.s32.totalorder %s10767_s29, %s8642_s7  ;;  %p8649_p3 = scmp.lt.u32.totalorder %s8642_s7, %s10767_s29 }
  0x9d   : > { %p8645_p1 = pnand %p8643_p13, %p9391_p0 }
  0x9f   : > { %p8646_p2 = pneg %p8645_p1 }
  0xa1   : > { %p8651_p4 = pnand %p8649_p3, %p8646_p2 }
  0xa3   : > { %8654 = shalt.err (!%p8651_p4)
}
  0xa4   : > { %s8655_s26 = scalar_lea.vmem %s9383_s11, 32  ;;  %p8663_p10 = scmp.lt.s32.totalorder %s9383_s11, %s9383_s11 }
  0xa5   : > { %p8656_p5 = scmp.ne.s32.totalorder %s9383_s11, %s8655_s26  ;;  %p8664_p7 = scmp.lt.s32.totalorder %s8655_s26, %s8655_s26 }
  0xa7   : > { %p8658_p6 = pnand %p8656_p5, %p9391_p0  ;;  %p8665_p8 = por %p8664_p7, %p8663_p10 }
  0xa9   : > { %p8659_p9 = pneg %p8658_p6 }
  0xab   : > { %p8666_p11 = pnand %p8665_p8, %p8659_p9 }
  0xad   : > { %8669 = shalt.err (!%p8666_p11)
}
  0xae   : > { %s10679_s22 = smov 16   ;;  %s9059_s18 = smov 1  }
  0xaf   : > { %8057 = dma.hbm_to_vmem [thread:$0]  (!%p9379_p12), %s10767_s29, 32, %s9383_s11, [#allocation9], %s10679_s22, %s10679_s22, %s9059_s18  }
  0xb0   : > { %s8670_s7 = scalar_lea.hbm %s10760_s19, 32 }
  0xb1   : > { %p8671_p13 = scmp.ne.s32.totalorder %s10760_s19, %s8670_s7  ;;  %p8677_p3 = scmp.lt.u32.totalorder %s8670_s7, %s10760_s19 }
  0xb3   : > { %p8673_p1 = pnand %p8671_p13, %p9391_p0 }
  0xb5   : > { %p8674_p2 = pneg %p8673_p1 }
  0xb7   : > { %p8679_p4 = pnand %p8677_p3, %p8674_p2 }
  0xb9   : > { %8682 = shalt.err (!%p8679_p4)
}
  0xba   : > { %s8683_s26 = scalar_lea.vmem %s1181_s1, 32  ;;  %p8691_p10 = scmp.lt.s32.totalorder %s1181_s1, %s1181_s1 }
  0xbb   : > { %p8684_p5 = scmp.ne.s32.totalorder %s1181_s1, %s8683_s26  ;;  %p8692_p7 = scmp.lt.s32.totalorder %s8683_s26, %s8683_s26 }
  0xbd   : > { %p8686_p6 = pnand %p8684_p5, %p9391_p0  ;;  %p8693_p8 = por %p8692_p7, %p8691_p10 }
  0xbf   : > { %p8687_p9 = pneg %p8686_p6 }
  0xc1   : > { %p8694_p11 = pnand %p8693_p8, %p8687_p9 }
  0xc3   : > { %8697 = shalt.err (!%p8694_p11)
}
  0xc4   : > { %8063 = dma.hbm_to_vmem [thread:$0]  (!%p9379_p12), %s10760_s19, 32, %s1181_s1, [#allocation12], %s10679_s22, %s10679_s22, %s9059_s18  }
  0xc5   : > { %s9060_s11 = smov [#allocation14]   ;;  %s9061_s21 = smov [#allocation17]  }
  0xc6   : > { %s1206_s7 = sshll.u32 %s9060_s11, 4  ;;  %s1242_s29 = sshll.u32 %s9061_s21, 4  ;;  %s1207_s7 = int_to_ptr.vmem [resolvable:$true] %s1206_s7  ;;  %s1243_s29 = int_to_ptr.vmem [resolvable:$true] %s1242_s29 }
  0xc7   : > { %s8698_s26 = scalar_lea.hbm %s9155_s30, 32 }
  0xc8   : > { %p8699_p13 = scmp.ne.s32.totalorder %s9155_s30, %s8698_s26  ;;  %p8705_p3 = scmp.lt.u32.totalorder %s8698_s26, %s9155_s30 }
  0xca   : > { %p8701_p1 = pnand %p8699_p13, %p9391_p0 }
  0xcc   : > { %p8702_p2 = pneg %p8701_p1 }
  0xce   : > { %p8707_p4 = pnand %p8705_p3, %p8702_p2 }
  0xd0   : > { %8710 = shalt.err (!%p8707_p4)
}
  0xd1   : > { %s8711_s15 = scalar_lea.vmem %s1207_s7, 32  ;;  %p8719_p10 = scmp.lt.s32.totalorder %s1207_s7, %s1207_s7 }
  0xd2   : > { %p8712_p5 = scmp.ne.s32.totalorder %s1207_s7, %s8711_s15  ;;  %p8720_p7 = scmp.lt.s32.totalorder %s8711_s15, %s8711_s15 }
  0xd4   : > { %p8714_p6 = pnand %p8712_p5, %p9391_p0  ;;  %p8721_p8 = por %p8720_p7, %p8719_p10 }
  0xd6   : > { %p8715_p9 = pneg %p8714_p6 }
  0xd8   : > { %p8722_p11 = pnand %p8721_p8, %p8715_p9 }
  0xda   : > { %8725 = shalt.err (!%p8722_p11)
}
  0xdb   : > { %8069 = dma.hbm_to_vmem [thread:$0]  (!%p9379_p12), %s9155_s30, 32, %s1207_s7, [#allocation15], %s10679_s22, %s10679_s22, %s9059_s18  }
  0xdc   : > { %s8726_s21 = scalar_lea.hbm %s10765_s4, 16 }
  0xdd   : > { %p8727_p13 = scmp.ne.s32.totalorder %s10765_s4, %s8726_s21  ;;  %p8733_p3 = scmp.lt.u32.totalorder %s8726_s21, %s10765_s4 }
  0xdf   : > { %p8729_p1 = pnand %p8727_p13, %p9391_p0 }
  0xe1   : > { %p8730_p2 = pneg %p8729_p1 }
  0xe3   : > { %p8735_p4 = pnand %p8733_p3, %p8730_p2 }
  0xe5   : > { %8738 = shalt.err (!%p8735_p4)
}
  0xe6   : > { %s8739_s15 = scalar_lea.vmem %s1243_s29, 16  ;;  %s8746_s1 = scalar_lea.vmem %s1243_s29, 32 }
  0xe7   : > { %p8740_p5 = scmp.ne.s32.totalorder %s1243_s29, %s8739_s15  ;;  %p8747_p10 = scmp.lt.s32.totalorder %s1243_s29, %s1243_s29 }
  0xe8   : > { %p8748_p7 = scmp.lt.s32.totalorder %s8746_s1, %s8739_s15 }
  0xe9   : > { %p8742_p6 = pnand %p8740_p5, %p9391_p0 }
  0xea   : > { %p8749_p8 = por %p8748_p7, %p8747_p10 }
  0xeb   : > { %p8743_p9 = pneg %p8742_p6 }
  0xed   : > { %p8750_p11 = pnand %p8749_p8, %p8743_p9 }
  0xef   : > { %8753 = shalt.err (!%p8750_p11)
}
  0xf0   : > { %8075 = dma.hbm_to_vmem [thread:$0]  (!%p9379_p12), %s10765_s4, 16, %s1243_s29, [#allocation18]  }
  0xf1   : > { %s9062_s11 = smov [#allocation2]   ;;  %s9063_s26 = smov [#allocation7]  }
  0xf2   : > { %s1114_s7 = sshll.u32 %s9062_s11, 4  ;;  %s1135_s21 = sshll.u32 %s9063_s26, 4  ;;  %s1115_s7 = int_to_ptr.vmem [resolvable:$true] %s1114_s7  ;;  %s1136_s21 = int_to_ptr.vmem [resolvable:$true] %s1135_s21 }
  0xf3   : > { %s8754_s22 = scalar_lea.hbm %s10761_s17, 128 }
  0xf4   : > { %p8755_p13 = scmp.ne.s32.totalorder %s10761_s17, %s8754_s22  ;;  %p8761_p3 = scmp.lt.u32.totalorder %s8754_s22, %s10761_s17 }
  0xf6   : > { %p8757_p1 = pnand %p8755_p13, %p9391_p0 }
  0xf8   : > { %p8758_p2 = pneg %p8757_p1 }
  0xfa   : > { %p8763_p4 = pnand %p8761_p3, %p8758_p2 }
  0xfc   : > { %8766 = shalt.err (!%p8763_p4)
}
  0xfd   : > { %s8767_s15 = scalar_lea.vmem %s1115_s7, 128  ;;  %p8775_p10 = scmp.lt.s32.totalorder %s1115_s7, %s1115_s7 }
  0xfe   : > { %p8768_p5 = scmp.ne.s32.totalorder %s1115_s7, %s8767_s15  ;;  %p8776_p7 = scmp.lt.s32.totalorder %s8767_s15, %s8767_s15 }
 0x100   : > { %p8770_p6 = pnand %p8768_p5, %p9391_p0  ;;  %p8777_p8 = por %p8776_p7, %p8775_p10 }
 0x102   : > { %p8771_p9 = pneg %p8770_p6 }
 0x104   : > { %p8778_p11 = pnand %p8777_p8, %p8771_p9 }
 0x106   : > { %8781 = shalt.err (!%p8778_p11)
}
 0x107   : > { %8048 = dma.hbm_to_vmem [thread:$0]  (!%p9379_p12), %s10761_s17, 128, %s1115_s7, [#allocation3]  }
 0x108   : > { %s8782_s29 = scalar_lea.hbm %s10758_s25, 32 }
 0x109   : > { %p8783_p13 = scmp.ne.s32.totalorder %s10758_s25, %s8782_s29  ;;  %p8789_p3 = scmp.lt.u32.totalorder %s8782_s29, %s10758_s25 }
 0x10b   : > { %p8785_p1 = pnand %p8783_p13, %p9391_p0 }
 0x10d   : > { %p8786_p2 = pneg %p8785_p1 }
 0x10f   : > { %p8791_p4 = pnand %p8789_p3, %p8786_p2 }
 0x111   : > { %8794 = shalt.err (!%p8791_p4)
}
 0x112   : > { %s8795_s22 = scalar_lea.vmem %s1136_s21, 32  ;;  %p8803_p10 = scmp.lt.s32.totalorder %s1136_s21, %s1136_s21 }
 0x113   : > { %p8796_p5 = scmp.ne.s32.totalorder %s1136_s21, %s8795_s22  ;;  %p8804_p7 = scmp.lt.s32.totalorder %s8795_s22, %s8795_s22 }
 0x115   : > { %p8798_p6 = pnand %p8796_p5, %p9391_p0  ;;  %p8805_p8 = por %p8804_p7, %p8803_p10 }
 0x117   : > { %p8799_p9 = pneg %p8798_p6 }
 0x119   : > { %p8806_p11 = pnand %p8805_p8, %p8799_p9 }
 0x11b   : > { %8809 = shalt.err (!%p8806_p11)
}
 0x11c   : > { %s10780_s1 = smov 16   ;;  %s9064_s11 = smov [#allocation10]  }
 0x11d   : > { %8054 = dma.hbm_to_vmem [thread:$0]  (!%p9379_p12), %s10758_s25, 32, %s1136_s21, [#allocation6], %s10780_s1, %s10780_s1, %s9059_s18  }
 0x11e   : > { %s1164_s7 = sshll.u32 %s9064_s11, 4  ;;  %s9065_s26 = smov [#allocation13]   ;;  %s1165_s7 = int_to_ptr.vmem [resolvable:$true] %s1164_s7 }
 0x11f   : > { %s1193_s15 = sshll.u32 %s9065_s26, 4  ;;  %s8810_s29 = scalar_lea.hbm %s10764_s8, 32  ;;  %s1194_s15 = int_to_ptr.vmem [resolvable:$true] %s1193_s15 }
 0x120   : > { %p8811_p13 = scmp.ne.s32.totalorder %s10764_s8, %s8810_s29  ;;  %p8817_p3 = scmp.lt.u32.totalorder %s8810_s29, %s10764_s8 }
 0x122   : > { %p8813_p1 = pnand %p8811_p13, %p9391_p0 }
 0x124   : > { %p8814_p2 = pneg %p8813_p1 }
 0x126   : > { %p8819_p4 = pnand %p8817_p3, %p8814_p2 }
 0x128   : > { %8822 = shalt.err (!%p8819_p4)
}
 0x129   : > { %s8823_s22 = scalar_lea.vmem %s1165_s7, 32  ;;  %p8831_p10 = scmp.lt.s32.totalorder %s1165_s7, %s1165_s7 }
 0x12a   : > { %p8824_p5 = scmp.ne.s32.totalorder %s1165_s7, %s8823_s22  ;;  %p8832_p7 = scmp.lt.s32.totalorder %s8823_s22, %s8823_s22 }
 0x12c   : > { %p8826_p6 = pnand %p8824_p5, %p9391_p0  ;;  %p8833_p8 = por %p8832_p7, %p8831_p10 }
 0x12e   : > { %p8827_p9 = pneg %p8826_p6 }
 0x130   : > { %p8834_p11 = pnand %p8833_p8, %p8827_p9 }
 0x132   : > { %8837 = shalt.err (!%p8834_p11)
}
 0x133   : > { %8060 = dma.hbm_to_vmem [thread:$0]  (!%p9379_p12), %s10764_s8, 32, %s1165_s7, [#allocation9], %s10780_s1, %s10780_s1, %s9059_s18  }
 0x134   : > { %s8838_s21 = scalar_lea.hbm %s10759_s24, 32 }
 0x135   : > { %p8839_p13 = scmp.ne.s32.totalorder %s10759_s24, %s8838_s21  ;;  %p8845_p3 = scmp.lt.u32.totalorder %s8838_s21, %s10759_s24 }
 0x137   : > { %p8841_p1 = pnand %p8839_p13, %p9391_p0 }
 0x139   : > { %p8842_p2 = pneg %p8841_p1 }
 0x13b   : > { %p8847_p4 = pnand %p8845_p3, %p8842_p2 }
 0x13d   : > { %8850 = shalt.err (!%p8847_p4)
}
 0x13e   : > { %s8851_s11 = scalar_lea.vmem %s1194_s15, 32  ;;  %p8859_p10 = scmp.lt.s32.totalorder %s1194_s15, %s1194_s15 }
 0x13f   : > { %p8852_p5 = scmp.ne.s32.totalorder %s1194_s15, %s8851_s11  ;;  %p8860_p7 = scmp.lt.s32.totalorder %s8851_s11, %s8851_s11 }
 0x141   : > { %p8854_p6 = pnand %p8852_p5, %p9391_p0  ;;  %p8861_p8 = por %p8860_p7, %p8859_p10 }
 0x143   : > { %p8855_p9 = pneg %p8854_p6 }
 0x145   : > { %p8862_p11 = pnand %p8861_p8, %p8855_p9 }
 0x147   : > { %8865 = shalt.err (!%p8862_p11)
}
 0x148   : > { %8066 = dma.hbm_to_vmem [thread:$0]  (!%p9379_p12), %s10759_s24, 32, %s1194_s15, [#allocation12], %s10780_s1, %s10780_s1, %s9059_s18  }
 0x149   : > { %s9066_s7 = smov [#allocation16]   ;;  %s9067_s29 = smov [#allocation19]  }
 0x14a   : > { %s1222_s26 = sshll.u32 %s9066_s7, 4  ;;  %s1253_s22 = sshll.u32 %s9067_s29, 4  ;;  %s1223_s26 = int_to_ptr.vmem [resolvable:$true] %s1222_s26  ;;  %s1254_s22 = int_to_ptr.vmem [resolvable:$true] %s1253_s22 }
 0x14b   : > { %s8866_s21 = scalar_lea.hbm %s10763_s12, 32 }
 0x14c   : > { %p8867_p13 = scmp.ne.s32.totalorder %s10763_s12, %s8866_s21  ;;  %p8873_p3 = scmp.lt.u32.totalorder %s8866_s21, %s10763_s12 }
 0x14e   : > { %p8869_p1 = pnand %p8867_p13, %p9391_p0 }
 0x150   : > { %p8870_p2 = pneg %p8869_p1 }
 0x152   : > { %p8875_p4 = pnand %p8873_p3, %p8870_p2 }
 0x154   : > { %8878 = shalt.err (!%p8875_p4)
}
 0x155   : > { %s8879_s11 = scalar_lea.vmem %s1223_s26, 32  ;;  %p8887_p10 = scmp.lt.s32.totalorder %s1223_s26, %s1223_s26 }
 0x156   : > { %p8880_p5 = scmp.ne.s32.totalorder %s1223_s26, %s8879_s11  ;;  %p8888_p7 = scmp.lt.s32.totalorder %s8879_s11, %s8879_s11 }
 0x158   : > { %p8882_p6 = pnand %p8880_p5, %p9391_p0  ;;  %p8889_p8 = por %p8888_p7, %p8887_p10 }
 0x15a   : > { %p8883_p9 = pneg %p8882_p6 }
 0x15c   : > { %p8890_p11 = pnand %p8889_p8, %p8883_p9 }
 0x15e   : > { %8893 = shalt.err (!%p8890_p11)
}
 0x15f   : > { %8072 = dma.hbm_to_vmem [thread:$0]  (!%p9379_p12), %s10763_s12, 32, %s1223_s26, [#allocation15], %s10780_s1, %s10780_s1, %s9059_s18  }
 0x160   : > { %s8894_s15 = scalar_lea.hbm %s10762_s13, 16 }
 0x161   : > { %p8895_p13 = scmp.ne.s32.totalorder %s10762_s13, %s8894_s15  ;;  %p8901_p3 = scmp.lt.u32.totalorder %s8894_s15, %s10762_s13 }
 0x163   : > { %p8897_p1 = pnand %p8895_p13, %p9391_p0 }
 0x165   : > { %p8898_p2 = pneg %p8897_p1 }
 0x167   : > { %p8903_p4 = pnand %p8901_p3, %p8898_p2 }
 0x169   : > { %8906 = shalt.err (!%p8903_p4)
}
 0x16a   : > { %s8907_s7 = scalar_lea.vmem %s1254_s22, 16  ;;  %s8914_s29 = scalar_lea.vmem %s1254_s22, 32 }
 0x16b   : > { %p8908_p5 = scmp.ne.s32.totalorder %s1254_s22, %s8907_s7  ;;  %p8915_p10 = scmp.lt.s32.totalorder %s1254_s22, %s1254_s22 }
 0x16c   : > { %p8916_p7 = scmp.lt.s32.totalorder %s8914_s29, %s8907_s7 }
 0x16d   : > { %p8910_p6 = pnand %p8908_p5, %p9391_p0 }
 0x16e   : > { %p8917_p8 = por %p8916_p7, %p8915_p10 }
 0x16f   : > { %p8911_p9 = pneg %p8910_p6 }
 0x171   : > { %p8918_p11 = pnand %p8917_p8, %p8911_p9 }
 0x173   : > { %8921 = shalt.err (!%p8918_p11)
}
 0x174   : > { %8078 = dma.hbm_to_vmem [thread:$0]  (!%p9379_p12), %s10762_s13, 16, %s1254_s22, [#allocation18]  }
 0x175   : > { %p10781_p13 = scmp.ne.s32.totalorder %s10777_s2, 0 }
 0x176   : > { %p10782_p1 = scmp.eq.s32.totalorder (!%p10781_p13), %s9343_s0, 0 }
 0x177   : > { %1367 = sbr.rel (%p10781_p13) target bundleno = 15126 (0x3b16), region = 200 }
 0x17e   : > { %8967 = dma.done.wait (%p10782_p1), [#allocation3], 128   ;;  %p10783_p2 = pmov %p10782_p1 }
 0x17f   : > { %p10784_p0 = pmov %p10782_p1 }
 0x180   : > { %8969 = vsyncadd (%p10783_p2), [#allocation3], 4294967168 }
 0x181   : > { %8971 = dma.done.wait (%p10784_p0), [#allocation6], 48   ;;  %p10785_p3 = pmov %p10784_p0 }
 0x182   : > { %p10786_p4 = pmov %p10784_p0 }
 0x183   : > { %8973 = vsyncadd (%p10785_p3), [#allocation6], 4294967248 }
 0x184   : > { %8975 = dma.done.wait (%p10786_p4), [#allocation9], 64   ;;  %p10787_p12 = pmov %p10784_p0 }
 0x185   : > { %p10788_p5 = pmov %p10784_p0 }
 0x186   : > { %8977 = vsyncadd (%p10787_p12), [#allocation9], 4294967232 }
 0x187   : > { %8979 = dma.done.wait (%p10788_p5), [#allocation12], 64   ;;  %p10789_p6 = pmov %p10784_p0 }
 0x188   : > { %p10790_p9 = pmov %p10784_p0 }
 0x189   : > { %8981 = vsyncadd (%p10789_p6), [#allocation12], 4294967232 }
 0x18a   : > { %8983 = dma.done.wait (%p10790_p9), [#allocation15], 64   ;;  %p10791_p10 = pmov %p10784_p0 }
 0x18b   : > { %p10792_p7 = pmov %p10784_p0 }
 0x18c   : > { %8985 = vsyncadd (%p10791_p10), [#allocation15], 4294967232 }
 0x18d   : > { %8987 = dma.done.wait (%p10792_p7), [#allocation18], 32   ;;  %p10793_p8 = pmov %p10784_p0 }
 0x18e   : > { %s10794_s5 = sld [smem:[#allocation28_spill]]  ;;  %p1524_p11 = scmp.lt.s32.totalorder %s9343_s0, 1  ;;  %vm1548_vm0 = vcmask 1043456   ;;  %vm1556_vm1 = vcmask 15368   ;;  %vm1589_vm2 = vcmask 7168   ;;  %v1605_v38 = vlaneseq }
 0x18f   : > { %8989 = vsyncadd (%p10793_p8), [#allocation18], 4294967264  ;;  %s9068_s18 = smov 127   ;;  %s10795_s9 = sld [smem:[#allocation29_spill]]  ;;  %vm1663_vm5 = vcmask 1040384   ;;  %vm1678_vm6 = vcmask 1041408  }
 0x190   : > { %s9558_s2 = scalar_select %p1524_p11, %s9343_s0, 1  ;;  %v9584_v40 = vshrl.u32 %v1605_v38, 7  ;;  %vm2217_vm7 = vcmask 1046528   ;;  %vm10683_vm8 = vcmask 15360   ;;  %vm1728_vm9 = vcmask 23552  }
 0x191   : > { %s9069_s26 = smov 5   ;;  %s9070_s22 = smov 4   ;;  %vm1732_vm10 = vcmask 31744   ;;  %vm1736_vm11 = vcmask 39936   ;;  %vm2212_vm12 = vcmask 56320   ;;  %vm1792_vm13 = vcmask 261120  }
 0x192   : > { %s7994_s23 = smul.u32 24, %s9558_s2  ;;  %v9587_v42 = vsub.s32 0, %v9584_v40  ;;  %s9071_s21 = smov 1   ;;  %vm9075_vm14 = vmmov 0  }
 0x193   : > { %s9072_s11 = smov 2   ;;  %s9073_s15 = smov 3  }
 0x194   : > { %s1528_s16 = scalar_lea.vmem %s10794_s5, %s7994_s23  ;;  %s10689_s7 = smov 32  }
 0x195   : > { %v1539_v0 = vld [vmem:[%s1528_s16] sm:$0xff]  ;;  %v1541_v1 = vld [vmem:[%s1528_s16 + $0x10] sm:$0xf]  ;;  %v1540_v2 = vld [vmem:[%s1528_s16 + $0x8] sm:$0xff]  ;;  %s9575_s1 = scalar_lea.vmem %s10795_s9, %s7994_s23  ;;  %s10685_s29 = smov 96  }
 0x196   : > { %1567 = vrot.lane.b32.xlu0 %v1539_v0, %s9068_s18  ;;  %v1549_v3 = vrot.slane %v1539_v0, 4  ;;  %1571 = vrot.lane.b32.xlu1 %v1541_v1, %s9068_s18  ;;  %v1552_v4 = vrot.slane %v1541_v1, 4  ;;  %v1550_v5 = vrot.slane %v1540_v2, 4  ;;  %v1542_v18 = vld [vmem:[%s9575_s1] sm:$0xff]  ;;  %s10684_s23 = smov 16   ;;  %s9080_s16 = smov 48  }
 0x197   : > { %s10840_s4 = sld [smem:[#allocation59_spill]]  ;;  %s10844_s8 = sld [smem:[#allocation54_spill]] }
 0x198   : > { %v9565_v6 = vsel %vm1548_vm0, %v1550_v5, %v1552_v4  ;;  %v9568_v7 = vsel %vm1548_vm0, %v1549_v3, %v1550_v5  ;;  %s10845_s9 = sld [smem:[#allocation55_spill]]  ;;  %s10846_s12 = sld [smem:[#allocation57_spill]] }
 0x199   : > { %v1557_v8 = vsel %vm1556_vm1, %v9568_v7, 0.0  ;;  %v1558_v9 = vsel %vm1556_vm1, %v9565_v6, 0.0  ;;  %s10852_s19 = sld [smem:[#allocation62_spill]]  ;;  %s10857_s25 = sld [smem:[#allocation67_spill]] }
 0x19a   : > { %1569 = vrot.lane.b32.xlu0 %v1540_v2, %s9068_s18  ;;  %v1559_v10 = vadd.f32 %v1558_v9, %v1557_v8  ;;  %p10863_p1 = scmp.ne.s32.totalorder %s10774_s28, 0 }
 0x19c   : > { %v1560_v11 = vrot.slane %v1559_v10, 4 }
 0x19e   : > { %v1561_v12 = vadd.f32 %v1560_v11, %v1559_v10  ;;  %1712 = vrot.lane.b32.xlu0 %v1542_v18, %s9069_s26 }
 0x1a0   : > { %v1562_v13 = vrot.slane %v1561_v12, 2 }
 0x1a2   : > { %v1563_v14 = vadd.f32 %v1562_v13, %v1561_v12 }
 0x1a4   : > { %v1564_v15 = vrot.slane %v1563_v14, 1 }
 0x1a6   : > { %v1565_v16 = vadd.f32 %v1564_v15, %v1563_v14 }
 0x1a8   : > { %v1566_v17 = vmax.f32 %v1565_v16, 1.0 }
 0x1aa   : > { %1600 = vrot.lane.b32.xlu1 %v1566_v17, %s9068_s18 }
 0x208   : > { %v1568_v19 = vpop.permute.xlu0 %1567  ;;  %v1572_v20 = vpop.permute.xlu1 %1571 }
 0x209   : > { %v1576_v21 = vmul.f32 %v1568_v19, %v1539_v0  ;;  %v1578_v22 = vmul.f32 %v1572_v20, %v1541_v1 }
 0x20b   : > { %v1582_v24 = vrot.slane %v1576_v21, 4  ;;  %v1585_v25 = vrot.slane %v1578_v22, 4 }
 0x20c   : > { %v1570_v23 = vpop.permute.xlu0 %1569 }
 0x20d   : > { %v1577_v26 = vmul.f32 %v1570_v23, %v1540_v2 }
 0x20f   : > { %v1583_v27 = vrot.slane %v1577_v26, 4 }
 0x211   : > { %v1584_v28 = vsel %vm1548_vm0, %v1582_v24, %v1583_v27  ;;  %v1586_v29 = vsel %vm1548_vm0, %v1583_v27, %v1585_v25 }
 0x212   : > { %v1590_v30 = vsel %vm1589_vm2, %v1584_v28, 0.0  ;;  %v1591_v31 = vsel %vm1589_vm2, %v1586_v29, 0.0 }
 0x213   : > { %v1592_v32 = vadd.f32 %v1591_v31, %v1590_v30  ;;  %v2196_v31 = vld [vmem:[#allocation2] sm:$0x7f] }
 0x214   : > { %7257 = vmatprep.subr.msk.mxu1 %vm2217_vm7, %v2196_v31 }
 0x215   : > { %v1593_v33 = vrot.slane %v1592_v32, 4  ;;  %7258 = vmatpush3.msk.msra.mxu1 %vm2217_vm7, %v2196_v31  ;;  %v8475_v31 = vld [vmem:[%s10766_s3 + $0x8] sm:$0xff]  }
 0x217   : > { %v1594_v34 = vadd.f32 %v1593_v33, %v1592_v32 }
 0x219   : > { %v1595_v35 = vrot.slane %v1594_v34, 2 }
 0x21b   : > { %v1596_v37 = vadd.f32 %v1595_v35, %v1594_v34 }
 0x21c   : > { %v1601_v36 = vpop.permute.xlu1 %1600 }
 0x21d   : > { %8524 = vrcp.f32 %v1601_v36  ;;  %v1597_v39 = vrot.slane %v1596_v37, 1  ;;  %v1543_v36 = vld [vmem:[%s9575_s1 + $0x8] sm:$0xff] }
 0x21f   : > { %v1598_v41 = vadd.f32 %v1597_v39, %v1596_v37  ;;  %v1544_v37 = vld [vmem:[%s9575_s1 + $0x10] sm:$0xf]  ;;  %v1713_v39 = vpop.permute.xlu0 %1712  ;;  %s10812_s1 = sld [smem:[#allocation37_spill]] }
 0x227   : > { %v8525_v43 = vpop.eup %8524 }
 0x228   : > { %v1604_v44 = vmul.f32 %v8525_v43, %v1598_v41 }
 0x22a   : > { %v1608_v45 = vrot.slane %v1604_v44, %v9587_v42 }
 0x22c   : > { %v1609_v46 = vsub.f32 %v1539_v0, %v1608_v45  ;;  %v1610_v47 = vsub.f32 %v1540_v2, %v1608_v45  ;;  %v1611_v48 = vsub.f32 %v1541_v1, %v1608_v45 }
 0x22e   : > { %v1612_v49 = vmul.f32 %v1609_v46, %v1568_v19  ;;  %v1613_v50 = vmul.f32 %v1610_v47, %v1570_v23  ;;  %v1614_v51 = vmul.f32 %v1611_v48, %v1572_v20 }
 0x230   : > { %v1615_v52 = vmul.f32 %v1612_v49, %v1612_v49  ;;  %v1616_v53 = vmul.f32 %v1613_v50, %v1613_v50  ;;  %v1617_v54 = vmul.f32 %v1614_v51, %v1614_v51 }
 0x232   : > { %v1621_v55 = vrot.slane %v1615_v52, 4  ;;  %v1622_v56 = vrot.slane %v1616_v53, 4  ;;  %v1624_v57 = vrot.slane %v1617_v54, 4 }
 0x234   : > { %v1623_v58 = vsel %vm1548_vm0, %v1621_v55, %v1622_v56  ;;  %v1625_v59 = vsel %vm1548_vm0, %v1622_v56, %v1624_v57 }
 0x235   : > { %v1628_v60 = vsel %vm1589_vm2, %v1623_v58, 0.0  ;;  %v1629_v61 = vsel %vm1589_vm2, %v1625_v59, 0.0 }
 0x236   : > { %v1630_v62 = vadd.f32 %v1629_v61, %v1628_v60 }
 0x238   : > { %v1631_v63 = vrot.slane %v1630_v62, 4 }
 0x23a   : > { %v1632_v0 = vadd.f32 %v1631_v63, %v1630_v62 }
 0x23c   : > { %v1633_v1 = vrot.slane %v1632_v0, 2 }
 0x23e   : > { %v1634_v2 = vadd.f32 %v1633_v1, %v1632_v0 }
 0x240   : > { %v1635_v3 = vrot.slane %v1634_v2, 1 }
 0x242   : > { %v1636_v4 = vadd.f32 %v1635_v3, %v1634_v2 }
 0x244   : > { %v1637_v5 = vmul.f32 %v8525_v43, %v1636_v4 }
 0x246   : > { %v1638_v8 = vadd.f32 1e-05, %v1637_v5 }
 0x248   : > { %8526 = vrsqrt.f32 %v1638_v8  ;;  %vm1641_vm3 = vcmp.eq.f32.partialorder %v1638_v8, inf  ;;  %v1644_v11 = vand.u32 2147483648, %v1638_v8  ;;  %vm1643_vm4 = vcmp.eq.f32.partialorder %v1638_v8, 0.0 }
 0x252   : > { %v8527_v9 = vpop.eup %8526 }
 0x253   : > { %v1640_v10 = vmul.f32 %v8527_v9, %v1638_v8 }
 0x255   : > { %v1642_v12 = vsel %vm1641_vm3, %v1638_v8, %v1640_v10 }
 0x256   : > { %v1645_v13 = vsel %vm1643_vm4, %v1644_v11, %v1642_v12  ;;  %v6738_v12 = vld [vmem:[#allocation5] ss:$0 sm:$0xff] }
 0x257   : > { %v1649_v14 = vrot.slane %v1645_v13, %v9587_v42  ;;  %8528 = vlog2.f32 %v1645_v13  ;;  %7995 = vpush %v1645_v13 }
 0x258   : > { %7997 = vpush %v1604_v44 }
 0x259   : > { %8530 = vrcp.f32 %v1649_v14 }
 0x261   : > { %v8529_v15 = vpop.eup %8528 }
 0x262   : > { %v1655_v16 = vmul.f32 0.6931472, %v8529_v15 }
 0x263   : > { %v8531_v17 = vpop.eup %8530 }
 0x264   : > { %v1659_v18 = vrot.slane %v1655_v16, %v9587_v42  ;;  %v1651_v19 = vmul.f32 %v8531_v17, %v1609_v46  ;;  %v1652_v20 = vmul.f32 %v8531_v17, %v1610_v47  ;;  %v1653_v24 = vmul.f32 %v8531_v17, %v1611_v48 }
 0x266   : > { %1706 = vrot.lane.b32.xlu1 %v1659_v18, %s9070_s22  ;;  %v1664_v21 = vrot.slane %v1651_v19, 7  ;;  %v1679_v22 = vrot.slane %v1651_v19, 6  ;;  %v1665_v23 = vrot.slane %v1652_v20, 7  ;;  %v1693_v25 = vrot.slane %v1651_v19, 4  ;;  %s10814_s22 = sld [smem:[#allocation42_spill]] }
 0x267   : > { %v1680_v27 = vrot.slane %v1652_v20, 6  ;;  %v1682_v28 = vrot.slane %v1653_v24, 6  ;;  %v1694_v29 = vrot.slane %v1652_v20, 4  ;;  %v1667_v30 = vrot.slane %v1653_v24, 7 }
 0x268   : > { %1669 = vrot.lane.b32.xlu0 %v1664_v21, %s9071_s21  ;;  %v1666_v26 = vsel %vm1663_vm5, %v1664_v21, %v1665_v23 }
 0x269   : > { %v1683_v32 = vsel %vm1678_vm6, %v1680_v27, %v1682_v28  ;;  %v1668_v33 = vsel %vm1663_vm5, %v1665_v23, %v1667_v30  ;;  %v1695_v34 = vsel %vm1548_vm0, %v1693_v25, %v1694_v29  ;;  %v1681_v35 = vsel %vm1678_vm6, %v1679_v22, %v1680_v27 }
 0x26a   : > { %1684 = vrot.lane.b32.xlu1 %v1679_v22, %s9072_s11  ;;  %v10695_v30 = vmov 0.0  }
 0x26b   : > { %7262 = vmatprep.subr.bf16.mxu0 %v10695_v30  ;;  %7266 = vmatprep.mubr.msk.bf16.mxu0 %vm9075_vm14, %v10695_v30 }
 0x26c   : > { %1696 = vrot.lane.b32.xlu0 %v1693_v25, %s9073_s15 }
 0x26e   : > { %1671 = vrot.lane.b32.xlu1 %v1666_v26, %s9071_s21 }
 0x270   : > { %1700 = vrot.lane.b32.xlu0 %v1694_v29, %s9073_s15  ;;  %v8474_v29 = vld [vmem:[%s10766_s3] sm:$0xff]  }
 0x271   : > { %7263 = vmatpush3.bf16.msra.mxu0 %v8474_v29 }
 0x272   : > { %1688 = vrot.lane.b32.xlu1 %v1683_v32, %s9072_s11  ;;  %7264 = vmatprep.subr.bf16.mxu0 %v10695_v30  ;;  %v9635_v32 = vand.u32 127, %v1605_v38 }
 0x274   : > { %1673 = vrot.lane.b32.xlu0 %v1668_v33, %s9071_s21  ;;  %vm1898_vm15 = vcmp.ge.s32.totalorder %v9635_v32, 8  ;;  %vm10681_vm1 = vcmp.lt.s32.totalorder %v9635_v32, 8  ;;  %vm1957_vm4 = vcmp.lt.s32.totalorder %v9635_v32, 24  ;;  %vm1998_vm5 = vcmp.ge.s32.totalorder %v9635_v32, 24  ;;  %s10815_s21 = sld [smem:[#allocation43_spill]] }
 0x275   : > { %7265 = vmatpush3.bf16.msra.mxu0 %v8475_v31  ;;  %v9650_v38 = vsel %vm10681_vm1, 1.0, %v10695_v30  ;;  %vm2007_vm7 = vcmp.lt.s32.totalorder %v9635_v32, 32 }
 0x276   : > { %1698 = vrot.lane.b32.xlu1 %v1695_v34, %s9073_s15  ;;  %s10818_s15 = sld [smem:[#allocation46_spill]] }
 0x278   : > { %1686 = vrot.lane.b32.xlu0 %v1681_v35, %s9072_s11  ;;  %v9662_v35 = vpack.i.bf16 %v9650_v38, %v9650_v38  ;;  %s10816_s11 = sld [smem:[#allocation58_spill]] }
 0x27a   : > { %1714 = vrot.lane.b32.xlu1 %v1543_v36, %s9069_s26 }
 0x27c   : > { %1716 = vrot.lane.b32.xlu0 %v1544_v37, %s9069_s26  ;;  %s10813_s26 = sld [smem:[#allocation40_spill]] }
 0x2d8   : > { %v1707_v41 = vpop.permute.xlu1 %1706 }
 0x2da   : > { %v1670_v43 = vpop.permute.xlu0 %1669 }
 0x2db   : > { %v1721_v46 = vsel %vm1589_vm2, %v1651_v19, %v1670_v43 }
 0x2dc   : > { %v1685_v44 = vpop.permute.xlu1 %1684 }
 0x2dd   : > { %v1725_v49 = vsel %vm10683_vm8, %v1721_v46, %v1685_v44 }
 0x2de   : > { %v1697_v45 = vpop.permute.xlu0 %1696 }
 0x2df   : > { %v1729_v51 = vsel %vm1728_vm9, %v1725_v49, %v1697_v45 }
 0x2e0   : > { %v1672_v47 = vpop.permute.xlu1 %1671  ;;  %v1733_v56 = vsel %vm1732_vm10, %v1729_v51, %v1707_v41 }
 0x2e1   : > { %v1722_v57 = vsel %vm1589_vm2, %v1652_v20, %v1672_v47  ;;  %v1737_v63 = vsel %vm1736_vm11, %v1733_v56, %v1713_v39  ;;  %v6743_v56 = vld [vmem:[#allocation8] ss:$0 sm:$0xff] }
 0x2e2   : > { %v1701_v48 = vpop.permute.xlu0 %1700  ;;  %v2207_v8 = vrot.slane %v1737_v63, 4 }
 0x2e4   : > { %v1689_v50 = vpop.permute.xlu1 %1688 }
 0x2e6   : > { %v1674_v52 = vpop.permute.xlu0 %1673 }
 0x2e7   : > { %v1723_v53 = vsel %vm1589_vm2, %v1653_v24, %v1674_v52  ;;  %vm1948_vm2 = vcmp.ge.s32.totalorder %v9635_v32, 16 }
 0x2e8   : > { %v1727_v54 = vsel %vm10683_vm8, %v1723_v53, %v1689_v50  ;;  %v1699_v55 = vpop.permute.xlu1 %1698  ;;  %v6742_v53 = vld [vmem:[#allocation7] ss:$0 sm:$0xff] }
 0x2e9   : > { %v1731_v60 = vsel %vm1728_vm9, %v1727_v54, %v1701_v48 }
 0x2ea   : > { %v1687_v58 = vpop.permute.xlu0 %1686  ;;  %v1735_v3 = vsel %vm1732_vm10, %v1731_v60, %v1707_v41 }
 0x2eb   : > { %v1726_v59 = vsel %vm10683_vm8, %v1722_v57, %v1687_v58 }
 0x2ec   : > { %v1730_v61 = vsel %vm1728_vm9, %v1726_v59, %v1699_v55  ;;  %v1715_v62 = vpop.permute.xlu1 %1714  ;;  %vm9666_vm9 = vmand %vm1948_vm2, %vm1957_vm4  ;;  %vm1794_vm4 = vcmask 392192  }
 0x2ed   : > { %v1734_v0 = vsel %vm1732_vm10, %v1730_v61, %v1707_v41  ;;  %v9677_v39 = vsel %vm9666_vm9, 1.0, %v10695_v30  ;;  %vm9681_vm10 = vmand %vm1998_vm5, %vm2007_vm7  ;;  %vm2610_vm5 = vcmask 523264  }
 0x2ee   : > { %v1738_v1 = vsel %vm1736_vm11, %v1734_v0, %v1715_v62  ;;  %v1717_v2 = vpop.permute.xlu0 %1716  ;;  %v9690_v43 = vsel %vm9681_vm10, 1.0, %v10695_v30  ;;  %v9696_v44 = vpack.i.bf16 %v9677_v39, %v9677_v39 }
 0x2ef   : > { %v2208_v4 = vrot.slane %v1738_v1, 4  ;;  %v1739_v5 = vsel %vm1736_vm11, %v1735_v3, %v1717_v2  ;;  %v9700_v45 = vpack.i.bf16 %v9690_v43, %v9690_v43  ;;  %v6744_v1 = vld [vmem:[#allocation10] ss:$0 sm:$0xff]  ;;  %vm9755_vm11 = vmpackc.low %vm1792_vm13, %vm1792_vm13 }
 0x2f0   : > { %v2210_v9 = vrot.slane %v1739_v5, 4 }
 0x2f1   : > { %v2209_v10 = vsel %vm1548_vm0, %v2207_v8, %v2208_v4 }
 0x2f2   : > { %7259 = vmatprep.mubr.msk.f32.mxu1 %vm2212_vm12, %v2209_v10  ;;  %v2211_v11 = vsel %vm1548_vm0, %v2208_v4, %v2210_v9  ;;  %vm1907_vm0 = vcmp.lt.s32.totalorder %v9635_v32, 16 }
 0x2f3   : > { %7260 = vmatmul.mubr.msk.f32.vlgmr.msra.gmra.mrb[0].mxu1 %vm2212_vm12, %v2211_v11  ;;  %vm9643_vm3 = vmand %vm1898_vm15, %vm1907_vm0  ;;  %vm10682_vm15 = vcmask 130048  }
 0x2f4   : > { %v9658_v34 = vsel %vm9643_vm3, 1.0, %v10695_v30 }
 0x2f5   : > { %v9672_v37 = vpack.i.bf16 %v9658_v34, %v9658_v34 }
 0x3c6   : > { %v7261_v13 = vpop.f32.mrb[0].mxu1 }
 0x3c7   : > { %v9616_v14 = vadd.f32 %v7261_v13, %v6738_v12  ;;  %v2287_v15 = vpop.f32.mrb[1].mxu1 }
 0x3c8   : > { %v9618_v16 = vadd.f32 %v6738_v12, %v2287_v15 }
 0x3c9   : > { %v2301_v17 = vsel %vm1792_vm13, %v9616_v14, 0.0 }
 0x3ca   : > { %2302 = vadd.xlane.f32.xlu0 %v2301_v17  ;;  %v2298_v18 = vsel %vm1792_vm13, %v9618_v16, 0.0 }
 0x3cb   : > { %2299 = vadd.xlane.f32.xlu1 %v2298_v18 }
 0x457   : > { %v2303_v19 = vpop.xlane.xlu0 %2302 }
 0x458   : > { %v2306_v20 = vmul.f32 0.03125, %v2303_v19  ;;  %v2300_v21 = vpop.xlane.xlu1 %2299 }
 0x459   : > { %v2305_v22 = vmul.f32 0.03125, %v2300_v21 }
 0x45a   : > { %v2308_v23 = vsub.f32 %v9616_v14, %v2306_v20 }
 0x45b   : > { %v2307_v24 = vsub.f32 %v9618_v16, %v2305_v22 }
 0x45c   : > { %v2310_v25 = vmul.f32 %v2308_v23, %v2308_v23 }
 0x45d   : > { %v2309_v26 = vmul.f32 %v2307_v24, %v2307_v24 }
 0x45e   : > { %v2314_v27 = vsel %vm1792_vm13, %v2310_v25, 0.0 }
 0x45f   : > { %2315 = vadd.xlane.f32.xlu1 %v2314_v27  ;;  %v2311_v28 = vsel %vm1792_vm13, %v2309_v26, 0.0 }
 0x460   : > { %2312 = vadd.xlane.f32.xlu0 %v2311_v28 }
 0x470   : > { %8220 = vrot.lane.b32.xlu1 %v9672_v37, %s10689_s7 }
 0x474   : > { %8225 = vrot.lane.b32.xlu1 %v9696_v44, %s10689_s7 }
 0x476   : > { %8215 = vrot.lane.b32.xlu0 %v9662_v35, %s10689_s7 }
 0x47a   : > { %8230 = vrot.lane.b32.xlu0 %v9700_v45, %s10689_s7 }
 0x4ec   : > { %v2316_v46 = vpop.xlane.xlu1 %2315 }
 0x4ed   : > { %v2318_v47 = vmul.f32 0.03125, %v2316_v46  ;;  %v2313_v48 = vpop.xlane.xlu0 %2312 }
 0x4ee   : > { %v2317_v49 = vmul.f32 0.03125, %v2313_v48 }
 0x4ef   : > { %v2320_v50 = vadd.f32 1e-05, %v2318_v47 }
 0x4f0   : > { %v2319_v51 = vadd.f32 1e-05, %v2317_v49  ;;  %v8221_v0 = vpop.permute.xlu1 %8220 }
 0x4f1   : > { %8532 = vrsqrt.f32 %v2320_v50  ;;  %v8216_v63 = vpop.permute.xlu0 %8215  ;;  %v9711_v8 = vunpack.i.h.bf16 %v8221_v0  ;;  %v9713_v9 = vunpack.i.l.bf16 %v8221_v0 }
 0x4f2   : > { %8534 = vrsqrt.f32 %v2319_v51  ;;  %v9707_v2 = vunpack.i.h.bf16 %v8216_v63  ;;  %v9709_v5 = vunpack.i.l.bf16 %v8216_v63 }
 0x4f4   : > { %v8226_v11 = vpop.permute.xlu1 %8225 }
 0x4f5   : > { %v8231_v3 = vpop.permute.xlu0 %8230  ;;  %v9719_v17 = vunpack.i.h.bf16 %v8226_v11  ;;  %v9727_v21 = vunpack.i.l.bf16 %v8226_v11 }
 0x4f6   : > { %v9717_v15 = vunpack.i.h.bf16 %v8231_v3  ;;  %v9725_v20 = vunpack.i.l.bf16 %v8231_v3 }
 0x4fb   : > { %v8533_v52 = vpop.eup %8532 }
 0x4fc   : > { %v8535_v54 = vpop.eup %8534  ;;  %v2324_v55 = vmul.f32 %v8533_v52, %v2308_v23 }
 0x4fd   : > { %v2323_v57 = vmul.f32 %v8535_v54, %v2307_v24 }
 0x4fe   : > { %v2332_v58 = vmul.f32 %v6742_v53, %v2324_v55 }
 0x4ff   : > { %v2331_v59 = vmul.f32 %v6742_v53, %v2323_v57 }
 0x500   : > { %v2340_v60 = vadd.f32 %v6743_v56, %v2332_v58 }
 0x501   : > { %v2339_v61 = vadd.f32 %v6743_v56, %v2331_v59 }
 0x503   : > { %v2346_v62 = vpack.c.bf16 %v2340_v60, %v2339_v61 }
 0x505   : > { %7267 = vmatmul.mubr.msk.bf16.vlgmr.msra.gmra.mrb[0].mxu0 %vm1792_vm13, %v2346_v62 }
 0x5d8   : > { %v2402_v4 = vpop.f32.mrb[0].mxu0 }
 0x5d9   : > { %v9715_v10 = vadd.f32 %v6744_v1, %v2402_v4  ;;  %v7268_v12 = vpop.f32.mrb[1].mxu0  ;;  %v9078_v4 = vmov -1e+09  }
 0x5da   : > { %v2405_v13 = vpop.f32.mrb[2].mxu0 }
 0x5db   : > { %v9721_v18 = vadd.f32 %v6744_v1, %v2405_v13  ;;  %v7269_v19 = vpop.f32.mrb[3].mxu0  ;;  %7286 = vmatprep.mubr.msk.f32.mxu0 %vm1792_vm13, %v9715_v10  ;;  %v2441_v22 = vmul.f32 %v9709_v5, %v9715_v10  ;;  %v2443_v24 = vmul.f32 %v9713_v9, %v9715_v10  ;;  %v2445_v31 = vmul.f32 %v9727_v21, %v9715_v10 }
 0x5dc   : > { %v2447_v46 = vmul.f32 %v9725_v20, %v9715_v10 }
 0x5dd   : > { %v2442_v23 = vmul.f32 %v9707_v2, %v9721_v18  ;;  %v2444_v25 = vmul.f32 %v9711_v8, %v9721_v18  ;;  %v2446_v28 = vmul.f32 %v9719_v17, %v9721_v18  ;;  %v2448_v29 = vmul.f32 %v9717_v15, %v9721_v18 }
 0x5df   : > { %v8234_v26 = vpack.i.bf16 %v2442_v23, %v2441_v22  ;;  %v8239_v27 = vpack.i.bf16 %v2444_v25, %v2443_v24  ;;  %v8244_v47 = vpack.i.bf16 %v2446_v28, %v2445_v31  ;;  %v8249_v48 = vpack.i.bf16 %v2448_v29, %v2447_v46 }
 0x5e1   : > { %8235 = vrot.lane.b32.xlu1 %v8234_v26, %s10685_s29  ;;  %8240 = vrot.lane.b32.xlu0 %v8239_v27, %s10685_s29 }
 0x5e5   : > { %8245 = vrot.lane.b32.xlu1 %v8244_v47, %s10685_s29  ;;  %8250 = vrot.lane.b32.xlu0 %v8249_v48, %s10685_s29 }
 0x5e9   : > { %1740 = vrot.lane.b32.xlu1 %v9568_v7, %s9068_s18  ;;  %1742 = vrot.lane.b32.xlu0 %v9565_v6, %s9068_s18  ;;  %s10687_s18 = smov 64  }
 0x653   : > { %v8236_v49 = vpop.permute.xlu1 %8235  ;;  %v8241_v50 = vpop.permute.xlu0 %8240 }
 0x654   : > { %v8238_v51 = vunpack.i.h.bf16 %v8236_v49  ;;  %v8237_v52 = vunpack.i.l.bf16 %v8236_v49  ;;  %v8243_v53 = vunpack.i.h.bf16 %v8241_v50  ;;  %v8242_v54 = vunpack.i.l.bf16 %v8241_v50  ;;  %v6964_v50 = vld [vmem:[%s10846_s12 + $0x1] ss:$0 sm:$0xff] }
 0x656   : > { %v7756_v56 = vpack.c.bf16 %v8238_v51, %v8237_v52  ;;  %v7762_v58 = vpack.c.bf16 %v8243_v53, %v8242_v54 }
 0x657   : > { %v8246_v57 = vpop.permute.xlu1 %8245  ;;  %v8251_v7 = vpop.permute.xlu0 %8250 }
 0x658   : > { %7758 = vmatprep.subr.msk.bf16.mxu0 %vm9755_vm11, %v7756_v56  ;;  %v8248_v59 = vunpack.i.h.bf16 %v8246_v57  ;;  %v8247_v60 = vunpack.i.l.bf16 %v8246_v57  ;;  %v8253_v63 = vunpack.i.h.bf16 %v8251_v7  ;;  %v8252_v0 = vunpack.i.l.bf16 %v8251_v7 }
 0x659   : > { %7761 = vmatpush3.bf16.xpose.msk.msra.mxu0 %vm9755_vm11, %v7756_v56 }
 0x65a   : > { %7764 = vmatprep.subr.msk.bf16.mxu0 %vm9755_vm11, %v7762_v58  ;;  %v7768_v62 = vpack.c.bf16 %v8248_v59, %v8247_v60  ;;  %v7774_v1 = vpack.c.bf16 %v8253_v63, %v8252_v0 }
 0x65b   : > { %v1741_v6 = vpop.permute.xlu1 %1740  ;;  %v1743_v61 = vpop.permute.xlu0 %1742 }
 0x65c   : > { %1746 = vxpose.xlu1.b32.start [1/2] (short) (narrow) %v1741_v6, 8 }
 0x660   : > { %1747 = vxpose.xlu1.b32.end [2/2] (short) (narrow) %v1743_v61, 8 }
 0x661   : > { %7767 = vmatpush3.bf16.xpose.msk.msra.mxu0 %vm9755_vm11, %v7762_v58 }
 0x662   : > { %7770 = vmatprep.subr.msk.bf16.mxu0 %vm9755_vm11, %v7768_v62 }
 0x669   : > { %7773 = vmatpush3.bf16.xpose.msk.msra.mxu0 %vm9755_vm11, %v7768_v62 }
 0x66a   : > { %7776 = vmatprep.subr.msk.bf16.mxu0 %vm9755_vm11, %v7774_v1 }
 0x671   : > { %7779 = vmatpush3.bf16.xpose.msk.msra.mxu0 %vm9755_vm11, %v7774_v1 }
 0x672   : > { %7327 = vmatprep.subr.bf16.mxu0 %v10695_v30 }
 0x678   : > { %7287 = vmatmul.mubr.msk.f32.vlgmr.msra.gmra.mrb[4].mxu0 %vm1792_vm13, %v9721_v18 }
 0x679   : > { %7331 = vmatprep.mubr.msk.bf16.mxu0 %vm9075_vm14, %v10695_v30 }
 0x6dc   : > { %v1762_v3 = vpop.trf.xlu1 }
 0x6dd   : > { %vm1778_vm12 = vcmp.gt.f32.partialorder %v1762_v3, 0.0 }
 0x6de   : > { %v1779_v11 = vsel %vm1778_vm12, 0.0, %v9078_v4  ;;  %vm9795_vm12 = vmpackc.low %vm1907_vm0, %vm1907_vm0  ;;  %vm2064_vm0 = vcmp.ge.s32.totalorder %v9635_v32, 32 }
 0x6df   : > { %1781 = vrot.lane.b32.xlu0 %v1779_v11, %s10684_s23  ;;  %s10819_s23 = sld [smem:[#allocation30_spill]] }
 0x6e3   : > { %1784 = vrot.lane.b32.xlu0 %v1779_v11, %s10689_s7  ;;  %s10822_s7 = sld [smem:[#allocation50_spill]] }
 0x6e7   : > { %1787 = vrot.lane.b32.xlu0 %v1779_v11, %s9080_s16  ;;  %s10817_s16 = smov %s10816_s11 }
 0x74b   : > { %v7288_v12 = vpop.f32.mrb[4].mxu0 }
 0x74c   : > { %v2593_v13 = vpop.f32.mrb[5].mxu0  ;;  %v2603_v27 = vmul.f32 0.35355338, %v7288_v12 }
 0x74d   : > { %v2602_v28 = vmul.f32 0.35355338, %v2593_v13 }
 0x751   : > { %v1782_v19 = vpop.permute.xlu0 %1781 }
 0x752   : > { %v1791_v23 = vsel %vm10682_vm15, %v1779_v11, %v1782_v19  ;;  %vm2073_vm15 = vcmp.lt.s32.totalorder %v9635_v32, 48 }
 0x753   : > { %vm2078_vm8 = vmand %vm2064_vm0, %vm2073_vm15  ;;  %vm2099_vm15 = vcmp.lt.s32.totalorder %v9635_v32, 64  ;;  %vm10821_vm0 = vcmask 15360  }
 0x755   : > { %v1785_v22 = vpop.permute.xlu0 %1784 }
 0x756   : > { %v1793_v24 = vsel %vm1792_vm13, %v1791_v23, %v1785_v22 }
 0x759   : > { %v1788_v25 = vpop.permute.xlu0 %1787 }
 0x75a   : > { %v1795_v26 = vsel %vm1794_vm4, %v1793_v24, %v1788_v25  ;;  %vm2050_vm4 = vmand %vm1948_vm2, %vm2007_vm7  ;;  %vm2090_vm7 = vcmp.ge.s32.totalorder %v9635_v32, 48 }
 0x75b   : > { %v9786_v29 = vrot.slane %v1795_v26, %v9587_v42  ;;  %v10693_v42 = vmov 1.0|1.0   ;;  %vm9809_vm1 = vmpackc.low %vm2050_vm4, %vm2050_vm4 }
 0x75c   : > { %7781 = vmatprep.subr.msk.bf16.mxu1 %vm9795_vm12, %v10693_v42  ;;  %vm9823_vm2 = vmpackc.low %vm2078_vm8, %vm2078_vm8 }
 0x75d   : > { %v2609_v31 = vadd.f32 %v9786_v29, %v2603_v27  ;;  %v2608_v46 = vadd.f32 %v9786_v29, %v2602_v28  ;;  %7783 = vmatpush3.bf16.msk.msra.mxu1 %vm9795_vm12, %v10693_v42  ;;  %vm2106_vm4 = vmand %vm2090_vm7, %vm2099_vm15  ;;  %vm1812_vm7 = vcmask 64512   ;;  %vm10833_vm15 = vcmask 130048  }
 0x75e   : > { %7785 = vmatprep.subr.msk.bf16.mxu1 %vm9809_vm1, %v10693_v42  ;;  %vm9837_vm8 = vmpackc.low %vm2106_vm4, %vm2106_vm4  ;;  %vm1815_vm4 = vcmask 195584  }
 0x75f   : > { %v2614_v47 = vsel %vm2610_vm5, %v2609_v31, -inf  ;;  %v2611_v48 = vsel %vm2610_vm5, %v2608_v46, -inf }
 0x760   : > { %2615 = vmax.xlane.f32.xlu1 %v2614_v47  ;;  %2612 = vmax.xlane.f32.xlu0 %v2611_v48 }
 0x761   : > { %7787 = vmatpush3.bf16.msk.msra.mxu1 %vm9809_vm1, %v10693_v42 }
 0x762   : > { %7789 = vmatprep.subr.msk.bf16.mxu1 %vm9823_vm2, %v10693_v42 }
 0x765   : > { %7791 = vmatpush3.bf16.msk.msra.mxu1 %vm9823_vm2, %v10693_v42 }
 0x766   : > { %7793 = vmatprep.subr.msk.bf16.mxu1 %vm9837_vm8, %v10693_v42 }
 0x769   : > { %7795 = vmatpush3.bf16.msk.msra.mxu1 %vm9837_vm8, %v10693_v42 }
 0x776   : > { %8255 = vrot.lane.b32.xlu0 %v9662_v35, %s10687_s18 }
 0x77a   : > { %8260 = vrot.lane.b32.xlu0 %v9672_v37, %s10687_s18 }
 0x77e   : > { %8265 = vrot.lane.b32.xlu0 %v9696_v44, %s10687_s18 }
 0x782   : > { %8270 = vrot.lane.b32.xlu0 %v9700_v45, %s10687_s18 }
 0x7ed   : > { %v2616_v53 = vpop.xlane.xlu1 %2615  ;;  %v2613_v54 = vpop.xlane.xlu0 %2612 }
 0x7ee   : > { %v2618_v56 = vsub.f32 %v2609_v31, %v2616_v53  ;;  %v2617_v57 = vsub.f32 %v2608_v46, %v2613_v54 }
 0x7f0   : > { %v2621_v58 = vmul.f32 1.442695, %v2618_v56  ;;  %v2619_v7 = vmul.f32 1.442695, %v2617_v57  ;;  %v8476_v56 = vld [vmem:[%s10812_s1] sm:$0xff]  }
 0x7f1   : > { %v8256_v6 = vpop.permute.xlu0 %8255  ;;  %7328 = vmatpush3.bf16.msra.mxu0 %v8476_v56 }
 0x7f2   : > { %8536 = vpow2.f32 %v2621_v58  ;;  %v9851_v59 = vunpack.i.h.bf16 %v8256_v6  ;;  %v9853_v60 = vunpack.i.l.bf16 %v8256_v6  ;;  %7329 = vmatprep.subr.bf16.mxu0 %v10695_v30 }
 0x7f3   : > { %8538 = vpow2.f32 %v2619_v7 }
 0x7f4   : > { %v2473_v61 = vmul.f32 %v9853_v60, %v9715_v10  ;;  %v2474_v62 = vmul.f32 %v9851_v59, %v9721_v18 }
 0x7f5   : > { %v8261_v63 = vpop.permute.xlu0 %8260 }
 0x7f6   : > { %v9859_v0 = vunpack.i.h.bf16 %v8261_v63  ;;  %v9861_v1 = vunpack.i.l.bf16 %v8261_v63  ;;  %v8274_v3 = vpack.i.bf16 %v2474_v62, %v2473_v61 }
 0x7f8   : > { %8275 = vrot.lane.b32.xlu0 %v8274_v3, %s10687_s18  ;;  %v2475_v11 = vmul.f32 %v9861_v1, %v9715_v10  ;;  %v2476_v12 = vmul.f32 %v9859_v0, %v9721_v18 }
 0x7f9   : > { %v8266_v13 = vpop.permute.xlu0 %8265 }
 0x7fa   : > { %v9868_v19 = vunpack.i.h.bf16 %v8266_v13  ;;  %v9870_v22 = vunpack.i.l.bf16 %v8266_v13  ;;  %v8279_v23 = vpack.i.bf16 %v2476_v12, %v2475_v11 }
 0x7fc   : > { %v8537_v24 = vpop.eup %8536  ;;  %8280 = vrot.lane.b32.xlu1 %v8279_v23, %s10687_s18  ;;  %v2477_v25 = vmul.f32 %v9870_v22, %v9715_v10  ;;  %v2478_v26 = vmul.f32 %v9868_v19, %v9721_v18 }
 0x7fd   : > { %v8539_v27 = vpop.eup %8538  ;;  %v8271_v28 = vpop.permute.xlu0 %8270 }
 0x7fe   : > { %7305 = vmatprep.mubr.msk.f32.mxu1 %vm2610_vm5, %v8539_v27  ;;  %v9878_v31 = vunpack.i.h.bf16 %v8271_v28  ;;  %v9880_v46 = vunpack.i.l.bf16 %v8271_v28  ;;  %v8284_v47 = vpack.i.bf16 %v2478_v26, %v2477_v25 }
 0x7ff   : > { %7306 = vmatmul.mubr.msk.f32.vlgmr.msra.gmra.mrb[2].mxu1 %vm2610_vm5, %v8537_v24 }
 0x800   : > { %8285 = vrot.lane.b32.xlu0 %v8284_v47, %s10687_s18  ;;  %v2479_v48 = vmul.f32 %v9880_v46, %v9715_v10  ;;  %v2480_v53 = vmul.f32 %v9878_v31, %v9721_v18 }
 0x802   : > { %v8289_v54 = vpack.i.bf16 %v2480_v53, %v2479_v48 }
 0x804   : > { %8290 = vrot.lane.b32.xlu0 %v8289_v54, %s10687_s18 }
 0x86a   : > { %v8276_v57 = vpop.permute.xlu0 %8275 }
 0x86b   : > { %v8278_v58 = vunpack.i.h.bf16 %v8276_v57  ;;  %v8277_v7 = vunpack.i.l.bf16 %v8276_v57  ;;  %v8477_v57 = vld [vmem:[%s10812_s1 + $0x8] sm:$0xff]  }
 0x86c   : > { %7330 = vmatpush3.bf16.msra.mxu0 %v8477_v57  ;;  %v8479_v57 = vld [vmem:[%s10813_s26 + $0x8] sm:$0xff]  }
 0x86d   : > { %v7796_v6 = vpack.c.bf16 %v8278_v58, %v8277_v7  ;;  %7343 = vmatprep.subr.bf16.mxu0 %v10695_v30 }
 0x86e   : > { %v8281_v61 = vpop.permute.xlu1 %8280 }
 0x86f   : > { %v8283_v62 = vunpack.i.h.bf16 %v8281_v61  ;;  %v8282_v63 = vunpack.i.l.bf16 %v8281_v61  ;;  %7797 = vmatprep.subr.bf16.mxu1 %v7796_v6 }
 0x870   : > { %7799 = vmatpush3.bf16.msra.mxu1 %v7796_v6 }
 0x871   : > { %v7800_v10 = vpack.c.bf16 %v8283_v62, %v8282_v63 }
 0x872   : > { %v8286_v3 = vpop.permute.xlu0 %8285 }
 0x873   : > { %v8288_v11 = vunpack.i.h.bf16 %v8286_v3  ;;  %v8287_v18 = vunpack.i.l.bf16 %v8286_v3  ;;  %7801 = vmatprep.subr.bf16.mxu1 %v7800_v10 }
 0x874   : > { %7803 = vmatpush3.bf16.msra.mxu1 %v7800_v10 }
 0x875   : > { %v7804_v12 = vpack.c.bf16 %v8288_v11, %v8287_v18 }
 0x876   : > { %v8291_v13 = vpop.permute.xlu0 %8290 }
 0x877   : > { %v8293_v23 = vunpack.i.h.bf16 %v8291_v13  ;;  %v8292_v25 = vunpack.i.l.bf16 %v8291_v13  ;;  %7805 = vmatprep.subr.bf16.mxu1 %v7804_v12 }
 0x878   : > { %7807 = vmatpush3.bf16.msra.mxu1 %v7804_v12 }
 0x879   : > { %v7808_v26 = vpack.c.bf16 %v8293_v23, %v8292_v25 }
 0x87b   : > { %7809 = vmatprep.subr.bf16.mxu1 %v7808_v26 }
 0x87c   : > { %7811 = vmatpush3.bf16.msra.mxu1 %v7808_v26 }
 0x87d   : > { %7335 = vmatprep.subr.bf16.mxu1 %v10695_v30 }
 0x8d2   : > { %v7307_v28 = vpop.f32.mrb[2].mxu1 }
 0x8d3   : > { %8540 = vrcp.f32 %v7307_v28  ;;  %v2695_v47 = vpop.f32.mrb[3].mxu1 }
 0x8d4   : > { %8542 = vrcp.f32 %v2695_v47 }
 0x8dd   : > { %v8541_v48 = vpop.eup %8540 }
 0x8de   : > { %v8543_v53 = vpop.eup %8542  ;;  %v2707_v56 = vmul.f32 %v8541_v48, %v8537_v24  ;;  %v6770_v24 = vld [vmem:[#allocation11] ss:$0 sm:$0xff] }
 0x8df   : > { %v2706_v54 = vmul.f32 %v8543_v53, %v8539_v27 }
 0x8e1   : > { %7324 = vmatprep.mubr.msk.f32.mxu1 %vm2610_vm5, %v2706_v54 }
 0x8e2   : > { %7325 = vmatmul.mubr.msk.f32.vlgmr.msra.gmra.mrb[4].mxu1 %vm2610_vm5, %v2707_v56  ;;  %v8478_v56 = vld [vmem:[%s10813_s26] sm:$0xff]  }
 0x8e3   : > { %7339 = vmatprep.mubr.msk.bf16.mxu1 %vm9075_vm14, %v10695_v30  ;;  %7336 = vmatpush3.bf16.msra.mxu1 %v8478_v56 }
 0x8e4   : > { %7337 = vmatprep.subr.bf16.mxu1 %v10695_v30 }
 0x8e7   : > { %7338 = vmatpush3.bf16.msra.mxu1 %v8479_v57 }
 0x8e8   : > { %7355 = vmatprep.subr.bf16.mxu1 %v10695_v30 }
 0x9b5   : > { %v7326_v58 = vpop.f32.mrb[4].mxu1 }
 0x9b6   : > { %v2812_v7 = vpop.f32.mrb[5].mxu1 }
 0x9b7   : > { %v2826_v6 = vpack.c.bf16 %v7326_v58, %v2812_v7 }
 0x9b9   : > { %7332 = vmatmul.mubr.msk.bf16.vlgmr.msra.gmra.mrb[8].mxu0 %vm1792_vm13, %v2826_v6 }
 0x9ba   : > { %7351 = vmatprep.mubr.msk.bf16.mxu0 %vm9075_vm14, %v10695_v30 }
 0xa8c   : > { %v2882_v27 = vpop.f32.mrb[8].mxu0 }
 0xa8d   : > { %v2883_v61 = vadd.f32 %v6770_v24, %v2882_v27  ;;  %v7333_v62 = vpop.f32.mrb[9].mxu0 }
 0xa8e   : > { %v2885_v63 = vpop.f32.mrb[10].mxu0 }
 0xa8f   : > { %v9902_v10 = vadd.f32 %v2883_v61, %v9618_v16  ;;  %v2886_v3 = vadd.f32 %v6770_v24, %v2885_v63  ;;  %v7334_v11 = vpop.f32.mrb[11].mxu0 }
 0xa91   : > { %v9905_v18 = vadd.f32 %v2886_v3, %v9616_v14  ;;  %v2893_v12 = vsel %vm1792_vm13, %v9902_v10, 0.0  ;;  %v6774_v3 = vld [vmem:[#allocation13] ss:$0 sm:$0xff] }
 0xa92   : > { %2894 = vadd.xlane.f32.xlu0 %v2893_v12 }
 0xa93   : > { %v2896_v13 = vsel %vm1792_vm13, %v9905_v18, 0.0 }
 0xa94   : > { %2897 = vadd.xlane.f32.xlu1 %v2896_v13 }
 0xb1f   : > { %v2895_v23 = vpop.xlane.xlu0 %2894 }
 0xb20   : > { %v2899_v25 = vmul.f32 0.03125, %v2895_v23  ;;  %v6775_v23 = vld [vmem:[#allocation14] ss:$0 sm:$0xff] }
 0xb21   : > { %v2898_v26 = vpop.xlane.xlu1 %2897 }
 0xb22   : > { %v2901_v16 = vsub.f32 %v9902_v10, %v2899_v25  ;;  %v2900_v28 = vmul.f32 0.03125, %v2898_v26 }
 0xb24   : > { %v2902_v47 = vsub.f32 %v9905_v18, %v2900_v28  ;;  %v2903_v14 = vmul.f32 %v2901_v16, %v2901_v16 }
 0xb26   : > { %v2905_v48 = vsel %vm1792_vm13, %v2903_v14, 0.0  ;;  %v2904_v53 = vmul.f32 %v2902_v47, %v2902_v47 }
 0xb27   : > { %2906 = vadd.xlane.f32.xlu0 %v2905_v48  ;;  %v8480_v48 = vld [vmem:[%s10814_s22] sm:$0xff]  }
 0xb28   : > { %v2908_v54 = vsel %vm1792_vm13, %v2904_v53, 0.0  ;;  %7344 = vmatpush3.bf16.msra.mxu0 %v8480_v48  ;;  %v8483_v53 = vld [vmem:[%s10814_s22 + $0x18] sm:$0xff]  }
 0xb29   : > { %7345 = vmatprep.subr.bf16.mxu0 %v10695_v30 }
 0xb2b   : > { %2909 = vadd.xlane.f32.xlu0 %v2908_v54  ;;  %v6776_v54 = vld [vmem:[#allocation16] ss:$0 sm:$0xff] }
 0xbb4   : > { %v2907_v58 = vpop.xlane.xlu0 %2906 }
 0xbb5   : > { %v2911_v7 = vmul.f32 0.03125, %v2907_v58 }
 0xbb7   : > { %v2913_v6 = vadd.f32 1e-05, %v2911_v7 }
 0xbb8   : > { %v2910_v24 = vpop.xlane.xlu0 %2909 }
 0xbb9   : > { %8544 = vrsqrt.f32 %v2913_v6  ;;  %v2912_v27 = vmul.f32 0.03125, %v2910_v24 }
 0xbbb   : > { %v2914_v61 = vadd.f32 1e-05, %v2912_v27 }
 0xbbd   : > { %8546 = vrsqrt.f32 %v2914_v61 }
 0xbc3   : > { %v8545_v62 = vpop.eup %8544 }
 0xbc4   : > { %v2917_v63 = vmul.f32 %v8545_v62, %v2901_v16  ;;  %v8481_v16 = vld [vmem:[%s10814_s22 + $0x8] sm:$0xff]  }
 0xbc5   : > { %7346 = vmatpush3.bf16.msra.mxu0 %v8481_v16 }
 0xbc6   : > { %v2925_v12 = vmul.f32 %v6774_v3, %v2917_v63  ;;  %7347 = vmatprep.subr.bf16.mxu0 %v10695_v30 }
 0xbc7   : > { %v8547_v11 = vpop.eup %8546 }
 0xbc8   : > { %v2918_v13 = vmul.f32 %v8547_v11, %v2902_v47  ;;  %v2933_v26 = vadd.f32 %v6775_v23, %v2925_v12  ;;  %v8482_v47 = vld [vmem:[%s10814_s22 + $0x10] sm:$0xff]  }
 0xbc9   : > { %7348 = vmatpush3.bf16.msra.mxu0 %v8482_v47 }
 0xbca   : > { %v2926_v25 = vmul.f32 %v6774_v3, %v2918_v13  ;;  %7349 = vmatprep.subr.bf16.mxu0 %v10695_v30 }
 0xbcc   : > { %v2934_v28 = vadd.f32 %v6775_v23, %v2926_v25 }
 0xbcd   : > { %7350 = vmatpush3.bf16.msra.mxu0 %v8483_v53 }
 0xbce   : > { %v2940_v14 = vpack.c.bf16 %v2934_v28, %v2933_v26  ;;  %7837 = vmatprep.subr.msk.bf16.mxu0 %vm9795_vm12, %v10693_v42  ;;  %v6780_v28 = vld [vmem:[%s10815_s21] ss:$0 sm:$0xff] }
 0xbd0   : > { %7340 = vmatmul.mubr.msk.bf16.vlgmr.msra.gmra.mrb[8].mxu1 %vm1792_vm13, %v2940_v14 }
 0xbd1   : > { %7359 = vmatprep.mubr.msk.bf16.mxu1 %vm9075_vm14, %v10695_v30 }
 0xca3   : > { %v2996_v56 = vpop.f32.mrb[8].mxu1 }
 0xca4   : > { %v2997_v57 = vadd.f32 %v6776_v54, %v2996_v56  ;;  %v7341_v58 = vpop.f32.mrb[9].mxu1 }
 0xca5   : > { %v2999_v7 = vpop.f32.mrb[10].mxu1 }
 0xca6   : > { %v3005_v6 = vmul.f32 0.70710677, %v2997_v57  ;;  %v3000_v24 = vadd.f32 %v6776_v54, %v2999_v7  ;;  %v7342_v27 = vpop.f32.mrb[11].mxu1  ;;  %v3003_v11 = vmul.f32 0.5, %v2997_v57 }
 0xca8   : > { %8548 = verf.f32 %v3005_v6  ;;  %v3006_v61 = vmul.f32 0.70710677, %v3000_v24  ;;  %v3004_v12 = vmul.f32 0.5, %v3000_v24 }
 0xcaa   : > { %8550 = verf.f32 %v3006_v61 }
 0xcb2   : > { %v8549_v62 = vpop.eup %8548 }
 0xcb3   : > { %v3009_v63 = vadd.f32 1.0, %v8549_v62 }
 0xcb4   : > { %v8551_v3 = vpop.eup %8550 }
 0xcb5   : > { %v3010_v13 = vadd.f32 1.0, %v8551_v3  ;;  %v3011_v23 = vmul.f32 %v3009_v63, %v3003_v11 }
 0xcb7   : > { %v3012_v25 = vmul.f32 %v3010_v13, %v3004_v12  ;;  %v8484_v12 = vld [vmem:[%s10766_s3 + $0x10] sm:$0xff]   ;;  %v8485_v13 = vld [vmem:[%s10766_s3 + $0x18] sm:$0xff]  }
 0xcb8   : > { %7356 = vmatpush3.bf16.msra.mxu1 %v8484_v12 }
 0xcb9   : > { %v3022_v26 = vpack.c.bf16 %v3012_v25, %v3011_v23  ;;  %7357 = vmatprep.subr.bf16.mxu1 %v10695_v30 }
 0xcbb   : > { %7352 = vmatmul.mubr.msk.bf16.vlgmr.msra.gmra.mrb[12].mxu0 %vm2610_vm5, %v3022_v26 }
 0xcbc   : > { %7839 = vmatpush3.bf16.msk.msra.mxu0 %vm9795_vm12, %v10693_v42  ;;  %7358 = vmatpush3.bf16.msra.mxu1 %v8485_v13 }
 0xcbd   : > { %7841 = vmatprep.subr.msk.bf16.mxu0 %vm9809_vm1, %v10693_v42 }
 0xcc0   : > { %7843 = vmatpush3.bf16.msk.msra.mxu0 %vm9809_vm1, %v10693_v42 }
 0xcc1   : > { %7845 = vmatprep.subr.msk.bf16.mxu0 %vm9823_vm2, %v10693_v42 }
 0xcc4   : > { %7847 = vmatpush3.bf16.msk.msra.mxu0 %vm9823_vm2, %v10693_v42 }
 0xcc5   : > { %7849 = vmatprep.subr.msk.bf16.mxu0 %vm9837_vm8, %v10693_v42 }
 0xcc8   : > { %7851 = vmatpush3.bf16.msk.msra.mxu0 %vm9837_vm8, %v10693_v42 }
 0xd8e   : > { %v3090_v14 = vpop.f32.mrb[12].mxu0 }
 0xd8f   : > { %v3091_v48 = vadd.f32 %v6780_v28, %v3090_v14  ;;  %v7353_v16 = vpop.f32.mrb[13].mxu0 }
 0xd90   : > { %v3093_v47 = vpop.f32.mrb[14].mxu0 }
 0xd91   : > { %v9956_v53 = vadd.f32 %v3091_v48, %v9902_v10  ;;  %v3094_v54 = vadd.f32 %v6780_v28, %v3093_v47  ;;  %v7354_v56 = vpop.f32.mrb[15].mxu0 }
 0xd93   : > { %v9959_v57 = vadd.f32 %v3094_v54, %v9905_v18  ;;  %v3103_v58 = vsel %vm1792_vm13, %v9956_v53, 0.0  ;;  %v6786_v54 = vld [vmem:[#allocation7 + $0x1] ss:$0 sm:$0xff] }
 0xd94   : > { %3104 = vadd.xlane.f32.xlu0 %v3103_v58 }
 0xd95   : > { %v3106_v7 = vsel %vm1792_vm13, %v9959_v57, 0.0 }
 0xd98   : > { %3107 = vadd.xlane.f32.xlu0 %v3106_v7 }
 0xe21   : > { %v3105_v6 = vpop.xlane.xlu0 %3104 }
 0xe22   : > { %v3109_v24 = vmul.f32 0.03125, %v3105_v6  ;;  %v6787_v6 = vld [vmem:[#allocation8 + $0x1] ss:$0 sm:$0xff] }
 0xe24   : > { %v3111_v10 = vsub.f32 %v9956_v53, %v3109_v24 }
 0xe25   : > { %v3108_v27 = vpop.xlane.xlu0 %3107 }
 0xe26   : > { %v3110_v61 = vmul.f32 0.03125, %v3108_v27  ;;  %v3113_v62 = vmul.f32 %v3111_v10, %v3111_v10 }
 0xe28   : > { %v3112_v18 = vsub.f32 %v9959_v57, %v3110_v61  ;;  %v3115_v63 = vsel %vm1792_vm13, %v3113_v62, 0.0 }
 0xe29   : > { %3116 = vadd.xlane.f32.xlu1 %v3115_v63  ;;  %v6792_v63 = vld [vmem:[#allocation10 + $0x1] ss:$0 sm:$0xff] }
 0xe2a   : > { %v3114_v3 = vmul.f32 %v3112_v18, %v3112_v18 }
 0xe2c   : > { %v3118_v11 = vsel %vm1792_vm13, %v3114_v3, 0.0 }
 0xe2d   : > { %3119 = vadd.xlane.f32.xlu0 %v3118_v11 }
 0xeb6   : > { %v3117_v23 = vpop.xlane.xlu1 %3116 }
 0xeb7   : > { %v3121_v25 = vmul.f32 0.03125, %v3117_v23 }
 0xeb9   : > { %v3123_v26 = vadd.f32 1e-05, %v3121_v25 }
 0xeba   : > { %v3120_v28 = vpop.xlane.xlu0 %3119 }
 0xebb   : > { %8552 = vrsqrt.f32 %v3123_v26  ;;  %v3122_v14 = vmul.f32 0.03125, %v3120_v28 }
 0xebd   : > { %v3124_v48 = vadd.f32 1e-05, %v3122_v14 }
 0xebf   : > { %8554 = vrsqrt.f32 %v3124_v48 }
 0xec5   : > { %v8553_v16 = vpop.eup %8552 }
 0xec6   : > { %v3127_v47 = vmul.f32 %v8553_v16, %v3111_v10 }
 0xec8   : > { %v3135_v58 = vmul.f32 %v6786_v54, %v3127_v47 }
 0xec9   : > { %v8555_v56 = vpop.eup %8554 }
 0xeca   : > { %v3128_v7 = vmul.f32 %v8555_v56, %v3112_v18  ;;  %v3143_v27 = vadd.f32 %v6787_v6, %v3135_v58 }
 0xecc   : > { %v3136_v24 = vmul.f32 %v6786_v54, %v3128_v7 }
 0xece   : > { %v3144_v61 = vadd.f32 %v6787_v6, %v3136_v24 }
 0xed0   : > { %v3152_v62 = vpack.c.bf16 %v3144_v61, %v3143_v27 }
 0xed2   : > { %7360 = vmatmul.mubr.msk.bf16.vlgmr.msra.gmra.mrb[12].mxu1 %vm1792_vm13, %v3152_v62 }
 0xfa5   : > { %v3208_v3 = vpop.f32.mrb[12].mxu1 }
 0xfa6   : > { %v9973_v11 = vadd.f32 %v6792_v63, %v3208_v3  ;;  %v7361_v12 = vpop.f32.mrb[13].mxu1 }
 0xfa7   : > { %v3211_v13 = vpop.f32.mrb[14].mxu1 }
 0xfa8   : > { %v9975_v23 = vadd.f32 %v6792_v63, %v3211_v13  ;;  %v7362_v10 = vpop.f32.mrb[15].mxu1  ;;  %7379 = vmatprep.mubr.msk.f32.mxu1 %vm1792_vm13, %v9973_v11  ;;  %v3217_v18 = vmul.f32 %v9713_v9, %v9973_v11  ;;  %v3215_v26 = vmul.f32 %v9709_v5, %v9973_v11  ;;  %v3219_v47 = vmul.f32 %v9727_v21, %v9973_v11 }
 0xfa9   : > { %v3221_v58 = vmul.f32 %v9725_v20, %v9973_v11 }
 0xfaa   : > { %v3218_v25 = vmul.f32 %v9711_v8, %v9975_v23  ;;  %v3216_v28 = vmul.f32 %v9707_v2, %v9975_v23  ;;  %v3220_v16 = vmul.f32 %v9719_v17, %v9975_v23  ;;  %v3222_v56 = vmul.f32 %v9717_v15, %v9975_v23 }
 0xfac   : > { %v8299_v14 = vpack.i.bf16 %v3218_v25, %v3217_v18  ;;  %v8294_v48 = vpack.i.bf16 %v3216_v28, %v3215_v26  ;;  %v8304_v54 = vpack.i.bf16 %v3220_v16, %v3219_v47  ;;  %v8309_v7 = vpack.i.bf16 %v3222_v56, %v3221_v58 }
 0xfae   : > { %8300 = vrot.lane.b32.xlu0 %v8299_v14, %s10685_s29  ;;  %8295 = vrot.lane.b32.xlu1 %v8294_v48, %s10685_s29 }
 0xfb2   : > { %8305 = vrot.lane.b32.xlu1 %v8304_v54, %s10685_s29 }
 0xfb6   : > { %8310 = vrot.lane.b32.xlu1 %v8309_v7, %s10685_s29  ;;  %s6737_s29 = sshll.u32 %s9558_s2, 3  ;;  %s10824_s2 = sld [smem:[#allocation48_spill]] }
0x1020   : > { %v8301_v6 = vpop.permute.xlu0 %8300  ;;  %v8296_v24 = vpop.permute.xlu1 %8295 }
0x1021   : > { %v8303_v27 = vunpack.i.h.bf16 %v8301_v6  ;;  %v8302_v61 = vunpack.i.l.bf16 %v8301_v6  ;;  %v8298_v62 = vunpack.i.h.bf16 %v8296_v24  ;;  %v8297_v63 = vunpack.i.l.bf16 %v8296_v24 }
0x1023   : > { %v7812_v3 = vpack.c.bf16 %v8298_v62, %v8297_v63  ;;  %v7818_v12 = vpack.c.bf16 %v8303_v27, %v8302_v61  ;;  %v3226_v27 = vmul.f32 %v9859_v0, %v9975_v23  ;;  %v3225_v61 = vmul.f32 %v9861_v1, %v9973_v11 }
0x1024   : > { %v8306_v13 = vpop.permute.xlu1 %8305  ;;  %v3230_v63 = vmul.f32 %v9878_v31, %v9975_v23 }
0x1025   : > { %7814 = vmatprep.subr.msk.bf16.mxu1 %vm9755_vm11, %v7812_v3  ;;  %v8308_v10 = vunpack.i.h.bf16 %v8306_v13  ;;  %v8307_v18 = vunpack.i.l.bf16 %v8306_v13  ;;  %v8319_v62 = vpack.i.bf16 %v3226_v27, %v3225_v61 }
0x1026   : > { %7817 = vmatpush3.bf16.xpose.msk.msra.mxu1 %vm9755_vm11, %v7812_v3  ;;  %v3229_v3 = vmul.f32 %v9880_v46, %v9973_v11 }
0x1027   : > { %7820 = vmatprep.subr.msk.bf16.mxu1 %vm9755_vm11, %v7818_v12  ;;  %v7824_v25 = vpack.c.bf16 %v8308_v10, %v8307_v18  ;;  %v3223_v10 = vmul.f32 %v9853_v60, %v9973_v11 }
0x1028   : > { %v8311_v26 = vpop.permute.xlu1 %8310  ;;  %v8329_v13 = vpack.i.bf16 %v3230_v63, %v3229_v3 }
0x1029   : > { %v8313_v28 = vunpack.i.h.bf16 %v8311_v26  ;;  %v8312_v14 = vunpack.i.l.bf16 %v8311_v26  ;;  %v3227_v26 = vmul.f32 %v9870_v22, %v9973_v11 }
0x102b   : > { %v7830_v48 = vpack.c.bf16 %v8313_v28, %v8312_v14 }
0x102e   : > { %7823 = vmatpush3.bf16.xpose.msk.msra.mxu1 %vm9755_vm11, %v7818_v12  ;;  %v3224_v12 = vmul.f32 %v9851_v59, %v9975_v23 }
0x102f   : > { %7826 = vmatprep.subr.msk.bf16.mxu1 %vm9755_vm11, %v7824_v25 }
0x1030   : > { %v8314_v18 = vpack.i.bf16 %v3224_v12, %v3223_v10 }
0x1036   : > { %7829 = vmatpush3.bf16.xpose.msk.msra.mxu1 %vm9755_vm11, %v7824_v25  ;;  %v3228_v25 = vmul.f32 %v9868_v19, %v9975_v23 }
0x1037   : > { %7832 = vmatprep.subr.msk.bf16.mxu1 %vm9755_vm11, %v7830_v48 }
0x1038   : > { %v8324_v28 = vpack.i.bf16 %v3228_v25, %v3227_v26 }
0x103e   : > { %7835 = vmatpush3.bf16.xpose.msk.msra.mxu1 %vm9755_vm11, %v7830_v48 }
0x103f   : > { %7420 = vmatprep.subr.bf16.mxu1 %v10695_v30 }
0x1045   : > { %7380 = vmatmul.mubr.msk.f32.vlgmr.msra.gmra.mrb[6].mxu1 %vm1792_vm13, %v9975_v23 }
0x1046   : > { %7424 = vmatprep.mubr.msk.bf16.mxu1 %vm9075_vm14, %v10695_v30 }
0x1118   : > { %v7381_v16 = vpop.f32.mrb[6].mxu1 }
0x1119   : > { %v3353_v47 = vmul.f32 0.35355338, %v7381_v16  ;;  %v3343_v54 = vpop.f32.mrb[7].mxu1 }
0x111a   : > { %v3352_v56 = vmul.f32 0.35355338, %v3343_v54 }
0x111b   : > { %v3355_v58 = vadd.f32 %v3353_v47, %v9786_v29 }
0x111c   : > { %v3354_v7 = vadd.f32 %v3352_v56, %v9786_v29 }
0x111d   : > { %v3359_v6 = vsel %vm2610_vm5, %v3355_v58, -inf }
0x111e   : > { %3360 = vmax.xlane.f32.xlu1 %v3359_v6  ;;  %v3356_v24 = vsel %vm2610_vm5, %v3354_v7, -inf }
0x111f   : > { %3357 = vmax.xlane.f32.xlu0 %v3356_v24 }
0x112f   : > { %8320 = vrot.lane.b32.xlu1 %v8319_v62, %s10687_s18 }
0x1133   : > { %8330 = vrot.lane.b32.xlu1 %v8329_v13, %s10687_s18 }
0x1135   : > { %8315 = vrot.lane.b32.xlu0 %v8314_v18, %s10687_s18 }
0x1139   : > { %8325 = vrot.lane.b32.xlu0 %v8324_v28, %s10687_s18  ;;  %s1537_s18 = scalar_lea.vmem %s10819_s23, %s6737_s29  ;;  %s10825_s29 = smov 32  }
0x113a   : > { %s10826_s23 = sld [smem:[#allocation49_spill]] }
0x11ab   : > { %v3361_v14 = vpop.xlane.xlu1 %3360 }
0x11ac   : > { %v3363_v48 = vsub.f32 %v3355_v58, %v3361_v14  ;;  %v3358_v16 = vpop.xlane.xlu0 %3357  ;;  %v8486_v14 = vld [vmem:[%s10812_s1 + $0x10] sm:$0xff]  }
0x11ad   : > { %v3362_v47 = vsub.f32 %v3354_v7, %v3358_v16  ;;  %7421 = vmatpush3.bf16.msra.mxu1 %v8486_v14 }
0x11ae   : > { %v3366_v54 = vmul.f32 1.442695, %v3363_v48  ;;  %7422 = vmatprep.subr.bf16.mxu1 %v10695_v30 }
0x11af   : > { %v3364_v56 = vmul.f32 1.442695, %v3362_v47  ;;  %v8321_v61 = vpop.permute.xlu1 %8320 }
0x11b0   : > { %v8316_v6 = vpop.permute.xlu0 %8315  ;;  %v8323_v62 = vunpack.i.h.bf16 %v8321_v61  ;;  %v8322_v63 = vunpack.i.l.bf16 %v8321_v61 }
0x11b1   : > { %8556 = vpow2.f32 %v3364_v56  ;;  %v8318_v24 = vunpack.i.h.bf16 %v8316_v6  ;;  %v8317_v27 = vunpack.i.l.bf16 %v8316_v6 }
0x11b2   : > { %8558 = vpow2.f32 %v3366_v54  ;;  %v7856_v58 = vpack.c.bf16 %v8323_v62, %v8322_v63  ;;  %v6822_v62 = vld [vmem:[#allocation11 + $0x1] ss:$0 sm:$0xff] }
0x11b3   : > { %v7852_v23 = vpack.c.bf16 %v8318_v24, %v8317_v27  ;;  %v8331_v10 = vpop.permute.xlu1 %8330  ;;  %v8487_v24 = vld [vmem:[%s10812_s1 + $0x18] sm:$0xff]   ;;  %s10823_s1 = smov %s10822_s7 }
0x11b4   : > { %v8326_v11 = vpop.permute.xlu0 %8325  ;;  %v8333_v18 = vunpack.i.h.bf16 %v8331_v10  ;;  %v8332_v25 = vunpack.i.l.bf16 %v8331_v10  ;;  %7423 = vmatpush3.bf16.msra.mxu1 %v8487_v24  ;;  %v8489_v24 = vld [vmem:[%s10813_s26 + $0x18] sm:$0xff]  }
0x11b5   : > { %7853 = vmatprep.subr.bf16.mxu0 %v7852_v23  ;;  %v8328_v13 = vunpack.i.h.bf16 %v8326_v11  ;;  %v8327_v7 = vunpack.i.l.bf16 %v8326_v11  ;;  %7436 = vmatprep.subr.bf16.mxu1 %v10695_v30 }
0x11b6   : > { %v7864_v28 = vpack.c.bf16 %v8333_v18, %v8332_v25 }
0x11b7   : > { %v7860_v26 = vpack.c.bf16 %v8328_v13, %v8327_v7 }
0x11bb   : > { %v8557_v3 = vpop.eup %8556 }
0x11bc   : > { %v8559_v12 = vpop.eup %8558  ;;  %7398 = vmatprep.mubr.msk.f32.mxu0 %vm2610_vm5, %v8557_v3 }
0x11bd   : > { %7399 = vmatmul.mubr.msk.f32.vlgmr.msra.gmra.mrb[6].mxu0 %vm2610_vm5, %v8559_v12 }
0x11be   : > { %7855 = vmatpush3.bf16.msra.mxu0 %v7852_v23 }
0x11bf   : > { %7857 = vmatprep.subr.bf16.mxu0 %v7856_v58 }
0x11c2   : > { %7859 = vmatpush3.bf16.msra.mxu0 %v7856_v58 }
0x11c3   : > { %7861 = vmatprep.subr.bf16.mxu0 %v7860_v26 }
0x11c6   : > { %7863 = vmatpush3.bf16.msra.mxu0 %v7860_v26 }
0x11c7   : > { %7865 = vmatprep.subr.bf16.mxu0 %v7864_v28 }
0x11ca   : > { %7867 = vmatpush3.bf16.msra.mxu0 %v7864_v28 }
0x11cb   : > { %7428 = vmatprep.subr.bf16.mxu0 %v10695_v30 }
0x1290   : > { %v7400_v48 = vpop.f32.mrb[6].mxu0 }
0x1291   : > { %8560 = vrcp.f32 %v7400_v48  ;;  %v3440_v16 = vpop.f32.mrb[7].mxu0 }
0x1292   : > { %8562 = vrcp.f32 %v3440_v16 }
0x129b   : > { %v8561_v47 = vpop.eup %8560 }
0x129c   : > { %v8563_v54 = vpop.eup %8562  ;;  %v3452_v6 = vmul.f32 %v8561_v47, %v8559_v12 }
0x129d   : > { %v3451_v56 = vmul.f32 %v8563_v54, %v8557_v3 }
0x129f   : > { %7417 = vmatprep.mubr.msk.f32.mxu0 %vm2610_vm5, %v3451_v56 }
0x12a0   : > { %7418 = vmatmul.mubr.msk.f32.vlgmr.msra.gmra.mrb[16].mxu0 %vm2610_vm5, %v3452_v6  ;;  %v8488_v6 = vld [vmem:[%s10813_s26 + $0x10] sm:$0xff]  }
0x12a1   : > { %7432 = vmatprep.mubr.msk.bf16.mxu0 %vm9075_vm14, %v10695_v30  ;;  %7429 = vmatpush3.bf16.msra.mxu0 %v8488_v6 }
0x12a2   : > { %7430 = vmatprep.subr.bf16.mxu0 %v10695_v30 }
0x12a5   : > { %7431 = vmatpush3.bf16.msra.mxu0 %v8489_v24 }
0x12a6   : > { %7448 = vmatprep.subr.bf16.mxu0 %v10695_v30 }
0x1373   : > { %v7419_v27 = vpop.f32.mrb[16].mxu0 }
0x1374   : > { %v3557_v23 = vpop.f32.mrb[17].mxu0 }
0x1375   : > { %v3573_v61 = vpack.c.bf16 %v7419_v27, %v3557_v23 }
0x1377   : > { %7425 = vmatmul.mubr.msk.bf16.vlgmr.msra.gmra.mrb[16].mxu1 %vm1792_vm13, %v3573_v61 }
0x1378   : > { %7444 = vmatprep.mubr.msk.bf16.mxu1 %vm9075_vm14, %v10695_v30 }
0x144a   : > { %v3629_v63 = vpop.f32.mrb[16].mxu1 }
0x144b   : > { %v3630_v11 = vadd.f32 %v6822_v62, %v3629_v63  ;;  %v7426_v3 = vpop.f32.mrb[17].mxu1 }
0x144c   : > { %v3632_v12 = vpop.f32.mrb[18].mxu1 }
0x144d   : > { %v10059_v58 = vadd.f32 %v3630_v11, %v9956_v53  ;;  %v3633_v13 = vadd.f32 %v6822_v62, %v3632_v12  ;;  %v7427_v7 = vpop.f32.mrb[19].mxu1 }
0x144f   : > { %v10062_v10 = vadd.f32 %v3633_v13, %v9959_v57  ;;  %v3642_v18 = vsel %vm1792_vm13, %v10059_v58, 0.0  ;;  %v6826_v13 = vld [vmem:[#allocation13 + $0x1] ss:$0 sm:$0xff] }
0x1450   : > { %3643 = vadd.xlane.f32.xlu0 %v3642_v18 }
0x1451   : > { %v3645_v25 = vsel %vm1792_vm13, %v10062_v10, 0.0 }
0x1452   : > { %3646 = vadd.xlane.f32.xlu1 %v3645_v25 }
0x14dd   : > { %v3644_v26 = vpop.xlane.xlu0 %3643 }
0x14de   : > { %v3648_v28 = vmul.f32 0.03125, %v3644_v26  ;;  %v6827_v26 = vld [vmem:[#allocation14 + $0x1] ss:$0 sm:$0xff] }
0x14df   : > { %v3647_v14 = vpop.xlane.xlu1 %3646 }
0x14e0   : > { %v3650_v53 = vsub.f32 %v10059_v58, %v3648_v28  ;;  %v3649_v48 = vmul.f32 0.03125, %v3647_v14 }
0x14e2   : > { %v3651_v16 = vsub.f32 %v10062_v10, %v3649_v48  ;;  %v3652_v57 = vmul.f32 %v3650_v53, %v3650_v53 }
0x14e4   : > { %v3654_v47 = vsel %vm1792_vm13, %v3652_v57, 0.0  ;;  %v3653_v54 = vmul.f32 %v3651_v16, %v3651_v16 }
0x14e5   : > { %3655 = vadd.xlane.f32.xlu0 %v3654_v47  ;;  %v8490_v47 = vld [vmem:[%s10814_s22 + $0x20] sm:$0xff]  }
0x14e6   : > { %v3657_v56 = vsel %vm1792_vm13, %v3653_v54, 0.0  ;;  %7437 = vmatpush3.bf16.msra.mxu1 %v8490_v47  ;;  %v8493_v54 = vld [vmem:[%s10814_s22 + $0x38] sm:$0xff]  }
0x14e7   : > { %7438 = vmatprep.subr.bf16.mxu1 %v10695_v30 }
0x14e9   : > { %3658 = vadd.xlane.f32.xlu0 %v3657_v56  ;;  %v6832_v56 = vld [vmem:[#allocation16 + $0x1] ss:$0 sm:$0xff] }
0x1572   : > { %v3656_v27 = vpop.xlane.xlu0 %3655 }
0x1573   : > { %v3660_v23 = vmul.f32 0.03125, %v3656_v27 }
0x1575   : > { %v3662_v61 = vadd.f32 1e-05, %v3660_v23 }
0x1576   : > { %v3659_v62 = vpop.xlane.xlu0 %3658 }
0x1577   : > { %8564 = vrsqrt.f32 %v3662_v61  ;;  %v3661_v63 = vmul.f32 0.03125, %v3659_v62 }
0x1579   : > { %v3663_v11 = vadd.f32 1e-05, %v3661_v63 }
0x157b   : > { %8566 = vrsqrt.f32 %v3663_v11 }
0x1581   : > { %v8565_v3 = vpop.eup %8564 }
0x1582   : > { %v3666_v12 = vmul.f32 %v8565_v3, %v3650_v53  ;;  %v8491_v53 = vld [vmem:[%s10814_s22 + $0x28] sm:$0xff]  }
0x1583   : > { %7439 = vmatpush3.bf16.msra.mxu1 %v8491_v53 }
0x1584   : > { %v3674_v18 = vmul.f32 %v6826_v13, %v3666_v12  ;;  %7440 = vmatprep.subr.bf16.mxu1 %v10695_v30 }
0x1585   : > { %v8567_v7 = vpop.eup %8566 }
0x1586   : > { %v3667_v25 = vmul.f32 %v8567_v7, %v3651_v16  ;;  %v3682_v14 = vadd.f32 %v6827_v26, %v3674_v18  ;;  %v8492_v16 = vld [vmem:[%s10814_s22 + $0x30] sm:$0xff]   ;;  %s10854_s22 = sld [smem:[#allocation66_spill]] }
0x1587   : > { %7441 = vmatpush3.bf16.msra.mxu1 %v8492_v16 }
0x1588   : > { %v3675_v28 = vmul.f32 %v6826_v13, %v3667_v25  ;;  %7442 = vmatprep.subr.bf16.mxu1 %v10695_v30 }
0x158a   : > { %v3683_v48 = vadd.f32 %v6827_v26, %v3675_v28 }
0x158b   : > { %7443 = vmatpush3.bf16.msra.mxu1 %v8493_v54 }
0x158c   : > { %v3691_v57 = vpack.c.bf16 %v3683_v48, %v3682_v14  ;;  %7461 = vmatprep.subr.bf16.mxu1 %v10695_v30  ;;  %v6845_v48 = vld [vmem:[%s10815_s21 + $0x1] ss:$0 sm:$0xff]  ;;  %s10853_s21 = sld [smem:[#allocation63_spill]] }
0x158e   : > { %7433 = vmatmul.mubr.msk.bf16.vlgmr.msra.gmra.mrb[20].mxu0 %vm1792_vm13, %v3691_v57 }
0x158f   : > { %7452 = vmatprep.mubr.msk.bf16.mxu0 %vm9075_vm14, %v10695_v30 }
0x1661   : > { %v3747_v6 = vpop.f32.mrb[20].mxu0 }
0x1662   : > { %v3748_v24 = vadd.f32 %v6832_v56, %v3747_v6  ;;  %v7434_v27 = vpop.f32.mrb[21].mxu0 }
0x1663   : > { %v3750_v23 = vpop.f32.mrb[22].mxu0 }
0x1664   : > { %v3756_v61 = vmul.f32 0.70710677, %v3748_v24  ;;  %v3751_v62 = vadd.f32 %v6832_v56, %v3750_v23  ;;  %v7435_v63 = vpop.f32.mrb[23].mxu0  ;;  %v3754_v7 = vmul.f32 0.5, %v3748_v24 }
0x1666   : > { %8568 = verf.f32 %v3756_v61  ;;  %v3757_v11 = vmul.f32 0.70710677, %v3751_v62  ;;  %v3755_v18 = vmul.f32 0.5, %v3751_v62 }
0x1668   : > { %8570 = verf.f32 %v3757_v11 }
0x1670   : > { %v8569_v3 = vpop.eup %8568 }
0x1671   : > { %v3760_v12 = vadd.f32 1.0, %v8569_v3 }
0x1672   : > { %v8571_v13 = vpop.eup %8570 }
0x1673   : > { %v3761_v25 = vadd.f32 1.0, %v8571_v13  ;;  %v3762_v26 = vmul.f32 %v3760_v12, %v3754_v7 }
0x1675   : > { %v3763_v28 = vmul.f32 %v3761_v25, %v3755_v18  ;;  %v8495_v25 = vld [vmem:[%s10817_s16 + $0x8] sm:$0xff]   ;;  %s10849_s16 = sld [smem:[#allocation61_spill]] }
0x1677   : > { %v3775_v14 = vpack.c.bf16 %v3763_v28, %v3762_v26 }
0x1679   : > { %7445 = vmatmul.mubr.msk.bf16.vlgmr.msra.gmra.mrb[20].mxu1 %vm2610_vm5, %v3775_v14 }
0x167a   : > { %7465 = vmatprep.mubr.msk.bf16.mxu1 %vm9075_vm14, %v10695_v30 }
0x174c   : > { %v3843_v57 = vpop.f32.mrb[20].mxu1 }
0x174d   : > { %v3844_v47 = vadd.f32 %v6845_v48, %v3843_v57  ;;  %v7446_v53 = vpop.f32.mrb[21].mxu1 }
0x174e   : > { %v3846_v16 = vpop.f32.mrb[22].mxu1 }
0x174f   : > { %v3847_v54 = vadd.f32 %v6845_v48, %v3846_v16  ;;  %v7447_v56 = vpop.f32.mrb[23].mxu1  ;;  %v3850_v6 = vadd.f32 %v3844_v47, %v10059_v58  ;;  %v6851_v16 = vld [vmem:[#allocation17] ss:$0 sm:$0xff] }
0x1751   : > { %v3854_v24 = vsel %vm1792_vm13, %v3850_v6, 0.0  ;;  %v3851_v27 = vadd.f32 %v3847_v54, %v10062_v10  ;;  %v8494_v10 = vld [vmem:[%s10816_s11] sm:$0xff]   ;;  %s10820_s11 = sld [smem:[#allocation47_spill]] }
0x1752   : > { %3855 = vadd.xlane.f32.xlu1 %v3854_v24  ;;  %7449 = vmatpush3.bf16.msra.mxu0 %v8494_v10 }
0x1753   : > { %v3857_v23 = vsel %vm1792_vm13, %v3851_v27, 0.0  ;;  %7450 = vmatprep.subr.bf16.mxu0 %v10695_v30 }
0x1754   : > { %3858 = vadd.xlane.f32.xlu0 %v3857_v23 }
0x1756   : > { %7451 = vmatpush3.bf16.msra.mxu0 %v8495_v25 }
0x1757   : > { %7456 = vmatprep.subr.mxu0 %v10695_v30 }
0x17df   : > { %v3856_v61 = vpop.xlane.xlu1 %3855 }
0x17e0   : > { %v3860_v62 = vmul.f32 0.03125, %v3856_v61 }
0x17e1   : > { %v3859_v63 = vpop.xlane.xlu0 %3858 }
0x17e2   : > { %v3862_v11 = vsub.f32 %v3850_v6, %v3860_v62  ;;  %v3861_v3 = vmul.f32 0.03125, %v3859_v63 }
0x17e4   : > { %v3863_v12 = vsub.f32 %v3851_v27, %v3861_v3  ;;  %v3864_v13 = vmul.f32 %v3862_v11, %v3862_v11  ;;  %v6852_v27 = vld [vmem:[#allocation19] ss:$0 sm:$0xff]  ;;  %v3965_v3 = vld [vmem:[%s10818_s15] sm:$0x3]  ;;  %s10827_s15 = smov 64  }
0x17e6   : > { %v3866_v7 = vsel %vm1792_vm13, %v3864_v13, 0.0  ;;  %v3865_v58 = vmul.f32 %v3863_v12, %v3863_v12 }
0x17e7   : > { %3867 = vadd.xlane.f32.xlu1 %v3866_v7 }
0x17e8   : > { %v3869_v18 = vsel %vm1792_vm13, %v3865_v58, 0.0 }
0x17e9   : > { %3870 = vadd.xlane.f32.xlu0 %v3869_v18  ;;  %v6857_v18 = vld [vmem:[%s10820_s11] ss:$0 sm:$0xff]  ;;  %s10828_s11 = sld [smem:[#allocation51_spill]] }
0x17ef   : > { %s10829_s3 = smov %s10828_s11 }
0x1874   : > { %v3868_v26 = vpop.xlane.xlu1 %3867 }
0x1875   : > { %v3872_v28 = vmul.f32 0.03125, %v3868_v26 }
0x1876   : > { %v3871_v14 = vpop.xlane.xlu0 %3870 }
0x1877   : > { %v3874_v48 = vadd.f32 1e-05, %v3872_v28  ;;  %v3873_v57 = vmul.f32 0.03125, %v3871_v14 }
0x1879   : > { %8572 = vrsqrt.f32 %v3874_v48  ;;  %v3875_v47 = vadd.f32 1e-05, %v3873_v57 }
0x187b   : > { %8574 = vrsqrt.f32 %v3875_v47 }
0x1883   : > { %v8573_v53 = vpop.eup %8572 }
0x1884   : > { %v3878_v54 = vmul.f32 %v8573_v53, %v3862_v11  ;;  %v3964_v11 = vld [vmem:[%s1537_s18] sm:$0xff]  ;;  %s9084_s18 = smov 24  }
0x1885   : > { %v8575_v56 = vpop.eup %8574 }
0x1886   : > { %v3886_v6 = vmul.f32 %v6851_v16, %v3878_v54  ;;  %v3879_v24 = vmul.f32 %v8575_v56, %v3863_v12  ;;  %v8497_v54 = vld [vmem:[%s10823_s1 + $0x8] sm:$0xff]   ;;  %v8339_v56 = vpack.i.bf16 %v9690_v43, %v9677_v39 }
0x1888   : > { %v3887_v23 = vmul.f32 %v6851_v16, %v3879_v24  ;;  %v3894_v61 = vadd.f32 %v6852_v27, %v3886_v6  ;;  %v8496_v16 = vld [vmem:[%s10822_s7] sm:$0xff]   ;;  %v8334_v6 = vpack.i.bf16 %v9658_v34, %v9650_v38  ;;  %s9083_s7 = smov 8  }
0x1889   : > { %7462 = vmatpush3.bf16.msra.mxu1 %v8496_v16 }
0x188a   : > { %v3895_v62 = vadd.f32 %v6852_v27, %v3887_v23  ;;  %7463 = vmatprep.subr.bf16.mxu1 %v10695_v30 }
0x188c   : > { %v3901_v63 = vpack.c.bf16 %v3895_v62, %v3894_v61  ;;  %v6860_v62 = vld [vmem:[%s10824_s2] ss:$0 sm:$0xff] }
0x188d   : > { %7464 = vmatpush3.bf16.msra.mxu1 %v8497_v54 }
0x188e   : > { %7453 = vmatmul.mubr.msk.bf16.vlgmr.msra.gmra.mrb[24].mxu0 %vm1792_vm13, %v3901_v63 }
0x188f   : > { %7457 = vmatpush3.msk.msra.mxu0 %vm1678_vm6, %v3965_v3  ;;  %7458 = vmatprep.mubr.msk.f32.mxu0 %vm9075_vm14, %v10695_v30  ;;  %vm1800_vm6 = vcmp.le.s32.totalorder %v9635_v32, %v9584_v40 }
0x1890   : > { %v10134_v24 = vsel %vm1800_vm6, 0.0, %v9078_v4  ;;  %v6861_v4 = vld [vmem:[%s10826_s23] ss:$0 sm:$0xff] }
0x1896   : > { %7459 = vmatmul.mubr.msk.f32.vlgmr.msra.gmra.mrb[18].mxu0 %vm10821_vm0, %v3964_v11  ;;  %vm10834_vm0 = vcmp.lt.s32.totalorder %v9635_v32, 8 }
0x1897   : > { %7477 = vmatprep.mubr.msk.f32.mxu0 %vm9075_vm14, %v10695_v30  ;;  %vm10205_vm6 = vmpackc.low %vm9643_vm3, %vm10834_vm0  ;;  %vm6453_vm3 = vcmp.eq.s32.totalorder %v9635_v32, 1 }
0x1961   : > { %v10111_v12 = vpop.f32.mrb[24].mxu0 }
0x1962   : > { %v7454_v13 = vpop.f32.mrb[25].mxu0 }
0x1963   : > { %v10113_v7 = vpop.f32.mrb[26].mxu0 }
0x1964   : > { %v7455_v58 = vpop.f32.mrb[27].mxu0 }
0x1969   : > { %v4045_v10 = vpop.f32.mrb[18].mxu0 }
0x196a   : > { %v10116_v25 = vadd.f32 %v6857_v18, %v4045_v10  ;;  %v7460_v26 = vpop.f32.mrb[19].mxu0 }
0x196c   : > { %v4051_v28 = vsel %vm1792_vm13, %v10116_v25, 0.0 }
0x196d   : > { %4052 = vadd.xlane.f32.xlu1 %v4051_v28 }
0x197e   : > { %8335 = vrot.lane.b32.xlu1 %v8334_v6, %s10825_s29 }
0x19fa   : > { %v4053_v14 = vpop.xlane.xlu1 %4052 }
0x19fb   : > { %v4054_v48 = vmul.f32 0.03125, %v4053_v14 }
0x19fd   : > { %v4055_v57 = vsub.f32 %v10116_v25, %v4054_v48  ;;  %v9085_v48 = vmov 0.0|0.0  }
0x19fe   : > { %v10149_v28 = vpop.permute.xlu1 %8335  ;;  %7868 = vmatprep.subr.bf16.mxu0 %v9085_v48  ;;  %7876 = vmatprep.subr.bf16.mxu1 %v9085_v48 }
0x19ff   : > { %v4056_v47 = vmul.f32 %v4055_v57, %v4055_v57  ;;  %v8338_v16 = vunpack.i.h.bf16 %v10149_v28  ;;  %v8337_v54 = vunpack.i.l.bf16 %v10149_v28 }
0x1a01   : > { %v4057_v53 = vsel %vm1792_vm13, %v4056_v47, 0.0 }
0x1a02   : > { %4058 = vadd.xlane.f32.xlu0 %v4057_v53 }
0x1a18   : > { %8340 = vrot.lane.b32.xlu0 %v8339_v56, %s10825_s29 }
0x1a1c   : > { %1803 = vrot.lane.b32.xlu0 %v10134_v24, %s9083_s7  ;;  %s10830_s7 = smov 96  }
0x1a20   : > { %1809 = vrot.lane.b32.xlu0 %v10134_v24, %s9084_s18  ;;  %s10831_s18 = smov 16  }
0x1a24   : > { %8355 = vrot.lane.b32.xlu0 %v8334_v6, %s10827_s15 }
0x1a28   : > { %8360 = vrot.lane.b32.xlu0 %v8339_v56, %s10827_s15 }
0x1a8f   : > { %v4059_v40 = vpop.xlane.xlu0 %4058 }
0x1a90   : > { %v4060_v27 = vmul.f32 0.03125, %v4059_v40 }
0x1a92   : > { %v4061_v23 = vadd.f32 1e-05, %v4060_v27 }
0x1a93   : > { %v10145_v58 = vpop.permute.xlu0 %8340 }
0x1a94   : > { %8576 = vrsqrt.f32 %v4061_v23  ;;  %v8343_v27 = vunpack.i.h.bf16 %v10145_v58  ;;  %v8342_v23 = vunpack.i.l.bf16 %v10145_v58 }
0x1a97   : > { %v1804_v18 = vpop.permute.xlu0 %1803 }
0x1a9b   : > { %v1810_v10 = vpop.permute.xlu0 %1809 }
0x1a9e   : > { %v8577_v61 = vpop.eup %8576 }
0x1a9f   : > { %v4063_v63 = vmul.f32 %v8577_v61, %v4055_v57  ;;  %v10147_v26 = vpop.permute.xlu0 %8355  ;;  %v6862_v57 = vld [vmem:[%s10828_s11] ss:$0 sm:$0xff]  ;;  %s10838_s11 = sld [smem:[#allocation52_spill]] }
0x1aa0   : > { %v10697_v47 = vunpack.i.h.bf16 %v10147_v26  ;;  %v10698_v53 = vunpack.i.l.bf16 %v10147_v26 }
0x1aa1   : > { %v4070_v3 = vmul.f32 %v6860_v62, %v4063_v63 }
0x1aa3   : > { %v4077_v11 = vadd.f32 %v6861_v4, %v4070_v3  ;;  %v10151_v14 = vpop.permute.xlu0 %8360 }
0x1aa4   : > { %v10699_v56 = vunpack.i.h.bf16 %v10151_v14  ;;  %v8362_v6 = vunpack.i.l.bf16 %v10151_v14 }
0x1aa5   : > { %v4083_v13 = vpack.c.bf16 %v4077_v11, %v4077_v11 }
0x1aa7   : > { %7466 = vmatmul.mubr.msk.bf16.vlgmr.msra.gmra.mrb[24].mxu1 %vm1792_vm13, %v4083_v13 }
0x1aa8   : > { %7488 = vmatprep.mubr.msk.f32.mxu1 %vm9075_vm14, %v10695_v30 }
0x1b7a   : > { %v4139_v40 = vpop.f32.mrb[24].mxu1 }
0x1b7b   : > { %v4140_v61 = vadd.f32 %v6862_v57, %v4139_v40  ;;  %v7467_v62 = vpop.f32.mrb[25].mxu1 }
0x1b7c   : > { %v4142_v63 = vpop.f32.mrb[26].mxu1 }
0x1b7d   : > { %v7468_v4 = vpop.f32.mrb[27].mxu1  ;;  %v4177_v3 = vmul.f32 %v10698_v53, %v4140_v61  ;;  %v4178_v11 = vmul.f32 %v10697_v47, %v4140_v61  ;;  %v4161_v13 = vmul.f32 %v8337_v54, %v4140_v61  ;;  %v4162_v42 = vmul.f32 %v8338_v16, %v4140_v61 }
0x1b7e   : > { %v4179_v30 = vmul.f32 %v8362_v6, %v4140_v61  ;;  %v4180_v57 = vmul.f32 %v10699_v56, %v4140_v61  ;;  %v4163_v63 = vmul.f32 %v8342_v23, %v4140_v61  ;;  %v4164_v4 = vmul.f32 %v8343_v27, %v4140_v61 }
0x1b7f   : > { %v8364_v40 = vpack.i.bf16 %v4178_v11, %v4177_v3  ;;  %v8344_v62 = vpack.i.bf16 %v4162_v42, %v4161_v13 }
0x1b80   : > { %v8369_v47 = vpack.i.bf16 %v4180_v57, %v4179_v30  ;;  %v8349_v53 = vpack.i.bf16 %v4164_v4, %v4163_v63 }
0x1b81   : > { %8365 = vrot.lane.b32.xlu0 %v8364_v40, %s10827_s15  ;;  %8345 = vrot.lane.b32.xlu1 %v8344_v62, %s10830_s7 }
0x1b85   : > { %8370 = vrot.lane.b32.xlu0 %v8369_v47, %s10827_s15  ;;  %8350 = vrot.lane.b32.xlu1 %v8349_v53, %s10830_s7  ;;  %v10832_v47 = vmov 0.0   ;;  %v1813_v53 = vsel %vm1812_vm7, %v10134_v24, %v1804_v18  ;;  %v10837_v18 = vmov 1.0|1.0   ;;  %vm7880_vm7 = vmpackc.low %vm9681_vm10, %vm9666_vm9  ;;  %vm6452_vm9 = vcmp.eq.s32.totalorder %v9635_v32, 0 }
0x1b86   : > { %7878 = vmatpush3.bf16.msk.msra.mxu1 %vm10205_vm6, %v10837_v18 }
0x1b87   : > { %7879 = vmatprep.subr.bf16.mxu1 %v9085_v48 }
0x1b89   : > { %1806 = vrot.lane.b32.xlu1 %v10134_v24, %s10831_s18  ;;  %s10839_s18 = smov %s10838_s11 }
0x1b8a   : > { %7881 = vmatpush3.bf16.msk.msra.mxu1 %vm7880_vm7, %v10837_v18 }
0x1b8b   : > { %7882 = vmatprep.subr.bf16.mxu1 %v9085_v48 }
0x1bf3   : > { %v8346_v42 = vpop.permute.xlu1 %8345 }
0x1bf4   : > { %v8348_v3 = vunpack.i.h.bf16 %v8346_v42  ;;  %v8347_v11 = vunpack.i.l.bf16 %v8346_v42 }
0x1bf6   : > { %v7869_v13 = vpack.c.bf16 %v8348_v3, %v8347_v11 }
0x1bf7   : > { %v8351_v56 = vpop.permute.xlu1 %8350 }
0x1bf8   : > { %7871 = vmatpush3.bf16.xpose.msk.msra.mxu0 %vm9755_vm11, %v7869_v13  ;;  %v8353_v40 = vunpack.i.h.bf16 %v8351_v56  ;;  %v8352_v30 = vunpack.i.l.bf16 %v8351_v56 }
0x1bf9   : > { %7872 = vmatprep.subr.bf16.mxu0 %v9085_v48 }
0x1bfa   : > { %v7873_v57 = vpack.c.bf16 %v8353_v40, %v8352_v30  ;;  %v8366_v40 = vpop.permute.xlu0 %8365 }
0x1bfb   : > { %v1807_v62 = vpop.permute.xlu1 %1806  ;;  %v8368_v30 = vunpack.i.h.bf16 %v8366_v40 }
0x1bfc   : > { %v1814_v63 = vsel %vm10833_vm15, %v1813_v53, %v1807_v62 }
0x1bfd   : > { %v10197_v3 = vsel %vm1815_vm4, %v1814_v63, %v1810_v10 }
0x1bfe   : > { %v8371_v53 = vpop.permute.xlu0 %8370 }
0x1c00   : > { %7875 = vmatpush3.bf16.xpose.msk.msra.mxu0 %vm9755_vm11, %v7873_v57  ;;  %v8367_v57 = vunpack.i.l.bf16 %v8366_v40 }
0x1c01   : > { %7502 = vmatprep.subr.bf16.mxu0 %v10832_v47 }
0x1c02   : > { %v7883_v63 = vpack.c.bf16 %v8368_v30, %v8367_v57  ;;  %v6853_v30 = vld [vmem:[%s10840_s4] ss:$0 sm:$0xff]  ;;  %s10841_s4 = sld [smem:[#allocation53_spill]] }
0x1c03   : > { %v10238_v57 = vadd.f32 %v6853_v30, %v10113_v7 }
0x1c07   : > { %7478 = vmatmul.mubr.msk.f32.vlgmr.msra.gmra.mrb[28].mxu0 %vm1792_vm13, %v4140_v61 }
0x1c08   : > { %7506 = vmatprep.mubr.msk.bf16.mxu0 %vm9075_vm14, %v10832_v47 }
0x1cda   : > { %v4270_v4 = vpop.f32.mrb[28].mxu0 }
0x1cdb   : > { %v4274_v56 = vmul.f32 0.35355338, %v4270_v4  ;;  %v7479_v42 = vpop.f32.mrb[29].mxu0  ;;  %v8373_v4 = vunpack.i.h.bf16 %v8371_v53 }
0x1cdd   : > { %v4275_v11 = vadd.f32 %v4274_v56, %v10197_v3  ;;  %v8372_v56 = vunpack.i.l.bf16 %v8371_v53  ;;  %v10241_v53 = vadd.f32 %v6853_v30, %v10111_v12  ;;  %v4613_v12 = vmul.f32 %v10238_v57, %v9658_v34  ;;  %v6877_v30 = vld [vmem:[%s10841_s4] ss:$0 sm:$0xff] }
0x1cdf   : > { %v4276_v13 = vsel %vm1792_vm13, %v4275_v11, -inf  ;;  %v7886_v42 = vpack.c.bf16 %v8373_v4, %v8372_v56  ;;  %v4610_v56 = vmul.f32 %v10241_v53, %v9650_v38 }
0x1ce0   : > { %4277 = vmax.xlane.f32.xlu1 %v4276_v13  ;;  %v8499_v13 = vld [vmem:[%s10839_s18 + $0x8] sm:$0xff]  }
0x1d6d   : > { %v4278_v33 = vpop.xlane.xlu1 %4277 }
0x1d6e   : > { %v4279_v10 = vsub.f32 %v4275_v11, %v4278_v33  ;;  %v8498_v11 = vld [vmem:[%s10838_s11] sm:$0xff]   ;;  %s10842_s11 = sld [smem:[#allocation56_spill]] }
0x1d6f   : > { %7503 = vmatpush3.bf16.msra.mxu0 %v8498_v11 }
0x1d70   : > { %v4280_v61 = vmul.f32 1.442695, %v4279_v10  ;;  %7504 = vmatprep.subr.bf16.mxu0 %v10832_v47 }
0x1d72   : > { %8578 = vpow2.f32 %v4280_v61 }
0x1d73   : > { %7505 = vmatpush3.bf16.msra.mxu0 %v8499_v13  ;;  %v4615_v13 = vmul.f32 %v10238_v57, %v9677_v39 }
0x1d74   : > { %7888 = vmatprep.subr.bf16.mxu0 %v9085_v48  ;;  %s10843_s5 = smov %s10842_s11 }
0x1d7c   : > { %v8579_v62 = vpop.eup %8578 }
0x1d7d   : > { %7489 = vmatmul.mubr.msk.f32.vlgmr.msra.gmra.mrb[28].mxu1 %vm1792_vm13, %v8579_v62 }
0x1d7e   : > { %7884 = vmatpush3.bf16.msra.mxu1 %v7883_v63  ;;  %7499 = vmatprep.mubr.msk.f32.mxu1 %vm9075_vm14, %v10832_v47  ;;  %v4611_v63 = vmul.f32 %v10238_v57, %v9650_v38  ;;  %v4612_v38 = vmul.f32 %v10241_v53, %v9658_v34  ;;  %v4617_v34 = vmul.f32 %v10238_v57, %v9690_v43 }
0x1d7f   : > { %7885 = vmatprep.subr.bf16.mxu1 %v9085_v48 }
0x1d80   : > { %v7889_v11 = vpack.c.bf16 %v4611_v63, %v4610_v56  ;;  %v7893_v7 = vpack.c.bf16 %v4613_v12, %v4612_v38  ;;  %v4620_v12 = vmul.f32 %v9713_v9, %v10241_v53 }
0x1d82   : > { %7887 = vmatpush3.bf16.msra.mxu1 %v7886_v42 }
0x1d83   : > { %7510 = vmatprep.subr.bf16.mxu1 %v10832_v47 }
0x1e50   : > { %v4351_v33 = vpop.f32.mrb[28].mxu1 }
0x1e51   : > { %8580 = vrcp.f32 %v4351_v33  ;;  %v7490_v10 = vpop.f32.mrb[29].mxu1  ;;  %v4614_v33 = vmul.f32 %v10241_v53, %v9677_v39 }
0x1e53   : > { %v7897_v10 = vpack.c.bf16 %v4615_v13, %v4614_v33 }
0x1e5b   : > { %v8581_v61 = vpop.eup %8580 }
0x1e5c   : > { %v4356_v40 = vmul.f32 %v8581_v61, %v8579_v62  ;;  %v4616_v61 = vmul.f32 %v10241_v53, %v9690_v43 }
0x1e5e   : > { %7500 = vmatmul.mubr.msk.f32.vlgmr.msra.gmra.mrb[30].mxu1 %vm1792_vm13, %v4356_v40  ;;  %v7901_v40 = vpack.c.bf16 %v4617_v34, %v4616_v61  ;;  %v8500_v34 = vld [vmem:[%s10842_s11] sm:$0xff]   ;;  %v8501_v61 = vld [vmem:[%s10843_s5 + $0x8] sm:$0xff]   ;;  %s10847_s11 = sld [smem:[#allocation60_spill]] }
0x1e5f   : > { %7514 = vmatprep.mubr.msk.bf16.mxu1 %vm9075_vm14, %v10832_v47  ;;  %7511 = vmatpush3.bf16.msra.mxu1 %v8500_v34 }
0x1e60   : > { %7512 = vmatprep.subr.bf16.mxu1 %v10832_v47 }
0x1e63   : > { %7513 = vmatpush3.bf16.msra.mxu1 %v8501_v61 }
0x1e64   : > { %7904 = vmatprep.subr.bf16.mxu1 %v9085_v48  ;;  %s10848_s13 = smov %s10847_s11 }
0x1f31   : > { %v4442_v4 = vpop.f32.mrb[30].mxu1 }
0x1f32   : > { %v4451_v62 = vpack.c.bf16 %v4442_v4, %v4442_v4  ;;  %v7501_v42 = vpop.f32.mrb[31].mxu1 }
0x1f34   : > { %7507 = vmatmul.mubr.msk.bf16.vlgmr.msra.gmra.mrb[32].mxu0 %vm1792_vm13, %v4451_v62 }
0x1f35   : > { %7891 = vmatpush3.bf16.xpose.msk.msra.mxu0 %vm9755_vm11, %v7889_v11  ;;  %7534 = vmatprep.mubr.msk.f32.mxu0 %vm9075_vm14, %v10832_v47  ;;  %v4621_v11 = vmul.f32 %v9711_v8, %v10238_v57 }
0x1f36   : > { %7892 = vmatprep.subr.bf16.mxu0 %v9085_v48 }
0x1f37   : > { %v8379_v38 = vpack.i.bf16 %v4621_v11, %v4620_v12  ;;  %v6883_v11 = vld [vmem:[%s10846_s12] ss:$0 sm:$0xff] }
0x1f3d   : > { %7895 = vmatpush3.bf16.xpose.msk.msra.mxu0 %vm9755_vm11, %v7893_v7 }
0x1f3e   : > { %7896 = vmatprep.subr.bf16.mxu0 %v9085_v48 }
0x1f45   : > { %7899 = vmatpush3.bf16.xpose.msk.msra.mxu0 %vm9755_vm11, %v7897_v10 }
0x1f46   : > { %7900 = vmatprep.subr.bf16.mxu0 %v9085_v48 }
0x1f4d   : > { %7903 = vmatpush3.bf16.xpose.msk.msra.mxu0 %vm9755_vm11, %v7901_v40 }
0x1f4e   : > { %7575 = vmatprep.subr.bf16.mxu0 %v10832_v47 }
0x2007   : > { %v4507_v39 = vpop.f32.mrb[32].mxu0 }
0x2008   : > { %v4508_v63 = vadd.f32 %v6877_v30, %v4507_v39  ;;  %v7508_v4 = vpop.f32.mrb[33].mxu0  ;;  %v6881_v39 = vld [vmem:[%s10844_s8] ss:$0 sm:$0xff] }
0x2009   : > { %v4510_v56 = vpop.f32.mrb[34].mxu0  ;;  %v6882_v4 = vld [vmem:[%s10845_s9] ss:$0 sm:$0xff] }
0x200a   : > { %v10276_v62 = vadd.f32 %v4508_v63, %v10116_v25  ;;  %v7509_v42 = vpop.f32.mrb[35].mxu0 }
0x200c   : > { %v4516_v43 = vsel %vm1792_vm13, %v10276_v62, 0.0 }
0x200d   : > { %4517 = vadd.xlane.f32.xlu0 %v4516_v43 }
0x2023   : > { %8380 = vrot.lane.b32.xlu0 %v8379_v38, %s10830_s7 }
0x209a   : > { %v4518_v7 = vpop.xlane.xlu0 %4517 }
0x209b   : > { %v4519_v13 = vmul.f32 0.03125, %v4518_v7 }
0x209d   : > { %v4520_v25 = vsub.f32 %v10276_v62, %v4519_v13 }
0x209f   : > { %v4521_v33 = vmul.f32 %v4520_v25, %v4520_v25 }
0x20a1   : > { %v4522_v10 = vsel %vm1792_vm13, %v4521_v33, 0.0 }
0x20a2   : > { %4523 = vadd.xlane.f32.xlu1 %v4522_v10 }
0x212f   : > { %v4524_v8 = vpop.xlane.xlu1 %4523 }
0x2130   : > { %v4525_v9 = vmul.f32 0.03125, %v4524_v8 }
0x2132   : > { %v4526_v40 = vadd.f32 1e-05, %v4525_v9  ;;  %v4619_v9 = vmul.f32 %v9707_v2, %v10238_v57  ;;  %v4624_v2 = vmul.f32 %v9725_v20, %v10241_v53 }
0x2134   : > { %8582 = vrsqrt.f32 %v4526_v40  ;;  %v4618_v40 = vmul.f32 %v9709_v5, %v10241_v53 }
0x213e   : > { %v8583_v30 = vpop.eup %8582 }
0x213f   : > { %v4528_v63 = vmul.f32 %v8583_v30, %v4520_v25  ;;  %v8374_v30 = vpack.i.bf16 %v4619_v9, %v4618_v40 }
0x2141   : > { %v4535_v56 = vmul.f32 %v6881_v39, %v4528_v63  ;;  %v4623_v39 = vmul.f32 %v9719_v17, %v10238_v57  ;;  %v4622_v63 = vmul.f32 %v9727_v21, %v10241_v53  ;;  %v8381_v21 = vpop.permute.xlu0 %8380 }
0x2143   : > { %v4542_v42 = vadd.f32 %v6882_v4, %v4535_v56  ;;  %v8384_v4 = vpack.i.bf16 %v4623_v39, %v4622_v63  ;;  %v4625_v56 = vmul.f32 %v9717_v15, %v10238_v57  ;;  %v8382_v15 = vunpack.i.l.bf16 %v8381_v21  ;;  %v8502_v39 = vld [vmem:[%s10847_s11] sm:$0xff]   ;;  %s10850_s11 = sld [smem:[#allocation64_spill]] }
0x2145   : > { %v4548_v43 = vpack.c.bf16 %v4542_v42, %v4542_v42  ;;  %v8389_v42 = vpack.i.bf16 %v4625_v56, %v4624_v2 }
0x2147   : > { %7515 = vmatmul.mubr.msk.bf16.vlgmr.msra.gmra.mrb[32].mxu1 %vm1792_vm13, %v4548_v43 }
0x2148   : > { %7906 = vmatpush3.bf16.msk.msra.mxu1 %vm9795_vm12, %v10837_v18  ;;  %7553 = vmatprep.mubr.msk.f32.mxu1 %vm9075_vm14, %v10832_v47 }
0x2149   : > { %7907 = vmatprep.subr.bf16.mxu1 %v9085_v48  ;;  %s10851_s17 = smov %s10850_s11 }
0x214c   : > { %7909 = vmatpush3.bf16.msk.msra.mxu1 %vm9809_vm1, %v10837_v18 }
0x214d   : > { %7910 = vmatprep.subr.bf16.mxu1 %v9085_v48 }
0x2150   : > { %7912 = vmatpush3.bf16.msk.msra.mxu1 %vm9823_vm2, %v10837_v18 }
0x2151   : > { %7913 = vmatprep.subr.bf16.mxu1 %v9085_v48 }
0x2154   : > { %7915 = vmatpush3.bf16.msk.msra.mxu1 %vm9837_vm8, %v10837_v18 }
0x2155   : > { %7916 = vmatprep.subr.bf16.mxu1 %v9085_v48 }
0x221a   : > { %v4604_v12 = vpop.f32.mrb[32].mxu1 }
0x221b   : > { %v4605_v38 = vadd.f32 %v6883_v11, %v4604_v12  ;;  %v7516_v7 = vpop.f32.mrb[33].mxu1 }
0x221c   : > { %v4607_v13 = vpop.f32.mrb[34].mxu1 }
0x221d   : > { %v7517_v25 = vpop.f32.mrb[35].mxu1  ;;  %7535 = vmatmul.mubr.msk.f32.vlgmr.msra.gmra.mrb[30].mxu0 %vm1792_vm13, %v4605_v38 }
0x221e   : > { %7579 = vmatprep.mubr.msk.bf16.mxu0 %vm9075_vm14, %v10832_v47  ;;  %v8383_v25 = vunpack.i.h.bf16 %v8381_v21  ;;  %7576 = vmatpush3.bf16.msra.mxu0 %v8502_v39 }
0x221f   : > { %7577 = vmatprep.subr.bf16.mxu0 %v10832_v47 }
0x2220   : > { %v7920_v20 = vpack.c.bf16 %v8383_v25, %v8382_v15 }
0x22f0   : > { %v4719_v33 = vpop.f32.mrb[30].mxu0 }
0x22f1   : > { %v4723_v10 = vmul.f32 0.35355338, %v4719_v33  ;;  %v7536_v34 = vpop.f32.mrb[31].mxu0 }
0x22f3   : > { %v4724_v61 = vadd.f32 %v4723_v10, %v9786_v29 }
0x22f5   : > { %v4725_v8 = vsel %vm2610_vm5, %v4724_v61, -inf }
0x22f6   : > { %4726 = vmax.xlane.f32.xlu1 %v4725_v8 }
0x2307   : > { %8375 = vrot.lane.b32.xlu1 %v8374_v30, %s10830_s7 }
0x230b   : > { %8385 = vrot.lane.b32.xlu1 %v8384_v4, %s10830_s7 }
0x230f   : > { %8390 = vrot.lane.b32.xlu1 %v8389_v42, %s10830_s7  ;;  %v8503_v42 = vld [vmem:[%s10848_s13 + $0x8] sm:$0xff]  }
0x2310   : > { %7578 = vmatpush3.bf16.msra.mxu0 %v8503_v42 }
0x2311   : > { %7591 = vmatprep.subr.bf16.mxu0 %v10832_v47 }
0x2383   : > { %v4727_v5 = vpop.xlane.xlu1 %4726 }
0x2384   : > { %v4728_v43 = vsub.f32 %v4724_v61, %v4727_v5 }
0x2386   : > { %v4729_v17 = vmul.f32 1.442695, %v4728_v43 }
0x2387   : > { %v8376_v11 = vpop.permute.xlu1 %8375 }
0x2388   : > { %8584 = vpow2.f32 %v4729_v17  ;;  %v8378_v12 = vunpack.i.h.bf16 %v8376_v11  ;;  %v8377_v38 = vunpack.i.l.bf16 %v8376_v11  ;;  %v6906_v11 = vld [vmem:[%s10849_s16] ss:$0 sm:$0xff] }
0x238a   : > { %v7917_v33 = vpack.c.bf16 %v8378_v12, %v8377_v38 }
0x238b   : > { %v8386_v7 = vpop.permute.xlu1 %8385 }
0x238c   : > { %v8388_v10 = vunpack.i.h.bf16 %v8386_v7  ;;  %v8387_v34 = vunpack.i.l.bf16 %v8386_v7 }
0x238e   : > { %v7923_v8 = vpack.c.bf16 %v8388_v10, %v8387_v34 }
0x238f   : > { %v8391_v61 = vpop.permute.xlu1 %8390 }
0x2390   : > { %v8393_v9 = vunpack.i.h.bf16 %v8391_v61  ;;  %v8392_v40 = vunpack.i.l.bf16 %v8391_v61 }
0x2392   : > { %v8585_v13 = vpop.eup %8584  ;;  %v7926_v30 = vpack.c.bf16 %v8393_v9, %v8392_v40  ;;  %v8505_v9 = vld [vmem:[%s10851_s17 + $0x8] sm:$0xff]  }
0x2393   : > { %7554 = vmatmul.mubr.msk.f32.vlgmr.msra.gmra.mrb[36].mxu1 %vm2610_vm5, %v8585_v13 }
0x2394   : > { %7918 = vmatpush3.bf16.msra.mxu1 %v7917_v33  ;;  %7572 = vmatprep.mubr.msk.f32.mxu1 %vm9075_vm14, %v10832_v47 }
0x2395   : > { %7919 = vmatprep.subr.bf16.mxu1 %v9085_v48 }
0x2398   : > { %7921 = vmatpush3.bf16.msra.mxu1 %v7920_v20 }
0x2399   : > { %7922 = vmatprep.subr.bf16.mxu1 %v9085_v48 }
0x239c   : > { %7924 = vmatpush3.bf16.msra.mxu1 %v7923_v8  ;;  %v8504_v8 = vld [vmem:[%s10850_s11] sm:$0xff]   ;;  %s10855_s11 = sld [smem:[#allocation65_spill]] }
0x239d   : > { %7925 = vmatprep.subr.bf16.mxu1 %v9085_v48 }
0x23a0   : > { %7927 = vmatpush3.bf16.msra.mxu1 %v7926_v30 }
0x23a1   : > { %7583 = vmatprep.subr.bf16.mxu1 %v10832_v47 }
0x23a2   : > { %s10856_s24 = smov %s10855_s11 }
0x2466   : > { %v4800_v63 = vpop.f32.mrb[36].mxu1 }
0x2467   : > { %8586 = vrcp.f32 %v4800_v63  ;;  %v7555_v4 = vpop.f32.mrb[37].mxu1  ;;  %v6910_v63 = vld [vmem:[%s10852_s19] ss:$0 sm:$0xff] }
0x2471   : > { %v8587_v56 = vpop.eup %8586 }
0x2472   : > { %v4805_v2 = vmul.f32 %v8587_v56, %v8585_v13  ;;  %v6911_v56 = vld [vmem:[%s10853_s21] ss:$0 sm:$0xff] }
0x2474   : > { %7573 = vmatmul.mubr.msk.f32.vlgmr.msra.gmra.mrb[38].mxu1 %vm2610_vm5, %v4805_v2 }
0x2475   : > { %7587 = vmatprep.mubr.msk.bf16.mxu1 %vm9075_vm14, %v10832_v47  ;;  %7584 = vmatpush3.bf16.msra.mxu1 %v8504_v8 }
0x2476   : > { %7585 = vmatprep.subr.bf16.mxu1 %v10832_v47 }
0x2479   : > { %7586 = vmatpush3.bf16.msra.mxu1 %v8505_v9 }
0x247a   : > { %7603 = vmatprep.subr.bf16.mxu1 %v10832_v47 }
0x2547   : > { %v4907_v5 = vpop.f32.mrb[38].mxu1 }
0x2548   : > { %v4916_v43 = vpack.c.bf16 %v4907_v5, %v4907_v5  ;;  %v7574_v17 = vpop.f32.mrb[39].mxu1 }
0x2549   : > { %v8507_v17 = vld [vmem:[%s10854_s22 + $0x8] sm:$0xff]  }
0x254a   : > { %7580 = vmatmul.mubr.msk.bf16.vlgmr.msra.gmra.mrb[36].mxu0 %vm1792_vm13, %v4916_v43  ;;  %v8506_v43 = vld [vmem:[%s10854_s22] sm:$0xff]  }
0x254b   : > { %7599 = vmatprep.mubr.msk.bf16.mxu0 %vm9075_vm14, %v10832_v47  ;;  %7592 = vmatpush3.bf16.msra.mxu0 %v8506_v43  ;;  %v8510_v43 = vld [vmem:[%s10823_s1 + $0x10] sm:$0xff]  }
0x254c   : > { %7593 = vmatprep.subr.bf16.mxu0 %v10832_v47 }
0x254f   : > { %7594 = vmatpush3.bf16.msra.mxu0 %v8507_v17  ;;  %v8511_v17 = vld [vmem:[%s10823_s1 + $0x18] sm:$0xff]   ;;  %s7029_s1 = sshll.u32 %s9343_s0, 7 }
0x2550   : > { %7595 = vmatprep.subr.bf16.mxu0 %v10832_v47 }
0x261d   : > { %v4972_v12 = vpop.f32.mrb[36].mxu0 }
0x261e   : > { %v4973_v38 = vadd.f32 %v6906_v11, %v4972_v12  ;;  %v7581_v21 = vpop.f32.mrb[37].mxu0  ;;  %v8508_v11 = vld [vmem:[%s10854_s22 + $0x10] sm:$0xff]   ;;  %v8509_v12 = vld [vmem:[%s10854_s22 + $0x18] sm:$0xff]  }
0x261f   : > { %v4975_v7 = vpop.f32.mrb[38].mxu0  ;;  %7596 = vmatpush3.bf16.msra.mxu0 %v8508_v11 }
0x2620   : > { %v10352_v13 = vadd.f32 %v4973_v38, %v10276_v62  ;;  %v7582_v25 = vpop.f32.mrb[39].mxu0  ;;  %7597 = vmatprep.subr.bf16.mxu0 %v10832_v47  ;;  %v6912_v38 = vld [vmem:[%s10855_s11] ss:$0 sm:$0xff] }
0x2622   : > { %v4981_v15 = vsel %vm1792_vm13, %v10352_v13, 0.0 }
0x2623   : > { %4982 = vadd.xlane.f32.xlu1 %v4981_v15  ;;  %7598 = vmatpush3.bf16.msra.mxu0 %v8509_v12 }
0x2624   : > { %7936 = vmatprep.subr.bf16.mxu0 %v9085_v48 }
0x26b0   : > { %v4983_v33 = vpop.xlane.xlu1 %4982 }
0x26b1   : > { %v4984_v20 = vmul.f32 0.03125, %v4983_v33 }
0x26b3   : > { %v4985_v10 = vsub.f32 %v10352_v13, %v4984_v20 }
0x26b5   : > { %v4986_v34 = vmul.f32 %v4985_v10, %v4985_v10 }
0x26b7   : > { %v4987_v61 = vsel %vm1792_vm13, %v4986_v34, 0.0 }
0x26b8   : > { %4988 = vadd.xlane.f32.xlu0 %v4987_v61 }
0x2745   : > { %v4989_v62 = vpop.xlane.xlu0 %4988 }
0x2746   : > { %v4990_v40 = vmul.f32 0.03125, %v4989_v62  ;;  %v6916_v62 = vld [vmem:[%s10857_s25] ss:$0 sm:$0xff] }
0x2748   : > { %v4991_v30 = vadd.f32 1e-05, %v4990_v40 }
0x274a   : > { %8588 = vrsqrt.f32 %v4991_v30 }
0x2754   : > { %v8589_v39 = vpop.eup %8588 }
0x2755   : > { %v4993_v4 = vmul.f32 %v8589_v39, %v4985_v10 }
0x2757   : > { %v5000_v2 = vmul.f32 %v6910_v63, %v4993_v4 }
0x2759   : > { %v5007_v42 = vadd.f32 %v6911_v56, %v5000_v2 }
0x275b   : > { %v5013_v5 = vpack.c.bf16 %v5007_v42, %v5007_v42 }
0x275d   : > { %7588 = vmatmul.mubr.msk.bf16.vlgmr.msra.gmra.mrb[40].mxu1 %vm1792_vm13, %v5013_v5 }
0x275e   : > { %7607 = vmatprep.mubr.msk.bf16.mxu1 %vm9075_vm14, %v10832_v47  ;;  %7604 = vmatpush3.bf16.msra.mxu1 %v8510_v43 }
0x275f   : > { %7605 = vmatprep.subr.bf16.mxu1 %v10832_v47 }
0x2762   : > { %7606 = vmatpush3.bf16.msra.mxu1 %v8511_v17 }
0x2763   : > { %7928 = vmatprep.subr.bf16.mxu1 %v9085_v48 }
0x2830   : > { %v5069_v21 = vpop.f32.mrb[40].mxu1 }
0x2831   : > { %v5070_v7 = vadd.f32 %v6912_v38, %v5069_v21  ;;  %v7589_v25 = vpop.f32.mrb[41].mxu1  ;;  %v6924_v21 = vld [vmem:[%s10824_s2 + $0x1] ss:$0 sm:$0xff] }
0x2832   : > { %v5072_v15 = vpop.f32.mrb[42].mxu1  ;;  %v6925_v25 = vld [vmem:[%s10826_s23 + $0x1] ss:$0 sm:$0xff] }
0x2833   : > { %v5076_v33 = vmul.f32 0.70710677, %v5070_v7  ;;  %v7590_v20 = vpop.f32.mrb[43].mxu1  ;;  %v5075_v34 = vmul.f32 0.5, %v5070_v7 }
0x2835   : > { %8590 = verf.f32 %v5076_v33 }
0x283f   : > { %v8591_v10 = vpop.eup %8590 }
0x2840   : > { %v5078_v61 = vadd.f32 1.0, %v8591_v10  ;;  %v6931_v10 = vld [vmem:[%s10829_s3 + $0x1] ss:$0 sm:$0xff] }
0x2842   : > { %v5079_v8 = vmul.f32 %v5078_v61, %v5075_v34 }
0x2844   : > { %v5089_v9 = vpack.c.bf16 %v5079_v8, %v5079_v8 }
0x2846   : > { %7600 = vmatmul.mubr.msk.bf16.vlgmr.msra.gmra.mrb[40].mxu0 %vm2610_vm5, %v5089_v9 }
0x2847   : > { %7938 = vmatpush3.bf16.msk.msra.mxu0 %vm10205_vm6, %v10837_v18  ;;  %7630 = vmatprep.mubr.msk.f32.mxu0 %vm9075_vm14, %v10832_v47 }
0x2848   : > { %7939 = vmatprep.subr.bf16.mxu0 %v9085_v48 }
0x284b   : > { %7941 = vmatpush3.bf16.msk.msra.mxu0 %vm7880_vm7, %v10837_v18 }
0x284c   : > { %7942 = vmatprep.subr.bf16.mxu0 %v9085_v48 }
0x2919   : > { %v5157_v40 = vpop.f32.mrb[40].mxu0 }
0x291a   : > { %v5158_v24 = vadd.f32 %v6916_v62, %v5157_v40  ;;  %v7601_v30 = vpop.f32.mrb[41].mxu0 }
0x291b   : > { %v5160_v39 = vpop.f32.mrb[42].mxu0 }
0x291c   : > { %v10392_v63 = vadd.f32 %v5158_v24, %v10352_v13  ;;  %v7602_v4 = vpop.f32.mrb[43].mxu0 }
0x291e   : > { %v5168_v41 = vsel %vm1792_vm13, %v10392_v63, 0.0 }
0x291f   : > { %5169 = vadd.xlane.f32.xlu0 %v5168_v41 }
0x29ac   : > { %v5170_v36 = vpop.xlane.xlu0 %5169 }
0x29ad   : > { %v5171_v56 = vmul.f32 0.03125, %v5170_v36  ;;  %v10858_v36 = vunpack.i.l.bf16 %v10147_v26 }
0x29af   : > { %v5172_v2 = vsub.f32 %v10392_v63, %v5171_v56 }
0x29b1   : > { %v5173_v42 = vmul.f32 %v5172_v2, %v5172_v2 }
0x29b3   : > { %v5174_v5 = vsel %vm1792_vm13, %v5173_v42, 0.0 }
0x29b4   : > { %5175 = vadd.xlane.f32.xlu1 %v5174_v5 }
0x2a41   : > { %v5176_v13 = vpop.xlane.xlu1 %5175 }
0x2a42   : > { %v5177_v11 = vmul.f32 0.03125, %v5176_v13 }
0x2a44   : > { %v5178_v12 = vadd.f32 1e-05, %v5177_v11 }
0x2a46   : > { %8592 = vrsqrt.f32 %v5178_v12 }
0x2a50   : > { %v8593_v38 = vpop.eup %8592 }
0x2a51   : > { %v5180_v7 = vmul.f32 %v8593_v38, %v5172_v2  ;;  %v10859_v2 = vunpack.i.h.bf16 %v10147_v26 }
0x2a53   : > { %v5187_v15 = vmul.f32 %v6924_v21, %v5180_v7 }
0x2a55   : > { %v5194_v33 = vadd.f32 %v6925_v25, %v5187_v15 }
0x2a57   : > { %v5202_v20 = vpack.c.bf16 %v5194_v33, %v5194_v33 }
0x2a59   : > { %7608 = vmatmul.mubr.msk.bf16.vlgmr.msra.gmra.mrb[44].mxu1 %vm1792_vm13, %v5202_v20 }
0x2a5a   : > { %7619 = vmatprep.mubr.msk.f32.mxu1 %vm9075_vm14, %v10832_v47 }
0x2b2c   : > { %v5258_v34 = vpop.f32.mrb[44].mxu1 }
0x2b2d   : > { %v5259_v61 = vadd.f32 %v6931_v10, %v5258_v34  ;;  %v7609_v8 = vpop.f32.mrb[45].mxu1 }
0x2b2e   : > { %v5261_v9 = vpop.f32.mrb[46].mxu1 }
0x2b2f   : > { %v7610_v62 = vpop.f32.mrb[47].mxu1  ;;  %v5266_v40 = vmul.f32 %v8342_v23, %v5259_v61  ;;  %v5267_v24 = vmul.f32 %v8343_v27, %v5259_v61  ;;  %v5264_v30 = vmul.f32 %v8337_v54, %v5259_v61  ;;  %v5265_v39 = vmul.f32 %v8338_v16, %v5259_v61 }
0x2b30   : > { %v5268_v56 = vmul.f32 %v10858_v36, %v5259_v61  ;;  %v5269_v42 = vmul.f32 %v10859_v2, %v5259_v61  ;;  %v5270_v27 = vmul.f32 %v8362_v6, %v5259_v61  ;;  %v10860_v54 = vunpack.i.h.bf16 %v10151_v14  ;;  %v8513_v36 = vld [vmem:[%s10839_s18 + $0x18] sm:$0xff]  }
0x2b31   : > { %v8399_v4 = vpack.i.bf16 %v5267_v24, %v5266_v40  ;;  %v8394_v41 = vpack.i.bf16 %v5265_v39, %v5264_v30  ;;  %v8512_v24 = vld [vmem:[%s10839_s18 + $0x10] sm:$0xff]  }
0x2b32   : > { %v8404_v58 = vpack.i.bf16 %v5269_v42, %v5268_v56  ;;  %v5271_v28 = vmul.f32 %v10860_v54, %v5259_v61 }
0x2b33   : > { %8400 = vrot.lane.b32.xlu1 %v8399_v4, %s10830_s7  ;;  %8395 = vrot.lane.b32.xlu0 %v8394_v41, %s10830_s7 }
0x2b34   : > { %v8409_v16 = vpack.i.bf16 %v5271_v28, %v5270_v27 }
0x2b37   : > { %8405 = vrot.lane.b32.xlu0 %v8404_v58, %s10827_s15  ;;  %v6951_v58 = vld [vmem:[%s10841_s4 + $0x1] ss:$0 sm:$0xff] }
0x2b3b   : > { %8410 = vrot.lane.b32.xlu0 %v8409_v16, %s10827_s15 }
0x2ba5   : > { %v8396_v23 = vpop.permute.xlu0 %8395  ;;  %v8401_v17 = vpop.permute.xlu1 %8400 }
0x2ba6   : > { %v8398_v5 = vunpack.i.h.bf16 %v8396_v23  ;;  %v8397_v26 = vunpack.i.l.bf16 %v8396_v23  ;;  %v8403_v13 = vunpack.i.h.bf16 %v8401_v17  ;;  %v8402_v6 = vunpack.i.l.bf16 %v8401_v17 }
0x2ba7   : > { %v5709_v17 = vmul.f32 %v9861_v1, %v10241_v53  ;;  %v5712_v1 = vmul.f32 %v9868_v19, %v10238_v57  ;;  %v8514_v19 = vld [vmem:[%s10843_s5 + $0x10] sm:$0xff]  }
0x2ba8   : > { %v7929_v43 = vpack.c.bf16 %v8398_v5, %v8397_v26  ;;  %v7933_v11 = vpack.c.bf16 %v8403_v13, %v8402_v6 }
0x2ba9   : > { %v8406_v20 = vpop.permute.xlu0 %8405 }
0x2baa   : > { %7931 = vmatpush3.bf16.xpose.msk.msra.mxu1 %vm9755_vm11, %v7929_v43  ;;  %v8408_v10 = vunpack.i.h.bf16 %v8406_v20  ;;  %v8407_v34 = vunpack.i.l.bf16 %v8406_v20  ;;  %v5710_v43 = vmul.f32 %v9859_v0, %v10238_v57  ;;  %v5707_v0 = vmul.f32 %v9853_v60, %v10241_v53 }
0x2bab   : > { %7932 = vmatprep.subr.bf16.mxu1 %v9085_v48 }
0x2bac   : > { %v7943_v9 = vpack.c.bf16 %v8408_v10, %v8407_v34  ;;  %v8419_v13 = vpack.i.bf16 %v5710_v43, %v5709_v17 }
0x2bb2   : > { %7935 = vmatpush3.bf16.xpose.msk.msra.mxu1 %vm9755_vm11, %v7933_v11 }
0x2bb3   : > { %7644 = vmatprep.subr.bf16.mxu1 %v10832_v47 }
0x2bb9   : > { %7620 = vmatmul.mubr.msk.f32.vlgmr.msra.gmra.mrb[48].mxu1 %vm1792_vm13, %v5259_v61  ;;  %v8411_v61 = vpop.permute.xlu0 %8410 }
0x2bba   : > { %7648 = vmatprep.mubr.msk.bf16.mxu1 %vm9075_vm14, %v10832_v47  ;;  %v8413_v62 = vunpack.i.h.bf16 %v8411_v61  ;;  %v8412_v40 = vunpack.i.l.bf16 %v8411_v61  ;;  %7645 = vmatpush3.bf16.msra.mxu1 %v8512_v24 }
0x2bbb   : > { %7646 = vmatprep.subr.bf16.mxu1 %v10832_v47 }
0x2bbe   : > { %7647 = vmatpush3.bf16.msra.mxu1 %v8513_v36 }
0x2bbf   : > { %7948 = vmatprep.subr.bf16.mxu1 %v9085_v48 }
0x2c8c   : > { %v5361_v14 = vpop.f32.mrb[48].mxu1 }
0x2c8d   : > { %v5365_v12 = vmul.f32 0.35355338, %v5361_v14  ;;  %v7621_v38 = vpop.f32.mrb[49].mxu1 }
0x2c8e   : > { %v5708_v38 = vmul.f32 %v9851_v59, %v10238_v57  ;;  %v5713_v59 = vmul.f32 %v9880_v46, %v10241_v53 }
0x2c8f   : > { %v5366_v21 = vadd.f32 %v5365_v12, %v10197_v3  ;;  %v7946_v3 = vpack.c.bf16 %v8413_v62, %v8412_v40  ;;  %v6957_v40 = vld [vmem:[%s10844_s8 + $0x1] ss:$0 sm:$0xff] }
0x2c91   : > { %v5367_v7 = vsel %vm1792_vm13, %v5366_v21, -inf }
0x2c92   : > { %5368 = vmax.xlane.f32.xlu1 %v5367_v7  ;;  %v5711_v7 = vmul.f32 %v9870_v22, %v10241_v53  ;;  %v8515_v22 = vld [vmem:[%s10843_s5 + $0x18] sm:$0xff]  }
0x2d1f   : > { %v5369_v25 = vpop.xlane.xlu1 %5368 }
0x2d20   : > { %v5370_v15 = vsub.f32 %v5366_v21, %v5369_v25  ;;  %v8414_v21 = vpack.i.bf16 %v5708_v38, %v5707_v0  ;;  %v8424_v25 = vpack.i.bf16 %v5712_v1, %v5711_v7 }
0x2d22   : > { %v5371_v33 = vmul.f32 1.442695, %v5370_v15  ;;  %v5714_v15 = vmul.f32 %v9878_v31, %v10238_v57 }
0x2d24   : > { %8594 = vpow2.f32 %v5371_v33  ;;  %v8429_v60 = vpack.i.bf16 %v5714_v15, %v5713_v59 }
0x2d2e   : > { %v8595_v8 = vpop.eup %8594 }
0x2d2f   : > { %7631 = vmatmul.mubr.msk.f32.vlgmr.msra.gmra.mrb[44].mxu0 %vm1792_vm13, %v8595_v8 }
0x2d30   : > { %7944 = vmatpush3.bf16.msra.mxu0 %v7943_v9  ;;  %7641 = vmatprep.mubr.msk.f32.mxu0 %vm9075_vm14, %v10832_v47 }
0x2d31   : > { %7945 = vmatprep.subr.bf16.mxu0 %v9085_v48 }
0x2d34   : > { %7947 = vmatpush3.bf16.msra.mxu0 %v7946_v3 }
0x2d35   : > { %7652 = vmatprep.subr.bf16.mxu0 %v10832_v47 }
0x2e02   : > { %v5442_v30 = vpop.f32.mrb[44].mxu0 }
0x2e03   : > { %8596 = vrcp.f32 %v5442_v30  ;;  %v7632_v39 = vpop.f32.mrb[45].mxu0 }
0x2e0d   : > { %v8597_v4 = vpop.eup %8596 }
0x2e0e   : > { %v5447_v41 = vmul.f32 %v8597_v4, %v8595_v8  ;;  %v6958_v4 = vld [vmem:[%s10845_s9 + $0x1] ss:$0 sm:$0xff] }
0x2e10   : > { %7642 = vmatmul.mubr.msk.f32.vlgmr.msra.gmra.mrb[46].mxu0 %vm1792_vm13, %v5447_v41 }
0x2e11   : > { %7656 = vmatprep.mubr.msk.bf16.mxu0 %vm9075_vm14, %v10832_v47  ;;  %7653 = vmatpush3.bf16.msra.mxu0 %v8514_v19 }
0x2e12   : > { %7654 = vmatprep.subr.bf16.mxu0 %v10832_v47 }
0x2e15   : > { %7655 = vmatpush3.bf16.msra.mxu0 %v8515_v22 }
0x2e16   : > { %7964 = vmatprep.subr.bf16.mxu0 %v9085_v48 }
0x2ee3   : > { %v5533_v56 = vpop.f32.mrb[46].mxu0 }
0x2ee4   : > { %v5544_v2 = vpack.c.bf16 %v5533_v56, %v5533_v56  ;;  %v7643_v42 = vpop.f32.mrb[47].mxu0 }
0x2ee6   : > { %7649 = vmatmul.mubr.msk.bf16.vlgmr.msra.gmra.mrb[52].mxu1 %vm1792_vm13, %v5544_v2 }
0x2ee7   : > { %7676 = vmatprep.mubr.msk.f32.mxu1 %vm9075_vm14, %v10832_v47 }
0x2fb9   : > { %v5600_v27 = vpop.f32.mrb[52].mxu1 }
0x2fba   : > { %v5601_v54 = vadd.f32 %v6951_v58, %v5600_v27  ;;  %v7650_v28 = vpop.f32.mrb[53].mxu1 }
0x2fbb   : > { %v5603_v16 = vpop.f32.mrb[54].mxu1 }
0x2fbc   : > { %v10456_v23 = vadd.f32 %v5601_v54, %v10392_v63  ;;  %v7651_v5 = vpop.f32.mrb[55].mxu1 }
0x2fbe   : > { %v5611_v26 = vsel %vm1792_vm13, %v10456_v23, 0.0 }
0x2fbf   : > { %5612 = vadd.xlane.f32.xlu0 %v5611_v26 }
0x2fd5   : > { %8420 = vrot.lane.b32.xlu0 %v8419_v13, %s10827_s15 }
0x304c   : > { %v5613_v6 = vpop.xlane.xlu0 %5612 }
0x304d   : > { %v5614_v11 = vmul.f32 0.03125, %v5613_v6 }
0x304f   : > { %v5615_v14 = vsub.f32 %v10456_v23, %v5614_v11 }
0x3051   : > { %v5616_v63 = vmul.f32 %v5615_v14, %v5615_v14 }
0x3053   : > { %v5617_v12 = vsel %vm1792_vm13, %v5616_v63, 0.0 }
0x3054   : > { %5618 = vadd.xlane.f32.xlu1 %v5617_v12 }
0x3065   : > { %8415 = vrot.lane.b32.xlu1 %v8414_v21, %s10827_s15 }
0x3069   : > { %8425 = vrot.lane.b32.xlu1 %v8424_v25, %s10827_s15 }
0x306d   : > { %8430 = vrot.lane.b32.xlu1 %v8429_v60, %s10827_s15  ;;  %s10712_s15 = sand.u32 1, %s9000_s10  }
0x306e   : > { %s6734_s11 = sshll.u32 %s10712_s15, 3 }
0x306f   : > { %s1523_s15 = scalar_lea.vmem [#allocation20], %s6734_s11  ;;  %s9086_s11 = smov [#allocation20]  }
0x3070   : > { %s6473_s2 = sshll.u32 %s1523_s15, 4  ;;  %s8926_s4 = sshll.u32 %s9086_s11, 4  ;;  %s10606_s2 = int_to_ptr.vmem [resolvable:$true] %s6473_s2  ;;  %s8927_s4 = int_to_ptr.vmem [resolvable:$false] %s8926_s4 }
0x3071   : > { %8435 = vrot.lane.b32.xlu1 %v9662_v35, %s10830_s7  ;;  %s8922_s0 = scalar_lea.vmem %s10606_s2, 128  ;;  %s8928_s5 = scalar_lea.vmem %s8927_s4, 256 }
0x3072   : > { %p8923_p13 = scmp.ne.s32.totalorder %s10606_s2, %s8922_s0  ;;  %p8929_p3 = scmp.lt.s32.totalorder %s10606_s2, %s8927_s4 }
0x3073   : > { %p8930_p4 = scmp.lt.s32.totalorder %s8928_s5, %s8922_s0 }
0x3074   : > { %p8924_p2 = pnand %p8923_p13, %p10863_p1 }
0x3075   : > { %8440 = vrot.lane.b32.xlu1 %v9672_v37, %s10830_s7  ;;  %p8931_p12 = por %p8930_p4, %p8929_p3 }
0x3076   : > { %p8925_p0 = pneg %p8924_p2 }
0x3078   : > { %p8932_p5 = pnand %p8931_p12, %p8925_p0 }
0x3079   : > { %8445 = vrot.lane.b32.xlu1 %v9696_v44, %s10830_s7  ;;  %v8421_v44 = vpop.permute.xlu0 %8420 }
0x307a   : > { %v8422_v61 = vunpack.i.l.bf16 %v8421_v44 }
0x307d   : > { %8450 = vrot.lane.b32.xlu1 %v9700_v45, %s10830_s7  ;;  %v8423_v45 = vunpack.i.h.bf16 %v8421_v44  ;;  %s7996_s7 = spop %7995 }
0x307f   : > { %v7953_v62 = vpack.c.bf16 %v8423_v45, %v8422_v61 }
0x30e1   : > { %v5619_v31 = vpop.xlane.xlu1 %5618 }
0x30e2   : > { %v5620_v46 = vmul.f32 0.03125, %v5619_v31 }
0x30e4   : > { %v5621_v35 = vadd.f32 1e-05, %v5620_v46 }
0x30e5   : > { %v8416_v33 = vpop.permute.xlu1 %8415 }
0x30e6   : > { %8598 = vrsqrt.f32 %v5621_v35  ;;  %v8418_v37 = vunpack.i.h.bf16 %v8416_v33  ;;  %v8417_v20 = vunpack.i.l.bf16 %v8416_v33 }
0x30e8   : > { %v7949_v10 = vpack.c.bf16 %v8418_v37, %v8417_v20 }
0x30e9   : > { %v8426_v34 = vpop.permute.xlu1 %8425 }
0x30ea   : > { %7951 = vmatpush3.bf16.xpose.msk.msra.mxu1 %vm9755_vm11, %v7949_v10  ;;  %v8428_v36 = vunpack.i.h.bf16 %v8426_v34  ;;  %v8427_v56 = vunpack.i.l.bf16 %v8426_v34 }
0x30eb   : > { %7952 = vmatprep.subr.bf16.mxu1 %v9085_v48 }
0x30ec   : > { %v7957_v26 = vpack.c.bf16 %v8428_v36, %v8427_v56  ;;  %v8516_v36 = vld [vmem:[%s10848_s13 + $0x10] sm:$0xff]  }
0x30ed   : > { %v8431_v8 = vpop.permute.xlu1 %8430 }
0x30ee   : > { %v8433_v63 = vunpack.i.h.bf16 %v8431_v8  ;;  %v8432_v12 = vunpack.i.l.bf16 %v8431_v8 }
0x30f0   : > { %v8599_v9 = vpop.eup %8598  ;;  %v7961_v25 = vpack.c.bf16 %v8433_v63, %v8432_v12 }
0x30f1   : > { %v5623_v3 = vmul.f32 %v8599_v9, %v5615_v14  ;;  %v8436_v24 = vpop.permute.xlu1 %8435 }
0x30f2   : > { %v8438_v30 = vunpack.i.h.bf16 %v8436_v24  ;;  %v8437_v39 = vunpack.i.l.bf16 %v8436_v24  ;;  %7955 = vmatpush3.bf16.xpose.msk.msra.mxu1 %vm9755_vm11, %v7953_v62 }
0x30f3   : > { %v5630_v41 = vmul.f32 %v6957_v40, %v5623_v3  ;;  %7956 = vmatprep.subr.bf16.mxu1 %v9085_v48 }
0x30f4   : > { %v5740_v2 = vmul.f32 %v8438_v30, %v10238_v57  ;;  %v5739_v42 = vmul.f32 %v8437_v39, %v10241_v53 }
0x30f5   : > { %v8441_v58 = vpop.permute.xlu1 %8440  ;;  %v5637_v27 = vadd.f32 %v6958_v4, %v5630_v41 }
0x30f6   : > { %v8454_v54 = vpack.i.bf16 %v5740_v2, %v5739_v42  ;;  %v8443_v28 = vunpack.i.h.bf16 %v8441_v58  ;;  %v8442_v16 = vunpack.i.l.bf16 %v8441_v58 }
0x30f7   : > { %v5645_v5 = vpack.c.bf16 %v5637_v27, %v5637_v27  ;;  %v8517_v27 = vld [vmem:[%s10848_s13 + $0x18] sm:$0xff]  }
0x30f8   : > { %v5742_v43 = vmul.f32 %v8443_v28, %v10238_v57  ;;  %v5741_v17 = vmul.f32 %v8442_v16, %v10241_v53  ;;  %8455 = vrot.lane.b32.xlu1 %v8454_v54, %s10825_s29 }
0x30f9   : > { %7657 = vmatmul.mubr.msk.bf16.vlgmr.msra.gmra.mrb[48].mxu0 %vm1792_vm13, %v5645_v5  ;;  %v8446_v13 = vpop.permute.xlu1 %8445  ;;  %v6992_v5 = vld [vmem:[%s10849_s16 + $0x1] ss:$0 sm:$0xff] }
0x30fa   : > { %v8459_v6 = vpack.i.bf16 %v5742_v43, %v5741_v17  ;;  %v8448_v11 = vunpack.i.h.bf16 %v8446_v13  ;;  %v8447_v14 = vunpack.i.l.bf16 %v8446_v13  ;;  %7959 = vmatpush3.bf16.xpose.msk.msra.mxu1 %vm9755_vm11, %v7957_v26  ;;  %7966 = vmatpush3.bf16.msk.msra.mxu0 %vm9795_vm12, %v10837_v18 }
0x30fb   : > { %7960 = vmatprep.subr.bf16.mxu1 %v9085_v48  ;;  %7967 = vmatprep.subr.bf16.mxu0 %v9085_v48 }
0x30fc   : > { %v5744_v38 = vmul.f32 %v8448_v11, %v10238_v57  ;;  %v5743_v0 = vmul.f32 %v8447_v14, %v10241_v53  ;;  %8460 = vrot.lane.b32.xlu1 %v8459_v6, %s10825_s29  ;;  %7695 = vmatprep.mubr.msk.f32.mxu0 %vm9075_vm14, %v10832_v47 }
0x30fd   : > { %v8451_v21 = vpop.permute.xlu1 %8450 }
0x30fe   : > { %v8464_v1 = vpack.i.bf16 %v5744_v38, %v5743_v0  ;;  %v8453_v7 = vunpack.i.h.bf16 %v8451_v21  ;;  %v8452_v49 = vunpack.i.l.bf16 %v8451_v21  ;;  %7969 = vmatpush3.bf16.msk.msra.mxu0 %vm9809_vm1, %v10837_v18  ;;  %vm6454_vm1 = vcmp.eq.s32.totalorder %v9635_v32, 2 }
0x30ff   : > { %7970 = vmatprep.subr.bf16.mxu0 %v9085_v48 }
0x3100   : > { %v5746_v15 = vmul.f32 %v8453_v7, %v10238_v57  ;;  %v5745_v59 = vmul.f32 %v8452_v49, %v10241_v53  ;;  %8465 = vrot.lane.b32.xlu1 %v8464_v1, %s10825_s29  ;;  %v8518_v1 = vld [vmem:[%s10851_s17 + $0x10] sm:$0xff]   ;;  %v8519_v7 = vld [vmem:[%s10851_s17 + $0x18] sm:$0xff]  }
0x3102   : > { %v8469_v60 = vpack.i.bf16 %v5746_v15, %v5745_v59  ;;  %7963 = vmatpush3.bf16.xpose.msk.msra.mxu1 %vm9755_vm11, %v7961_v25  ;;  %7972 = vmatpush3.bf16.msk.msra.mxu0 %vm9823_vm2, %v10837_v18  ;;  %v6998_v59 = vld [vmem:[%s10852_s19 + $0x1] ss:$0 sm:$0xff] }
0x3103   : > { %7973 = vmatprep.subr.bf16.mxu0 %v9085_v48  ;;  %7717 = vmatprep.subr.bf16.mxu1 %v10832_v47 }
0x3104   : > { %8470 = vrot.lane.b32.xlu1 %v8469_v60, %s10825_s29  ;;  %s10861_s29 = sld [smem:[#allocation68_spill]] }
0x3106   : > { %7975 = vmatpush3.bf16.msk.msra.mxu0 %vm9837_vm8, %v10837_v18 }
0x3107   : > { %7976 = vmatprep.subr.bf16.mxu0 %v9085_v48 }
0x316a   : > { %v8456_v37 = vpop.permute.xlu1 %8455 }
0x316b   : > { %v8458_v44 = vunpack.i.h.bf16 %v8456_v37  ;;  %v8457_v34 = vunpack.i.l.bf16 %v8456_v37 }
0x316d   : > { %v7977_v8 = vpack.c.bf16 %v8458_v44, %v8457_v34 }
0x316e   : > { %v8461_v10 = vpop.permute.xlu1 %8460 }
0x316f   : > { %v8463_v9 = vunpack.i.h.bf16 %v8461_v10  ;;  %v8462_v62 = vunpack.i.l.bf16 %v8461_v10 }
0x3172   : > { %v8466_v45 = vpop.permute.xlu1 %8465 }
0x3173   : > { %v8468_v40 = vunpack.i.h.bf16 %v8466_v45  ;;  %v8467_v3 = vunpack.i.l.bf16 %v8466_v45 }
0x3175   : > { %v7983_v30 = vpack.c.bf16 %v8468_v40, %v8467_v3 }
0x3176   : > { %v8471_v24 = vpop.permute.xlu1 %8470 }
0x3177   : > { %v8473_v39 = vunpack.i.h.bf16 %v8471_v24  ;;  %v8472_v4 = vunpack.i.l.bf16 %v8471_v24 }
0x3179   : > { %v7986_v41 = vpack.c.bf16 %v8473_v39, %v8472_v4 }
0x31cc   : > { %v5701_v57 = vpop.f32.mrb[48].mxu0 }
0x31cd   : > { %v5702_v55 = vadd.f32 %v6964_v50, %v5701_v57  ;;  %v7658_v53 = vpop.f32.mrb[49].mxu0  ;;  %v6999_v50 = vld [vmem:[%s10853_s21 + $0x1] ss:$0 sm:$0xff] }
0x31ce   : > { %v5704_v19 = vpop.f32.mrb[50].mxu0 }
0x31cf   : > { %v7659_v22 = vpop.f32.mrb[51].mxu0  ;;  %7677 = vmatmul.mubr.msk.f32.vlgmr.msra.gmra.mrb[50].mxu1 %vm1792_vm13, %v5702_v55  ;;  %v8520_v19 = vld [vmem:[%s10854_s22 + $0x20] sm:$0xff]  }
0x31d0   : > { %7721 = vmatprep.mubr.msk.bf16.mxu1 %vm9075_vm14, %v10832_v47  ;;  %7718 = vmatpush3.bf16.msra.mxu1 %v8516_v36  ;;  %v8521_v22 = vld [vmem:[%s10854_s22 + $0x28] sm:$0xff]  }
0x31d1   : > { %7719 = vmatprep.subr.bf16.mxu1 %v10832_v47 }
0x31d4   : > { %7720 = vmatpush3.bf16.msra.mxu1 %v8517_v27  ;;  %v6341_v27 = vld [vmem:[%s9310_s20 + $0x18] sm:$0xff] }
0x31d5   : > { %7733 = vmatprep.subr.bf16.mxu1 %v10832_v47 }
0x32a2   : > { %v5856_v51 = vpop.f32.mrb[50].mxu1 }
0x32a3   : > { %v5860_v31 = vmul.f32 0.35355338, %v5856_v51  ;;  %v7678_v46 = vpop.f32.mrb[51].mxu1  ;;  %v8522_v51 = vld [vmem:[%s10854_s22 + $0x30] sm:$0xff]  }
0x32a4   : > { %v7005_v46 = vld [vmem:[%s10856_s24 + $0x1] ss:$0 sm:$0xff] }
0x32a5   : > { %v5861_v35 = vadd.f32 %v5860_v31, %v9786_v29  ;;  %v7980_v29 = vpack.c.bf16 %v8463_v9, %v8462_v62  ;;  %v8523_v31 = vld [vmem:[%s10854_s22 + $0x38] sm:$0xff]  }
0x32a7   : > { %v5862_v52 = vsel %vm2610_vm5, %v5861_v35, -inf }
0x32a8   : > { %5863 = vmax.xlane.f32.xlu0 %v5862_v52 }
0x3335   : > { %v5864_v18 = vpop.xlane.xlu0 %5863 }
0x3336   : > { %v5865_v33 = vsub.f32 %v5861_v35, %v5864_v18 }
0x3338   : > { %v5866_v20 = vmul.f32 1.442695, %v5865_v33 }
0x333a   : > { %8600 = vpow2.f32 %v5866_v20 }
0x3344   : > { %v8601_v61 = vpop.eup %8600 }
0x3345   : > { %7696 = vmatmul.mubr.msk.f32.vlgmr.msra.gmra.mrb[52].mxu0 %vm2610_vm5, %v8601_v61 }
0x3346   : > { %7978 = vmatpush3.bf16.msra.mxu0 %v7977_v8  ;;  %7714 = vmatprep.mubr.msk.f32.mxu0 %vm9075_vm14, %v10832_v47  ;;  %v7018_v8 = vld [vmem:[%s10857_s25 + $0x1] ss:$0 sm:$0xff] }
0x3347   : > { %7979 = vmatprep.subr.bf16.mxu0 %v9085_v48 }
0x334a   : > { %7981 = vmatpush3.bf16.msra.mxu0 %v7980_v29 }
0x334b   : > { %7982 = vmatprep.subr.bf16.mxu0 %v9085_v48 }
0x334e   : > { %7984 = vmatpush3.bf16.msra.mxu0 %v7983_v30 }
0x334f   : > { %7985 = vmatprep.subr.bf16.mxu0 %v9085_v48 }
0x3352   : > { %7987 = vmatpush3.bf16.msra.mxu0 %v7986_v41 }
0x3353   : > { %7725 = vmatprep.subr.bf16.mxu0 %v10832_v47 }
0x3418   : > { %v5937_v56 = vpop.f32.mrb[52].mxu0 }
0x3419   : > { %8602 = vrcp.f32 %v5937_v56  ;;  %v7697_v2 = vpop.f32.mrb[53].mxu0  ;;  %v6338_v56 = vld [vmem:[%s9310_s20] sm:$0xff] }
0x341a   : > { %v6339_v2 = vld [vmem:[%s9310_s20 + $0x8] sm:$0xff] }
0x3423   : > { %v8603_v42 = vpop.eup %8602 }
0x3424   : > { %v5942_v58 = vmul.f32 %v8603_v42, %v8601_v61  ;;  %v6340_v42 = vld [vmem:[%s9310_s20 + $0x10] sm:$0xff] }
0x3426   : > { %7715 = vmatmul.mubr.msk.f32.vlgmr.msra.gmra.mrb[54].mxu0 %vm2610_vm5, %v5942_v58  ;;  %v7989_v58 = vpack.c.bf16 %v6339_v2, %v6338_v56 }
0x3427   : > { %7729 = vmatprep.mubr.msk.bf16.mxu0 %vm9075_vm14, %v10832_v47  ;;  %7726 = vmatpush3.bf16.msra.mxu0 %v8518_v1 }
0x3428   : > { %7727 = vmatprep.subr.bf16.mxu0 %v10832_v47 }
0x342b   : > { %7728 = vmatpush3.bf16.msra.mxu0 %v8519_v7 }
0x342c   : > { %7988 = vmatprep.subr.bf16.mxu0 %v9085_v48 }
0x34f9   : > { %v6044_v54 = vpop.f32.mrb[54].mxu0 }
0x34fa   : > { %v6055_v28 = vpack.c.bf16 %v6044_v54, %v6044_v54  ;;  %v7716_v16 = vpop.f32.mrb[55].mxu0  ;;  %v7992_v54 = vpack.c.bf16 %v6341_v27, %v6340_v42 }
0x34fc   : > { %7722 = vmatmul.mubr.msk.bf16.vlgmr.msra.gmra.mrb[56].mxu1 %vm1792_vm13, %v6055_v28 }
0x34fd   : > { %7741 = vmatprep.mubr.msk.bf16.mxu1 %vm9075_vm14, %v10832_v47  ;;  %7734 = vmatpush3.bf16.msra.mxu1 %v8520_v19 }
0x34fe   : > { %7735 = vmatprep.subr.bf16.mxu1 %v10832_v47 }
0x3501   : > { %7736 = vmatpush3.bf16.msra.mxu1 %v8521_v22 }
0x3502   : > { %7737 = vmatprep.subr.bf16.mxu1 %v10832_v47 }
0x3505   : > { %7738 = vmatpush3.bf16.msra.mxu1 %v8522_v51 }
0x3506   : > { %7739 = vmatprep.subr.bf16.mxu1 %v10832_v47 }
0x3509   : > { %7740 = vmatpush3.bf16.msra.mxu1 %v8523_v31 }
0x35cf   : > { %v6111_v26 = vpop.f32.mrb[56].mxu1 }
0x35d0   : > { %v6112_v43 = vadd.f32 %v6992_v5, %v6111_v26  ;;  %v7723_v17 = vpop.f32.mrb[57].mxu1 }
0x35d1   : > { %v6114_v13 = vpop.f32.mrb[58].mxu1 }
0x35d2   : > { %v6117_v6 = vadd.f32 %v6112_v43, %v10456_v23  ;;  %v7724_v11 = vpop.f32.mrb[59].mxu1  ;;  %v7024_v43 = vld [vmem:[%s10861_s29] ss:$0 sm:$0xff]  ;;  %s7998_s29 = spop %7997 }
0x35d3   : > { %v7025_v13 = vld [vmem:[%s9305_s14] ss:$0 sm:$0xff]  ;;  %v6448_v51 = vstv %s7998_s29  ;;  %s10862_s29 = sand.u32 1, %s9000_s10  }
0x35d4   : > { %v6122_v14 = vsel %vm1792_vm13, %v6117_v6, 0.0  ;;  %s6460_s3 = scalar_lea.sflag [#allocation4], %s10862_s29 }
0x35d5   : > { %6123 = vadd.xlane.f32.xlu0 %v6122_v14  ;;  %v7026_v14 = vld [vmem:[%s9315_s27] ss:$0 sm:$0xff] }
0x3662   : > { %v6124_v63 = vpop.xlane.xlu0 %6123 }
0x3663   : > { %v6125_v12 = vmul.f32 0.03125, %v6124_v63 }
0x3665   : > { %v6126_v38 = vsub.f32 %v6117_v6, %v6125_v12 }
0x3667   : > { %v6127_v0 = vmul.f32 %v6126_v38, %v6126_v38 }
0x3669   : > { %v6128_v21 = vsel %vm1792_vm13, %v6127_v0, 0.0 }
0x366a   : > { %6129 = vadd.xlane.f32.xlu1 %v6128_v21 }
0x36f7   : > { %v6130_v23 = vpop.xlane.xlu1 %6129 }
0x36f8   : > { %v6131_v49 = vmul.f32 0.03125, %v6130_v23 }
0x36fa   : > { %v6132_v25 = vadd.f32 1e-05, %v6131_v49 }
0x36fc   : > { %8604 = vrsqrt.f32 %v6132_v25 }
0x3706   : > { %v8605_v15 = vpop.eup %8604 }
0x3707   : > { %v6134_v60 = vmul.f32 %v8605_v15, %v6126_v38 }
0x3709   : > { %v6141_v57 = vmul.f32 %v6998_v59, %v6134_v60 }
0x370b   : > { %v6148_v55 = vadd.f32 %v6999_v50, %v6141_v57  ;;  %v6443_v57 = vstv %s7996_s7  ;;  %s10604_s7 = scalar_lea.hbm %s9320_s6, %s7029_s1 }
0x370d   : > { %v6156_v53 = vpack.c.bf16 %v6148_v55, %v6148_v55 }
0x370f   : > { %7730 = vmatmul.mubr.msk.bf16.vlgmr.msra.gmra.mrb[56].mxu0 %vm1792_vm13, %v6156_v53 }
0x3710   : > { %7753 = vmatprep.mubr.msk.f32.mxu0 %vm9075_vm14, %v10832_v47  ;;  %7990 = vmatpush3.bf16.msra.mxu0 %v7989_v58 }
0x3711   : > { %7991 = vmatprep.subr.bf16.mxu0 %v9085_v48 }
0x3714   : > { %7993 = vmatpush3.bf16.msra.mxu0 %v7992_v54 }
0x37e2   : > { %v6212_v35 = vpop.f32.mrb[56].mxu0 }
0x37e3   : > { %v6213_v52 = vadd.f32 %v7005_v46, %v6212_v35  ;;  %v7731_v18 = vpop.f32.mrb[57].mxu0 }
0x37e4   : > { %v6215_v33 = vpop.f32.mrb[58].mxu0 }
0x37e5   : > { %v6219_v37 = vmul.f32 0.70710677, %v6213_v52  ;;  %v7732_v20 = vpop.f32.mrb[59].mxu0  ;;  %v6218_v44 = vmul.f32 0.5, %v6213_v52 }
0x37e7   : > { %8606 = verf.f32 %v6219_v37 }
0x37f1   : > { %v8607_v10 = vpop.eup %8606 }
0x37f2   : > { %v6221_v34 = vadd.f32 1.0, %v8607_v10 }
0x37f4   : > { %v6222_v45 = vmul.f32 %v6221_v34, %v6218_v44 }
0x37f6   : > { %v6234_v61 = vpack.c.bf16 %v6222_v45, %v6222_v45 }
0x37f8   : > { %7742 = vmatmul.mubr.msk.bf16.vlgmr.msra.gmra.mrb[60].mxu1 %vm2610_vm5, %v6234_v61 }
0x38cb   : > { %v6302_v47 = vpop.f32.mrb[60].mxu1 }
0x38cc   : > { %v6303_v9 = vadd.f32 %v7018_v8, %v6302_v47  ;;  %v7743_v62 = vpop.f32.mrb[61].mxu1 }
0x38cd   : > { %v6305_v29 = vpop.f32.mrb[62].mxu1 }
0x38ce   : > { %v6308_v40 = vadd.f32 %v6303_v9, %v6117_v6  ;;  %v7744_v3 = vpop.f32.mrb[63].mxu1 }
0x38d0   : > { %v6311_v24 = vsel %vm1792_vm13, %v6308_v40, 0.0 }
0x38d1   : > { %6312 = vadd.xlane.f32.xlu0 %v6311_v24 }
0x395e   : > { %v6313_v30 = vpop.xlane.xlu0 %6312 }
0x395f   : > { %v6314_v39 = vmul.f32 0.03125, %v6313_v30 }
0x3961   : > { %v6315_v4 = vsub.f32 %v6308_v40, %v6314_v39 }
0x3963   : > { %v6316_v41 = vmul.f32 %v6315_v4, %v6315_v4 }
0x3965   : > { %v6317_v36 = vsel %vm1792_vm13, %v6316_v41, 0.0 }
0x3966   : > { %6318 = vadd.xlane.f32.xlu0 %v6317_v36 }
0x39f3   : > { %v6319_v28 = vpop.xlane.xlu0 %6318 }
0x39f4   : > { %v6320_v16 = vmul.f32 0.03125, %v6319_v28 }
0x39f6   : > { %v6321_v5 = vadd.f32 1e-05, %v6320_v16 }
0x39f8   : > { %8608 = vrsqrt.f32 %v6321_v5 }
0x3a02   : > { %v8609_v26 = vpop.eup %8608 }
0x3a03   : > { %v6323_v17 = vmul.f32 %v8609_v26, %v6315_v4 }
0x3a05   : > { %v6330_v6 = vmul.f32 %v7024_v43, %v6323_v17 }
0x3a07   : > { %v6337_v11 = vadd.f32 %v7025_v13, %v6330_v6 }
0x3a09   : > { %7754 = vmatmul.mubr.msk.f32.vlgmr.msra.gmra.mrb[60].mxu0 %vm1792_vm13, %v6337_v11 }
0x3adc   : > { %v6418_v63 = vpop.f32.mrb[60].mxu0 }
0x3add   : > { %v6419_v12 = vadd.f32 %v7026_v14, %v6418_v63  ;;  %v7755_v38 = vpop.f32.mrb[61].mxu0 }
0x3adf   : > { %v6425_v48 = vand.u32 2147483647, %v6419_v12  ;;  %v6422_v50 = vmax.f32 %v6419_v12, 0.0  ;;  %v6445_v19 = vmul.f32 %v6443_v57, %v6419_v12  ;;  %vm6423_vm14 = vcmp.ne.f32.partialorder %v6419_v12, %v6419_v12 }
0x3ae1   : > { %v6426_v0 = vsub.f32 0.0, %v6425_v48  ;;  %v6450_v46 = vadd.f32 %v6448_v51, %v6445_v19 }
0x3ae3   : > { %v6427_v21 = vmul.f32 1.442695, %v6426_v0 }
0x3ae5   : > { %8610 = vpow2.f32 %v6427_v21 }
0x3aef   : > { %v8611_v1 = vpop.eup %8610 }
0x3af0   : > { %v6429_v7 = vadd.f32 1.0, %v8611_v1  ;;  %v6432_v23 = vmul.f32 -0.5, %v8611_v1  ;;  %v6435_v25 = vand.u32 2147483647, %v8611_v1 }
0x3af2   : > { %8612 = vlog2.f32 %v6429_v7  ;;  %v6433_v49 = vadd.f32 1.0, %v6432_v23  ;;  %vm6436_vm13 = vcmp.lt.f32.partialorder %v6435_v25, 0.0004427343 }
0x3af4   : > { %v6434_v60 = vmul.f32 %v8611_v1, %v6433_v49 }
0x3afc   : > { %v8613_v15 = vpop.eup %8612 }
0x3afd   : > { %v6431_v59 = vmul.f32 0.6931472, %v8613_v15 }
0x3aff   : > { %v6437_v55 = vsel %vm6436_vm13, %v6434_v60, %v6431_v59 }
0x3b00   : > { %v6438_v53 = vadd.f32 %v6437_v55, %v6422_v50 }
0x3b02   : > { %v6439_v22 = vsel %vm6423_vm14, %v6419_v12, %v6438_v53 }
0x3b03   : > { %v6451_v31 = vmul.f32 %v6443_v57, %v6439_v22  ;;  %v6440_v35 = vadd.f32 2.0, %v6439_v22 }
0x3b05   : > { %v6455_v52 = vsel %vm6454_vm1, %v6451_v31, 0.0 }
0x3b06   : > { %v6456_v18 = vsel %vm6453_vm3, %v6450_v46, %v6455_v52 }
0x3b07   : > { %v6457_v33 = vsel %vm6452_vm9, %v6440_v35, %v6456_v18 }
0x3b08   : > { %6458 = vst [vmem:[%s1523_s15] sm:$0xff] %v6457_v33 }
0x3b09   : > { %8935 = shalt.err (!%p8932_p5)
}
0x3b0a   : > { %s8936_s1 = scalar_lea.hbm %s10604_s7, 128  ;;  %s8940_s15 = scalar_lea.hbm %s9320_s6, 256 }
0x3b0b   : > { %p8937_p6 = scmp.ne.s32.totalorder %s10604_s7, %s8936_s1  ;;  %p8941_p7 = scmp.lt.u32.totalorder %s10604_s7, %s9320_s6 }
0x3b0c   : > { %p8942_p8 = scmp.lt.u32.totalorder %s8940_s15, %s8936_s1  ;;  %p8944_p13 = scmp.lt.u32.totalorder %s8936_s1, %s10604_s7 }
0x3b0d   : > { %p8938_p9 = pnand %p8937_p6, %p10863_p1 }
0x3b0e   : > { %p8943_p11 = por %p8942_p8, %p8941_p7 }
0x3b0f   : > { %p8939_p10 = pneg %p8938_p9 }
0x3b10   : > { %p8945_p2 = por %p8944_p13, %p8943_p11 }
0x3b12   : > { %p8946_p0 = pnand %p8945_p2, %p8939_p10 }
0x3b14   : > { %8949 = shalt.err (!%p8946_p0)
}
0x3b15   : > { %8043 = dma.vmem_to_hbm [thread:$0]  (%p10863_p1), %s10606_s2, 128, %s10604_s7, %s6460_s3  }
0x3b16 PF: > { %s10864_s5 = sld [smem:[#allocation71_spill]]  ;;  %s10865_s4 = sld [smem:[#allocation69_spill]] }
0x3b17   : > { %s10866_s29 = sld [smem:[#allocation74_spill]] }
0x3b1c   : > { %p8105_p3 = scmp.ge.s32.totalorder %s10864_s5, 2  ;;  %s6485_s0 = sand.u32 1, %s10865_s4  }
0x3b1d   : > { %p10867_p4 = scmp.ne.s32.totalorder %s10866_s29, 0  ;;  %s6486_s11 = scalar_lea.sflag [#allocation4], %s6485_s0 }
0x3b1f   : > { %p8080_p12 = pnand %p8105_p3, %p10867_p4 }
0x3b21   : > { %8991 = dma.done.wait (!%p8080_p12), %s6486_s11, 128  }
0x3b22   : > { %8993 = vsyncadd (!%p8080_p12), %s6486_s11, 4294967168  ;;  %s10868_s15 = sld [smem:[#allocation72_spill]]  ;;  %s10869_s1 = sld [smem:[#allocation70_spill]] }
0x3b23   : > { %s10870_s11 = sld [smem:[#allocation73_spill]]  ;;  %s10871_s7 = smov %s9000_s10 }
0x3b28   : > { %p107_p5 = scmp.ge.s32.totalorder %s10868_s15, 4   ;;  %s10872_s10 = smov %s10869_s1 }
0x3b2a   :  { %109 = sbr.rel (!%p107_p5) target bundleno = 109 (0x6d), region = 361 }
0x3b31   :  { %6491 = vsyncpa [#allocation3], 1 }
0x3b32   :  { %6493 = vsyncpa [#allocation3 + $0x1], 1 }
0x3b33   :  { %6494 = vsyncpa [#allocation6], 1 }
0x3b34   :  { %6495 = vsyncpa [#allocation9], 1 }
0x3b35   :  { %6496 = vsyncpa [#allocation12], 1 }
0x3b36   :  { %6497 = vsyncpa [#allocation15], 1 }
0x3b37   :  { %6498 = vsyncpa [#allocation18], 1 }
0x3b38   :  { %6499 = vsyncpa [#allocation4], 1 }
0x3b39   :  { %6501 = vsyncpa [#allocation4 + $0x1], 1 }

</bundles_post_ra>
